<compile_context>
chip_gen: v5e
topology: v5e:2x2
jax: 0.10.0
libtpu: 0.0.40
codegen_flags: <defaults>
</compile_context>

<pallas_src>
import math
from functools import partial

import jax
import jax.numpy as jnp
from jax import lax
from jax.experimental import pallas as pl
from jax.experimental.pallas import tpu as pltpu

_LN_EPS = 1e-5          # torch.nn.LayerNorm default
_NEG_INF = -1e30


# ----------------------------- small helpers --------------------------------

def _bf16(x):
    return x.astype(jnp.bfloat16)


def _ln(x, g, b):
    mu = jnp.mean(x, axis=-1, keepdims=True)
    var = jnp.mean((x - mu) ** 2, axis=-1, keepdims=True)
    return (x - mu) * lax.rsqrt(var + _LN_EPS) * g + b


def _swap01(x):
    """(A, B, C) -> (B, A, C); lane (minor) dim untouched."""
    if hasattr(pltpu, "einshape"):
        return pltpu.einshape("abc->bac", x)
    return jnp.transpose(x, (1, 0, 2))


def _vmem_limit():
    try:
        cap = int(pltpu.get_tpu_info().vmem_capacity_bytes)
        # ~48 MiB on v7x (64 MiB/TC), ~96 MiB on v5e/v6e (128 MiB)
        return min(100 * 1024 * 1024, (cap * 3) // 4)
    except Exception:
        return 32 * 1024 * 1024


def _cparams():
    return pltpu.CompilerParams(
        dimension_semantics=("parallel", "arbitrary"),
        vmem_limit_bytes=_vmem_limit())


# ------------------------- multi-head attention (in-VMEM) -------------------

def _mha(xq_n, kv_src, wqkv, bqkv, wo, bo, *, heads, scale, causal, cross):
    """Wo @ MHA(xq_n, kv) + bo — all heads batched, everything stays in VMEM."""
    D = wo.shape[0]
    dh = D // heads
    if cross:
        q = jnp.dot(_bf16(xq_n), wqkv[:, :D],
                    preferred_element_type=jnp.float32) + bqkv[:, :D]
        kv = jnp.dot(_bf16(kv_src), wqkv[:, D:],
                     preferred_element_type=jnp.float32) + bqkv[:, D:]
        k, v = kv[:, :D], kv[:, D:]
    else:
        qkv = jnp.dot(_bf16(xq_n), wqkv,
                      preferred_element_type=jnp.float32) + bqkv
        q, k, v = qkv[:, :D], qkv[:, D:2 * D], qkv[:, 2 * D:]

    Lq, Lk = q.shape[0], k.shape[0]
    # One bf16 cast per tensor; 1/sqrt(dh) folded into q; head-major relayout.
    q3 = _swap01(_bf16(q * scale).reshape(Lq, heads, dh))   # (H, Lq, dh)
    k3 = _swap01(_bf16(k).reshape(Lk, heads, dh))            # (H, Lk, dh)
    v3 = _swap01(_bf16(v).reshape(Lk, heads, dh))            # (H, Lk, dh)

    s = jnp.einsum("hqd,hkd->hqk", q3, k3,
                   preferred_element_type=jnp.float32)       # (H, Lq, Lk)
    if causal:                                               # mask built in-kernel
        qi = lax.broadcasted_iota(jnp.int32, (Lq, Lk), 0)
        ki = lax.broadcasted_iota(jnp.int32, (Lq, Lk), 1)
        s = s + jnp.where(ki <= qi, 0.0, _NEG_INF)[None, :, :]

    m = jnp.max(s, axis=-1, keepdims=True)
    p = jnp.exp(s - m)
    p = p / jnp.sum(p, axis=-1, keepdims=True)               # exact divide (parity)
    o = jnp.einsum("hqk,hkd->hqd", _bf16(p), v3,
                   preferred_element_type=jnp.float32)       # (H, Lq, dh)
    attn = _swap01(o).reshape(Lq, D)                         # heads merged in VMEM
    return jnp.dot(_bf16(attn), wo, preferred_element_type=jnp.float32) + bo


# ----------------------------- fused stack kernels --------------------------

def _enc_stack_kernel(xp_ref, stemw_ref, stemb_ref, pe_ref,
                      g1_ref, b1_ref, wqkv_ref, bqkv_ref, wo_ref, bo_ref,
                      g2_ref, b2_ref, w1_ref, b1f_ref, w2_ref, b2f_ref,
                      gf_ref, bf_ref,
                      e_ref, x_sc,
                      *, heads, scale, nlayers):
    """One batch element, one encoder layer per grid step; carry stays in VMEM."""
    l = pl.program_id(1)
    T = pe_ref.shape[0]

    @pl.when(l == 0)
    def _():
        # conv1d(k=3, 'same') over time as 3 accumulating dots + bias + PE.
        xp = xp_ref[...]                                     # (T+2, F) f32
        acc = pe_ref[...] + stemb_ref[...]
        for tap in range(3):
            acc = acc + jnp.dot(_bf16(xp[tap:tap + T, :]), stemw_ref[tap],
                                preferred_element_type=jnp.float32)
        x_sc[...] = acc

    x = x_sc[...]
    # self-attention sublayer (pre-norm, residual)
    x = x + _mha(_ln(x, g1_ref[...], b1_ref[...]), None,
                 wqkv_ref[...], bqkv_ref[...], wo_ref[...], bo_ref[...],
                 heads=heads, scale=scale, causal=False, cross=False)
    # FFN sublayer — hidden activation never leaves VMEM
    xn = _ln(x, g2_ref[...], b2_ref[...])
    h = jnp.maximum(jnp.dot(_bf16(xn), w1_ref[...],
                            preferred_element_type=jnp.float32) + b1f_ref[...], 0.0)
    x = x + jnp.dot(_bf16(h), w2_ref[...],
                    preferred_element_type=jnp.float32) + b2f_ref[...]
    x_sc[...] = x

    @pl.when(l == nlayers - 1)
    def _():                                                 # enc_norm fused here
        e_ref[...] = _ln(x, gf_ref[...], bf_ref[...])


def _dec_stack_kernel(y0_ref, eo_ref,
                      g1_ref, b1_ref, wqkvs_ref, bqkvs_ref, wos_ref, bos_ref,
                      g2_ref, b2_ref, wqkvc_ref, bqkvc_ref, woc_ref, boc_ref,
                      g3_ref, b3_ref, w1_ref, b1f_ref, w2_ref, b2f_ref,
                      gf_ref, bf_ref, ow_ref, ob_ref,
                      logit_ref, prob_ref, y_sc,
                      *, heads, scale, nlayers):
    """One batch element, one decoder layer per grid step; head fused at the end."""
    l = pl.program_id(1)

    @pl.when(l == 0)
    def _():
        y_sc[...] = y0_ref[...]

    y = y_sc[...]
    # causal self-attention (mask built in-kernel, never DMA'd)
    y = y + _mha(_ln(y, g1_ref[...], b1_ref[...]), None,
                 wqkvs_ref[...], bqkvs_ref[...], wos_ref[...], bos_ref[...],
                 heads=heads, scale=scale, causal=True, cross=False)
    # cross-attention over the (already LN'd) encoder outputs; src_mask is all
    # ones for fMRI inputs so the additive bias is identically zero.
    y = y + _mha(_ln(y, g2_ref[...], b2_ref[...]), eo_ref[...],
                 wqkvc_ref[...], bqkvc_ref[...], woc_ref[...], boc_ref[...],
                 heads=heads, scale=scale, causal=False, cross=True)
    # FFN
    yn = _ln(y, g3_ref[...], b3_ref[...])
    h = jnp.maximum(jnp.dot(_bf16(yn), w1_ref[...],
                            preferred_element_type=jnp.float32) + b1f_ref[...], 0.0)
    y = y + jnp.dot(_bf16(h), w2_ref[...],
                    preferred_element_type=jnp.float32) + b2f_ref[...]
    y_sc[...] = y

    @pl.when(l == nlayers - 1)
    def _():
        # decoder final LN + Linear(d_model, V_pad) + softmax, fused.
        xn = _ln(y, gf_ref[...], bf_ref[...])
        logits = jnp.dot(_bf16(xn), ow_ref[...],
                         preferred_element_type=jnp.float32) + ob_ref[...]
        logit_ref[...] = logits
        m = jnp.max(logits, axis=-1, keepdims=True)
        e = jnp.exp(logits - m)
        prob_ref[...] = e / jnp.sum(e, axis=-1, keepdims=True)   # exact divide


# ------------------------------ call wrappers --------------------------------

def encoder_stack(src, pe, params, *, heads):
    B, T, F = src.shape
    stem_w, stem_b = params["enc_stem_w"], params["enc_stem_b"]
    enc = params["enc"]
    D = stem_w.shape[2]
    nlayers = enc["wqkv"].shape[0]
    d_ff = enc["w1"].shape[2]
    scale = 1.0 / math.sqrt(D // heads)
    src_pad = jnp.pad(src, ((0, 0), (1, 1), (0, 0)))         # 'same' pad over time

    batch3 = lambda s: pl.BlockSpec(s, lambda b, l: (b, 0, 0))
    layer3 = lambda s: pl.BlockSpec(s, lambda b, l: (l, 0, 0))
    const2 = lambda s: pl.BlockSpec(s, lambda b, l: (0, 0))
    const3 = lambda s: pl.BlockSpec(s, lambda b, l: (0, 0, 0))

    in_specs = [
        batch3((None, T + 2, F)),                              # src (padded)
        const3((3, F, D)), const2((1, D)), const2((T, D)),     # stem w/b, PE
        layer3((None, 1, D)), layer3((None, 1, D)),            # g1, b1
        layer3((None, D, 3 * D)), layer3((None, 1, 3 * D)),    # wqkv, bqkv
        layer3((None, D, D)), layer3((None, 1, D)),            # wo, bo
        layer3((None, 1, D)), layer3((None, 1, D)),            # g2, b2
        layer3((None, D, d_ff)), layer3((None, 1, d_ff)),      # w1, b1
        layer3((None, d_ff, D)), layer3((None, 1, D)),         # w2, b2
        const2((1, D)), const2((1, D)),                        # enc_norm g, b
    ]
    kernel = partial(_enc_stack_kernel, heads=heads, scale=scale, nlayers=nlayers)
    return pl.pallas_call(
        kernel,
        out_shape=jax.ShapeDtypeStruct((B, T, D), jnp.float32),
        grid=(B, nlayers),
        in_specs=in_specs,
        out_specs=pl.BlockSpec((None, T, D), lambda b, l: (b, 0, 0)),
        scratch_shapes=[pltpu.VMEM((T, D), jnp.float32)],
        compiler_params=_cparams(),
    )(src_pad, stem_w, stem_b, pe,
      enc["g1"], enc["b1"], enc["wqkv"], enc["bqkv"], enc["wo"], enc["bo"],
      enc["g2"], enc["b2"], enc["w1"], enc["b1f"], enc["w2"], enc["b2f"],
      params["enc_norm_g"], params["enc_norm_b"])


def decoder_stack(y0, e_outputs, params, *, heads):
    B, L, D = y0.shape
    T = e_outputs.shape[1]
    dec = params["dec"]
    nlayers = dec["wqkv_s"].shape[0]
    d_ff = dec["w1"].shape[2]
    Vp = params["out_w"].shape[1]
    scale = 1.0 / math.sqrt(D // heads)

    batch3 = lambda s: pl.BlockSpec(s, lambda b, l: (b, 0, 0))
    layer3 = lambda s: pl.BlockSpec(s, lambda b, l: (l, 0, 0))
    const2 = lambda s: pl.BlockSpec(s, lambda b, l: (0, 0))

    in_specs = [
        batch3((None, L, D)), batch3((None, T, D)),            # y0, e_outputs
        layer3((None, 1, D)), layer3((None, 1, D)),             # g1, b1
        layer3((None, D, 3 * D)), layer3((None, 1, 3 * D)),     # self wqkv, bqkv
        layer3((None, D, D)), layer3((None, 1, D)),             # self wo, bo
        layer3((None, 1, D)), layer3((None, 1, D)),             # g2, b2
        layer3((None, D, 3 * D)), layer3((None, 1, 3 * D)),     # cross wqkv, bqkv
        layer3((None, D, D)), layer3((None, 1, D)),             # cross wo, bo
        layer3((None, 1, D)), layer3((None, 1, D)),             # g3, b3
        layer3((None, D, d_ff)), layer3((None, 1, d_ff)),       # w1, b1
        layer3((None, d_ff, D)), layer3((None, 1, D)),          # w2, b2
        const2((1, D)), const2((1, D)),                         # dec_norm g, b
        const2((D, Vp)), const2((1, Vp)),                       # out w, b (padded)
    ]
    kernel = partial(_dec_stack_kernel, heads=heads, scale=scale, nlayers=nlayers)
    return pl.pallas_call(
        kernel,
        out_shape=(jax.ShapeDtypeStruct((B, L, Vp), jnp.float32),
                   jax.ShapeDtypeStruct((B, L, Vp), jnp.float32)),
        grid=(B, nlayers),
        in_specs=in_specs,
        out_specs=(pl.BlockSpec((None, L, Vp), lambda b, l: (b, 0, 0)),
                   pl.BlockSpec((None, L, Vp), lambda b, l: (b, 0, 0))),
        scratch_shapes=[pltpu.VMEM((L, D), jnp.float32)],
        compiler_params=_cparams(),
    )(y0, e_outputs,
      dec["g1"], dec["b1"], dec["wqkv_s"], dec["bqkv_s"], dec["wo_s"], dec["bo_s"],
      dec["g2"], dec["b2"], dec["wqkv_c"], dec["bqkv_c"], dec["wo_c"], dec["bo_c"],
      dec["g3"], dec["b3"], dec["w1"], dec["b1f"], dec["w2"], dec["b2f"],
      params["dec_norm_g"], params["dec_norm_b"], params["out_w"], params["out_b"])


# ------------------------------- parameters ----------------------------------

def init_params(key, *, time_steps, src_fmri_features, max_seq_length,
                trg_vocab, d_model, d_ff, N, heads):
    del time_steps, max_seq_length, heads
    keys = iter(jax.random.split(key, 1024))

    def w_init(fan_in, shape):                               # bf16 weights in HBM
        return (jax.random.normal(next(keys), shape, jnp.float32)
                / math.sqrt(fan_in)).astype(jnp.bfloat16)

    def zeros(shape):
        return jnp.zeros(shape, jnp.float32)

    def ones(shape):
        return jnp.ones(shape, jnp.float32)

    p = {}
    # conv1d(k=3) stem kept as (tap, F, d_model) so the kernel does 3
    # accumulating dots against tap slices (no im2col copy in HBM).
    p["enc_stem_w"] = w_init(3 * src_fmri_features, (3, src_fmri_features, d_model))
    p["enc_stem_b"] = zeros((1, d_model))

    def enc_layer():
        return {
            "g1": ones((1, d_model)), "b1": zeros((1, d_model)),
            "wqkv": w_init(d_model, (d_model, 3 * d_model)),
            "bqkv": zeros((1, 3 * d_model)),
            "wo": w_init(d_model, (d_model, d_model)), "bo": zeros((1, d_model)),
            "g2": ones((1, d_model)), "b2": zeros((1, d_model)),
            "w1": w_init(d_model, (d_model, d_ff)), "b1f": zeros((1, d_ff)),
            "w2": w_init(d_ff, (d_ff, d_model)), "b2f": zeros((1, d_model)),
        }

    def dec_layer():
        return {
            "g1": ones((1, d_model)), "b1": zeros((1, d_model)),
            "wqkv_s": w_init(d_model, (d_model, 3 * d_model)),
            "bqkv_s": zeros((1, 3 * d_model)),
            "wo_s": w_init(d_model, (d_model, d_model)), "bo_s": zeros((1, d_model)),
            "g2": ones((1, d_model)), "b2": zeros((1, d_model)),
            "wqkv_c": w_init(d_model, (d_model, 3 * d_model)),
            "bqkv_c": zeros((1, 3 * d_model)),
            "wo_c": w_init(d_model, (d_model, d_model)), "bo_c": zeros((1, d_model)),
            "g3": ones((1, d_model)), "b3": zeros((1, d_model)),
            "w1": w_init(d_model, (d_model, d_ff)), "b1f": zeros((1, d_ff)),
            "w2": w_init(d_ff, (d_ff, d_model)), "b2f": zeros((1, d_model)),
        }

    def stack_layers(make, n):                               # (N, ...) stacked params
        layers = [make() for _ in range(n)]
        return jax.tree_util.tree_map(lambda *xs: jnp.stack(xs, axis=0), *layers)

    p["enc"] = stack_layers(enc_layer, N)
    p["dec"] = stack_layers(dec_layer, N)
    p["enc_norm_g"], p["enc_norm_b"] = ones((1, d_model)), zeros((1, d_model))
    p["dec_norm_g"], p["dec_norm_b"] = ones((1, d_model)), zeros((1, d_model))

    p["dec_embed"] = jax.random.normal(next(keys), (trg_vocab, d_model),
                                       jnp.float32) * 0.02

    # Output head: vocab padded to a multiple of 128 lanes for unmasked stores;
    # padded bias columns are -1e30 so they contribute exactly 0 to the softmax.
    vp = ((trg_vocab + 127) // 128) * 128
    w = (jax.random.normal(next(keys), (d_model, trg_vocab), jnp.float32)
         / math.sqrt(d_model))
    p["out_w"] = jnp.pad(w, ((0, 0), (0, vp - trg_vocab))).astype(jnp.bfloat16)
    p["out_b"] = jnp.pad(zeros((1, trg_vocab)), ((0, 0), (0, vp - trg_vocab)),
                         constant_values=_NEG_INF)
    return p


def positional_encoding(length, d_model):
    pos = jnp.arange(length, dtype=jnp.float32)[:, None]
    i = jnp.arange(d_model, dtype=jnp.float32)[None, :]
    angle = pos / jnp.power(10000.0, (2.0 * jnp.floor(i / 2.0)) / d_model)
    return jnp.where(jnp.arange(d_model)[None, :] % 2 == 0,
                     jnp.sin(angle), jnp.cos(angle))


# --------------------------------- forward -----------------------------------

def deconv_bipartite_transformer_conv_forward(params, src, trg, *, heads, trg_vocab):
    B, T, _F = src.shape
    d_model = params["dec_embed"].shape[1]

    # ---- Encoder ("DeconvAlternatingEncoderConv"), single fused pallas_call ----
    # TODO(synk): source for DeconvAlternatingEncoderConv is not provided; a
    # conv1d(k=3,'same') stem + PE + N pre-norm transformer layers is used as a
    # faithful-shape approximation.  src_mask is all-ones for fMRI inputs, so
    # the additive attention bias is identically zero and never materialised.
    e_outputs = encoder_stack(src, positional_encoding(T, d_model), params,
                              heads=heads)

    # ---- Decoder ("ConvAlternatingDecoder"), single fused pallas_call ----
    # TODO(synk): source for ConvAlternatingDecoder is not provided; a standard
    # causal self-attn + cross-attn + FFN pre-norm stack is used instead.
    L = trg.shape[1]
    y0 = jnp.take(params["dec_embed"], trg, axis=0) * math.sqrt(d_model)
    y0 = y0 + positional_encoding(L, d_model)[None]
    logits_p, probs_p = decoder_stack(y0, e_outputs, params, heads=heads)

    # ---- self.out = nn.Linear(d_model, trg_vocab); softmax(dim=2) ----
    return logits_p[..., :trg_vocab], probs_p[..., :trg_vocab]


# ----------------------------------- main -------------------------------------

if __name__ == "__main__":
    time_steps = 8
    src_fmri_features = 16
    max_seq_length = 8
    trg_vocab = 12
    d_model = 32
    d_ff = 64
    N = 2
    heads = 4
    B = 2

    key = jax.random.PRNGKey(0)
    pkey, skey, tkey = jax.random.split(key, 3)
    params = init_params(pkey, time_steps=time_steps,
                         src_fmri_features=src_fmri_features,
                         max_seq_length=max_seq_length, trg_vocab=trg_vocab,
                         d_model=d_model, d_ff=d_ff, N=N, heads=heads)

    src = jax.random.normal(skey, (B, time_steps, src_fmri_features), jnp.float32)
    trg = jax.random.randint(tkey, (B, max_seq_length), 0, trg_vocab, jnp.int32)

    fwd = jax.jit(partial(deconv_bipartite_transformer_conv_forward,
                          heads=heads, trg_vocab=trg_vocab))
    output, output_prob = fwd(params, src, trg)
    jax.block_until_ready((output, output_prob))

    assert output.shape == (B, max_seq_length, trg_vocab)
    assert output_prob.shape == (B, max_seq_length, trg_vocab)
    assert bool(jnp.all(jnp.isfinite(output)))
    assert bool(jnp.allclose(output_prob.sum(-1), 1.0, atol=1e-5))
    print("KERNEL_OK")
</pallas_src>

<mosaic_0001>
module attributes {stable_mosaic.version = 11 : i64} {
  func.func @_enc_stack_kernel(%arg0: i32, %arg1: i32, %arg2: memref<1x10x16xf32, #tpu.memory_space<vmem>>, %arg3: memref<3x16x32xbf16, #tpu.memory_space<vmem>>, %arg4: memref<1x32xf32, #tpu.memory_space<vmem>>, %arg5: memref<8x32xf32, #tpu.memory_space<vmem>>, %arg6: memref<1x1x32xf32, #tpu.memory_space<vmem>>, %arg7: memref<1x1x32xf32, #tpu.memory_space<vmem>>, %arg8: memref<1x32x96xbf16, #tpu.memory_space<vmem>>, %arg9: memref<1x1x96xf32, #tpu.memory_space<vmem>>, %arg10: memref<1x32x32xbf16, #tpu.memory_space<vmem>>, %arg11: memref<1x1x32xf32, #tpu.memory_space<vmem>>, %arg12: memref<1x1x32xf32, #tpu.memory_space<vmem>>, %arg13: memref<1x1x32xf32, #tpu.memory_space<vmem>>, %arg14: memref<1x32x64xbf16, #tpu.memory_space<vmem>>, %arg15: memref<1x1x64xf32, #tpu.memory_space<vmem>>, %arg16: memref<1x64x32xbf16, #tpu.memory_space<vmem>>, %arg17: memref<1x1x32xf32, #tpu.memory_space<vmem>>, %arg18: memref<1x32xf32, #tpu.memory_space<vmem>>, %arg19: memref<1x32xf32, #tpu.memory_space<vmem>>, %arg20: memref<1x8x32xf32, #tpu.memory_space<vmem>>, %arg21: memref<8x32xf32, #tpu.memory_space<vmem>>) attributes {dimension_semantics = [#tpu.dimension_semantics<parallel>, #tpu.dimension_semantics<arbitrary>], iteration_bounds = array<i64: 2, 2>, scalar_prefetch = 0 : i64, scratch_operands = 1 : i64, tpu.core_type = #tpu.core_type<tc>, window_params = [{transform_indices = @transform_0, window_bounds = array<i64: 1, 10, 16>}, {pipeline_mode = #tpu.pipeline_mode<synchronous>, transform_indices = @transform_1, window_bounds = array<i64: 3, 16, 32>}, {pipeline_mode = #tpu.pipeline_mode<synchronous>, transform_indices = @transform_2, window_bounds = array<i64: 1, 32>}, {pipeline_mode = #tpu.pipeline_mode<synchronous>, transform_indices = @transform_3, window_bounds = array<i64: 8, 32>}, {transform_indices = @transform_4, window_bounds = array<i64: 1, 1, 32>}, {transform_indices = @transform_5, window_bounds = array<i64: 1, 1, 32>}, {transform_indices = @transform_6, window_bounds = array<i64: 1, 32, 96>}, {transform_indices = @transform_7, window_bounds = array<i64: 1, 1, 96>}, {transform_indices = @transform_8, window_bounds = array<i64: 1, 32, 32>}, {transform_indices = @transform_9, window_bounds = array<i64: 1, 1, 32>}, {transform_indices = @transform_10, window_bounds = array<i64: 1, 1, 32>}, {transform_indices = @transform_11, window_bounds = array<i64: 1, 1, 32>}, {transform_indices = @transform_12, window_bounds = array<i64: 1, 32, 64>}, {transform_indices = @transform_13, window_bounds = array<i64: 1, 1, 64>}, {transform_indices = @transform_14, window_bounds = array<i64: 1, 64, 32>}, {transform_indices = @transform_15, window_bounds = array<i64: 1, 1, 32>}, {pipeline_mode = #tpu.pipeline_mode<synchronous>, transform_indices = @transform_16, window_bounds = array<i64: 1, 32>}, {pipeline_mode = #tpu.pipeline_mode<synchronous>, transform_indices = @transform_17, window_bounds = array<i64: 1, 32>}, {transform_indices = @transform_18, window_bounds = array<i64: 1, 8, 32>}]} {
    %c0_i32 = arith.constant 0 : i32
    %0 = arith.cmpi eq, %arg1, %c0_i32 : i32
    %1 = arith.extui %0 : i1 to i32
    %c0_i32_0 = arith.constant 0 : i32
    %2 = arith.cmpi ne, %1, %c0_i32_0 : i32
    scf.if %2 {
      %c0_60 = arith.constant 0 : index
      %c0_61 = arith.constant 0 : index
      %c0_62 = arith.constant 0 : index
      %124 = vector.load %arg2[%c0_60, %c0_61, %c0_62] : memref<1x10x16xf32, #tpu.memory_space<vmem>>, vector<1x10x16xf32>
      %125 = vector.shape_cast %124 : vector<1x10x16xf32> to vector<10x16xf32>
      %c0_63 = arith.constant 0 : index
      %c0_64 = arith.constant 0 : index
      %126 = vector.load %arg5[%c0_63, %c0_64] : memref<8x32xf32, #tpu.memory_space<vmem>>, vector<8x32xf32>
      %c0_65 = arith.constant 0 : index
      %c0_66 = arith.constant 0 : index
      %127 = vector.load %arg4[%c0_65, %c0_66] : memref<1x32xf32, #tpu.memory_space<vmem>>, vector<1x32xf32>
      %128 = vector.broadcast %127 : vector<1x32xf32> to vector<8x32xf32>
      %129 = arith.addf %126, %128 : vector<8x32xf32>
      %130 = vector.extract_strided_slice %125 {offsets = [0, 0], sizes = [8, 16], strides = [1, 1]} : vector<10x16xf32> to vector<8x16xf32>
      %131 = arith.truncf %130 : vector<8x16xf32> to vector<8x16xbf16>
      %c0_67 = arith.constant 0 : index
      %c0_68 = arith.constant 0 : index
      %c0_69 = arith.constant 0 : index
      %132 = vector.load %arg3[%c0_67, %c0_68, %c0_69] : memref<3x16x32xbf16, #tpu.memory_space<vmem>>, vector<1x16x32xbf16>
      %133 = vector.shape_cast %132 : vector<1x16x32xbf16> to vector<16x32xbf16>
      %cst_70 = arith.constant dense<0.000000e+00> : vector<8x32xf32>
      %134 = tpu.matmul %131, %133, %cst_70 {dimension_numbers = #tpu.dot_dimension_numbers<[1], [0], [0], [1], [0, 0, 1, 1], [], []>} : vector<8x16xbf16>, vector<16x32xbf16>, vector<8x32xf32> -> vector<8x32xf32>
      %135 = arith.addf %129, %134 : vector<8x32xf32>
      %136 = vector.extract_strided_slice %125 {offsets = [1, 0], sizes = [8, 16], strides = [1, 1]} : vector<10x16xf32> to vector<8x16xf32>
      %137 = arith.truncf %136 : vector<8x16xf32> to vector<8x16xbf16>
      %c1 = arith.constant 1 : index
      %c0_71 = arith.constant 0 : index
      %c0_72 = arith.constant 0 : index
      %138 = vector.load %arg3[%c1, %c0_71, %c0_72] : memref<3x16x32xbf16, #tpu.memory_space<vmem>>, vector<1x16x32xbf16>
      %139 = vector.shape_cast %138 : vector<1x16x32xbf16> to vector<16x32xbf16>
      %cst_73 = arith.constant dense<0.000000e+00> : vector<8x32xf32>
      %140 = tpu.matmul %137, %139, %cst_73 {dimension_numbers = #tpu.dot_dimension_numbers<[1], [0], [0], [1], [0, 0, 1, 1], [], []>} : vector<8x16xbf16>, vector<16x32xbf16>, vector<8x32xf32> -> vector<8x32xf32>
      %141 = arith.addf %135, %140 : vector<8x32xf32>
      %142 = vector.extract_strided_slice %125 {offsets = [2, 0], sizes = [8, 16], strides = [1, 1]} : vector<10x16xf32> to vector<8x16xf32>
      %143 = arith.truncf %142 : vector<8x16xf32> to vector<8x16xbf16>
      %c2 = arith.constant 2 : index
      %c0_74 = arith.constant 0 : index
      %c0_75 = arith.constant 0 : index
      %144 = vector.load %arg3[%c2, %c0_74, %c0_75] : memref<3x16x32xbf16, #tpu.memory_space<vmem>>, vector<1x16x32xbf16>
      %145 = vector.shape_cast %144 : vector<1x16x32xbf16> to vector<16x32xbf16>
      %cst_76 = arith.constant dense<0.000000e+00> : vector<8x32xf32>
      %146 = tpu.matmul %143, %145, %cst_76 {dimension_numbers = #tpu.dot_dimension_numbers<[1], [0], [0], [1], [0, 0, 1, 1], [], []>} : vector<8x16xbf16>, vector<16x32xbf16>, vector<8x32xf32> -> vector<8x32xf32>
      %147 = arith.addf %141, %146 : vector<8x32xf32>
      %c0_77 = arith.constant 0 : index
      %c0_78 = arith.constant 0 : index
      %148 = vector.load %arg21[%c0_77, %c0_78] : memref<8x32xf32, #tpu.memory_space<vmem>>, vector<8x32xf32>
      tpu.vector_store %arg21[%c0_77, %c0_78], %147 {strides = array<i32>} : memref<8x32xf32, #tpu.memory_space<vmem>>, vector<8x32xf32>,
    } else {
    }
    %c0 = arith.constant 0 : index
    %c0_1 = arith.constant 0 : index
    %3 = vector.load %arg21[%c0, %c0_1] : memref<8x32xf32, #tpu.memory_space<vmem>>, vector<8x32xf32>
    %c0_2 = arith.constant 0 : index
    %c0_3 = arith.constant 0 : index
    %c0_4 = arith.constant 0 : index
    %4 = vector.load %arg6[%c0_2, %c0_3, %c0_4] : memref<1x1x32xf32, #tpu.memory_space<vmem>>, vector<1x1x32xf32>
    %5 = vector.shape_cast %4 : vector<1x1x32xf32> to vector<1x32xf32>
    %c0_5 = arith.constant 0 : index
    %c0_6 = arith.constant 0 : index
    %c0_7 = arith.constant 0 : index
    %6 = vector.load %arg7[%c0_5, %c0_6, %c0_7] : memref<1x1x32xf32, #tpu.memory_space<vmem>>, vector<1x1x32xf32>
    %7 = vector.shape_cast %6 : vector<1x1x32xf32> to vector<1x32xf32>
    %cst = arith.constant dense<0.000000e+00> : vector<8xf32>
    %8 = vector.multi_reduction <add>, %3, %cst [1] : vector<8x32xf32> to vector<8xf32>
    %9 = vector.shape_cast %8 : vector<8xf32> to vector<8x1xf32>
    %cst_8 = arith.constant 3.200000e+01 : f32
    %10 = vector.broadcast %cst_8 : f32 to vector<8x1xf32>
    %11 = arith.divf %9, %10 : vector<8x1xf32>
    %12 = vector.broadcast %11 : vector<8x1xf32> to vector<8x32xf32>
    %13 = arith.subf %3, %12 : vector<8x32xf32>
    %14 = arith.mulf %13, %13 : vector<8x32xf32>
    %cst_9 = arith.constant dense<0.000000e+00> : vector<8xf32>
    %15 = vector.multi_reduction <add>, %14, %cst_9 [1] : vector<8x32xf32> to vector<8xf32>
    %16 = vector.shape_cast %15 : vector<8xf32> to vector<8x1xf32>
    %cst_10 = arith.constant 3.200000e+01 : f32
    %17 = vector.broadcast %cst_10 : f32 to vector<8x1xf32>
    %18 = arith.divf %16, %17 : vector<8x1xf32>
    %19 = vector.broadcast %11 : vector<8x1xf32> to vector<8x32xf32>
    %20 = arith.subf %3, %19 : vector<8x32xf32>
    %cst_11 = arith.constant 9.99999974E-6 : f32
    %21 = vector.broadcast %cst_11 : f32 to vector<8x1xf32>
    %22 = arith.addf %18, %21 : vector<8x1xf32>
    %23 = math.rsqrt %22 : vector<8x1xf32>
    %24 = vector.broadcast %23 : vector<8x1xf32> to vector<8x32xf32>
    %25 = arith.mulf %20, %24 : vector<8x32xf32>
    %26 = vector.broadcast %5 : vector<1x32xf32> to vector<8x32xf32>
    %27 = arith.mulf %25, %26 : vector<8x32xf32>
    %28 = vector.broadcast %7 : vector<1x32xf32> to vector<8x32xf32>
    %29 = arith.addf %27, %28 : vector<8x32xf32>
    %c0_12 = arith.constant 0 : index
    %c0_13 = arith.constant 0 : index
    %c0_14 = arith.constant 0 : index
    %30 = vector.load %arg8[%c0_12, %c0_13, %c0_14] : memref<1x32x96xbf16, #tpu.memory_space<vmem>>, vector<1x32x96xbf16>
    %31 = vector.shape_cast %30 : vector<1x32x96xbf16> to vector<32x96xbf16>
    %c0_15 = arith.constant 0 : index
    %c0_16 = arith.constant 0 : index
    %c0_17 = arith.constant 0 : index
    %32 = vector.load %arg9[%c0_15, %c0_16, %c0_17] : memref<1x1x96xf32, #tpu.memory_space<vmem>>, vector<1x1x96xf32>
    %33 = vector.shape_cast %32 : vector<1x1x96xf32> to vector<1x96xf32>
    %c0_18 = arith.constant 0 : index
    %c0_19 = arith.constant 0 : index
    %c0_20 = arith.constant 0 : index
    %34 = vector.load %arg10[%c0_18, %c0_19, %c0_20] : memref<1x32x32xbf16, #tpu.memory_space<vmem>>, vector<1x32x32xbf16>
    %35 = vector.shape_cast %34 : vector<1x32x32xbf16> to vector<32x32xbf16>
    %c0_21 = arith.constant 0 : index
    %c0_22 = arith.constant 0 : index
    %c0_23 = arith.constant 0 : index
    %36 = vector.load %arg11[%c0_21, %c0_22, %c0_23] : memref<1x1x32xf32, #tpu.memory_space<vmem>>, vector<1x1x32xf32>
    %37 = vector.shape_cast %36 : vector<1x1x32xf32> to vector<1x32xf32>
    %38 = arith.truncf %29 : vector<8x32xf32> to vector<8x32xbf16>
    %cst_24 = arith.constant dense<0.000000e+00> : vector<8x96xf32>
    %39 = tpu.matmul %38, %31, %cst_24 {dimension_numbers = #tpu.dot_dimension_numbers<[1], [0], [0], [1], [0, 0, 1, 1], [], []>} : vector<8x32xbf16>, vector<32x96xbf16>, vector<8x96xf32> -> vector<8x96xf32>
    %40 = vector.broadcast %33 : vector<1x96xf32> to vector<8x96xf32>
    %41 = arith.addf %39, %40 : vector<8x96xf32>
    %42 = vector.extract_strided_slice %41 {offsets = [0, 0], sizes = [8, 32], strides = [1, 1]} : vector<8x96xf32> to vector<8x32xf32>
    %43 = vector.extract_strided_slice %41 {offsets = [0, 32], sizes = [8, 32], strides = [1, 1]} : vector<8x96xf32> to vector<8x32xf32>
    %44 = vector.extract_strided_slice %41 {offsets = [0, 64], sizes = [8, 32], strides = [1, 1]} : vector<8x96xf32> to vector<8x32xf32>
    %cst_25 = arith.constant 0.353553385 : f32
    %45 = vector.broadcast %cst_25 : f32 to vector<8x32xf32>
    %46 = arith.mulf %42, %45 : vector<8x32xf32>
    %47 = arith.truncf %46 : vector<8x32xf32> to vector<8x32xbf16>
    %48 = vector.shape_cast %47 : vector<8x32xbf16> to vector<8x4x8xbf16>
    %49 = tpu.transpose %48, [1, 0, 2] : vector<8x4x8xbf16> -> vector<4x8x8xbf16>
    %50 = arith.truncf %43 : vector<8x32xf32> to vector<8x32xbf16>
    %51 = vector.shape_cast %50 : vector<8x32xbf16> to vector<8x4x8xbf16>
    %52 = tpu.transpose %51, [1, 0, 2] : vector<8x4x8xbf16> -> vector<4x8x8xbf16>
    %53 = arith.truncf %44 : vector<8x32xf32> to vector<8x32xbf16>
    %54 = vector.shape_cast %53 : vector<8x32xbf16> to vector<8x4x8xbf16>
    %55 = tpu.transpose %54, [1, 0, 2] : vector<8x4x8xbf16> -> vector<4x8x8xbf16>
    "tpu.trace_start"() <{level = 10 : i32, message = "hqd,hkd->hqk"}> : () -> ()
    %cst_26 = arith.constant dense<0.000000e+00> : vector<4x8x8xf32>
    %56 = tpu.matmul %49, %52, %cst_26 {dimension_numbers = #tpu.dot_dimension_numbers<[2], [2], [1], [1], [0, 0, 0, 1, 1, 1], [0], [0]>} : vector<4x8x8xbf16>, vector<4x8x8xbf16>, vector<4x8x8xf32> -> vector<4x8x8xf32>
    "tpu.trace_stop"() : () -> ()
    %cst_27 = arith.constant dense<0xFF800000> : vector<4x8xf32>
    %57 = vector.multi_reduction <maximumf>, %56, %cst_27 [2] : vector<4x8x8xf32> to vector<4x8xf32>
    %58 = vector.shape_cast %57 : vector<4x8xf32> to vector<4x8x1xf32>
    %59 = vector.broadcast %58 : vector<4x8x1xf32> to vector<4x8x8xf32>
    %60 = arith.subf %56, %59 : vector<4x8x8xf32>
    %61 = math.exp %60 : vector<4x8x8xf32>
    %cst_28 = arith.constant dense<0.000000e+00> : vector<4x8xf32>
    %62 = vector.multi_reduction <add>, %61, %cst_28 [2] : vector<4x8x8xf32> to vector<4x8xf32>
    %63 = vector.shape_cast %62 : vector<4x8xf32> to vector<4x8x1xf32>
    %64 = vector.broadcast %63 : vector<4x8x1xf32> to vector<4x8x8xf32>
    %65 = arith.divf %61, %64 : vector<4x8x8xf32>
    %66 = arith.truncf %65 : vector<4x8x8xf32> to vector<4x8x8xbf16>
    "tpu.trace_start"() <{level = 10 : i32, message = "hqk,hkd->hqd"}> : () -> ()
    %cst_29 = arith.constant dense<0.000000e+00> : vector<4x8x8xf32>
    %67 = tpu.matmul %66, %55, %cst_29 {dimension_numbers = #tpu.dot_dimension_numbers<[2], [1], [1], [2], [0, 0, 0, 1, 1, 2], [0], [0]>} : vector<4x8x8xbf16>, vector<4x8x8xbf16>, vector<4x8x8xf32> -> vector<4x8x8xf32>
    "tpu.trace_stop"() : () -> ()
    %68 = tpu.transpose %67, [1, 0, 2] : vector<4x8x8xf32> -> vector<8x4x8xf32>
    %69 = vector.shape_cast %68 : vector<8x4x8xf32> to vector<8x32xf32>
    %70 = arith.truncf %69 : vector<8x32xf32> to vector<8x32xbf16>
    %cst_30 = arith.constant dense<0.000000e+00> : vector<8x32xf32>
    %71 = tpu.matmul %70, %35, %cst_30 {dimension_numbers = #tpu.dot_dimension_numbers<[1], [0], [0], [1], [0, 0, 1, 1], [], []>} : vector<8x32xbf16>, vector<32x32xbf16>, vector<8x32xf32> -> vector<8x32xf32>
    %72 = vector.broadcast %37 : vector<1x32xf32> to vector<8x32xf32>
    %73 = arith.addf %71, %72 : vector<8x32xf32>
    %74 = arith.addf %3, %73 : vector<8x32xf32>
    %c0_31 = arith.constant 0 : index
    %c0_32 = arith.constant 0 : index
    %c0_33 = arith.constant 0 : index
    %75 = vector.load %arg12[%c0_31, %c0_32, %c0_33] : memref<1x1x32xf32, #tpu.memory_space<vmem>>, vector<1x1x32xf32>
    %76 = vector.shape_cast %75 : vector<1x1x32xf32> to vector<1x32xf32>
    %c0_34 = arith.constant 0 : index
    %c0_35 = arith.constant 0 : index
    %c0_36 = arith.constant 0 : index
    %77 = vector.load %arg13[%c0_34, %c0_35, %c0_36] : memref<1x1x32xf32, #tpu.memory_space<vmem>>, vector<1x1x32xf32>
    %78 = vector.shape_cast %77 : vector<1x1x32xf32> to vector<1x32xf32>
    %cst_37 = arith.constant dense<0.000000e+00> : vector<8xf32>
    %79 = vector.multi_reduction <add>, %74, %cst_37 [1] : vector<8x32xf32> to vector<8xf32>
    %80 = vector.shape_cast %79 : vector<8xf32> to vector<8x1xf32>
    %cst_38 = arith.constant 3.200000e+01 : f32
    %81 = vector.broadcast %cst_38 : f32 to vector<8x1xf32>
    %82 = arith.divf %80, %81 : vector<8x1xf32>
    %83 = vector.broadcast %82 : vector<8x1xf32> to vector<8x32xf32>
    %84 = arith.subf %74, %83 : vector<8x32xf32>
    %85 = arith.mulf %84, %84 : vector<8x32xf32>
    %cst_39 = arith.constant dense<0.000000e+00> : vector<8xf32>
    %86 = vector.multi_reduction <add>, %85, %cst_39 [1] : vector<8x32xf32> to vector<8xf32>
    %87 = vector.shape_cast %86 : vector<8xf32> to vector<8x1xf32>
    %cst_40 = arith.constant 3.200000e+01 : f32
    %88 = vector.broadcast %cst_40 : f32 to vector<8x1xf32>
    %89 = arith.divf %87, %88 : vector<8x1xf32>
    %90 = vector.broadcast %82 : vector<8x1xf32> to vector<8x32xf32>
    %91 = arith.subf %74, %90 : vector<8x32xf32>
    %cst_41 = arith.constant 9.99999974E-6 : f32
    %92 = vector.broadcast %cst_41 : f32 to vector<8x1xf32>
    %93 = arith.addf %89, %92 : vector<8x1xf32>
    %94 = math.rsqrt %93 : vector<8x1xf32>
    %95 = vector.broadcast %94 : vector<8x1xf32> to vector<8x32xf32>
    %96 = arith.mulf %91, %95 : vector<8x32xf32>
    %97 = vector.broadcast %76 : vector<1x32xf32> to vector<8x32xf32>
    %98 = arith.mulf %96, %97 : vector<8x32xf32>
    %99 = vector.broadcast %78 : vector<1x32xf32> to vector<8x32xf32>
    %100 = arith.addf %98, %99 : vector<8x32xf32>
    %101 = arith.truncf %100 : vector<8x32xf32> to vector<8x32xbf16>
    %c0_42 = arith.constant 0 : index
    %c0_43 = arith.constant 0 : index
    %c0_44 = arith.constant 0 : index
    %102 = vector.load %arg14[%c0_42, %c0_43, %c0_44] : memref<1x32x64xbf16, #tpu.memory_space<vmem>>, vector<1x32x64xbf16>
    %103 = vector.shape_cast %102 : vector<1x32x64xbf16> to vector<32x64xbf16>
    %cst_45 = arith.constant dense<0.000000e+00> : vector<8x64xf32>
    %104 = tpu.matmul %101, %103, %cst_45 {dimension_numbers = #tpu.dot_dimension_numbers<[1], [0], [0], [1], [0, 0, 1, 1], [], []>} : vector<8x32xbf16>, vector<32x64xbf16>, vector<8x64xf32> -> vector<8x64xf32>
    %c0_46 = arith.constant 0 : index
    %c0_47 = arith.constant 0 : index
    %c0_48 = arith.constant 0 : index
    %105 = vector.load %arg15[%c0_46, %c0_47, %c0_48] : memref<1x1x64xf32, #tpu.memory_space<vmem>>, vector<1x1x64xf32>
    %106 = vector.shape_cast %105 : vector<1x1x64xf32> to vector<1x64xf32>
    %107 = vector.broadcast %106 : vector<1x64xf32> to vector<8x64xf32>
    %108 = arith.addf %104, %107 : vector<8x64xf32>
    %cst_49 = arith.constant 0.000000e+00 : f32
    %109 = vector.broadcast %cst_49 : f32 to vector<8x64xf32>
    %110 = arith.maximumf %108, %109 : vector<8x64xf32>
    %111 = arith.truncf %110 : vector<8x64xf32> to vector<8x64xbf16>
    %c0_50 = arith.constant 0 : index
    %c0_51 = arith.constant 0 : index
    %c0_52 = arith.constant 0 : index
    %112 = vector.load %arg16[%c0_50, %c0_51, %c0_52] : memref<1x64x32xbf16, #tpu.memory_space<vmem>>, vector<1x64x32xbf16>
    %113 = vector.shape_cast %112 : vector<1x64x32xbf16> to vector<64x32xbf16>
    %cst_53 = arith.constant dense<0.000000e+00> : vector<8x32xf32>
    %114 = tpu.matmul %111, %113, %cst_53 {dimension_numbers = #tpu.dot_dimension_numbers<[1], [0], [0], [1], [0, 0, 1, 1], [], []>} : vector<8x64xbf16>, vector<64x32xbf16>, vector<8x32xf32> -> vector<8x32xf32>
    %115 = arith.addf %74, %114 : vector<8x32xf32>
    %c0_54 = arith.constant 0 : index
    %c0_55 = arith.constant 0 : index
    %c0_56 = arith.constant 0 : index
    %116 = vector.load %arg17[%c0_54, %c0_55, %c0_56] : memref<1x1x32xf32, #tpu.memory_space<vmem>>, vector<1x1x32xf32>
    %117 = vector.shape_cast %116 : vector<1x1x32xf32> to vector<1x32xf32>
    %118 = vector.broadcast %117 : vector<1x32xf32> to vector<8x32xf32>
    %119 = arith.addf %115, %118 : vector<8x32xf32>
    %c0_57 = arith.constant 0 : index
    %c0_58 = arith.constant 0 : index
    %120 = vector.load %arg21[%c0_57, %c0_58] : memref<8x32xf32, #tpu.memory_space<vmem>>, vector<8x32xf32>
    tpu.vector_store %arg21[%c0_57, %c0_58], %119 {strides = array<i32>} : memref<8x32xf32, #tpu.memory_space<vmem>>, vector<8x32xf32>,
    %c1_i32 = arith.constant 1 : i32
    %121 = arith.cmpi eq, %arg1, %c1_i32 : i32
    %122 = arith.extui %121 : i1 to i32
    %c0_i32_59 = arith.constant 0 : i32
    %123 = arith.cmpi ne, %122, %c0_i32_59 : i32
    scf.if %123 {
      %c0_60 = arith.constant 0 : index
      %c0_61 = arith.constant 0 : index
      %124 = vector.load %arg18[%c0_60, %c0_61] : memref<1x32xf32, #tpu.memory_space<vmem>>, vector<1x32xf32>
      %c0_62 = arith.constant 0 : index
      %c0_63 = arith.constant 0 : index
      %125 = vector.load %arg19[%c0_62, %c0_63] : memref<1x32xf32, #tpu.memory_space<vmem>>, vector<1x32xf32>
      %cst_64 = arith.constant dense<0.000000e+00> : vector<8xf32>
      %126 = vector.multi_reduction <add>, %119, %cst_64 [1] : vector<8x32xf32> to vector<8xf32>
      %127 = vector.shape_cast %126 : vector<8xf32> to vector<8x1xf32>
      %cst_65 = arith.constant 3.200000e+01 : f32
      %128 = vector.broadcast %cst_65 : f32 to vector<8x1xf32>
      %129 = arith.divf %127, %128 : vector<8x1xf32>
      %130 = vector.broadcast %129 : vector<8x1xf32> to vector<8x32xf32>
      %131 = arith.subf %119, %130 : vector<8x32xf32>
      %132 = arith.mulf %131, %131 : vector<8x32xf32>
      %cst_66 = arith.constant dense<0.000000e+00> : vector<8xf32>
      %133 = vector.multi_reduction <add>, %132, %cst_66 [1] : vector<8x32xf32> to vector<8xf32>
      %134 = vector.shape_cast %133 : vector<8xf32> to vector<8x1xf32>
      %cst_67 = arith.constant 3.200000e+01 : f32
      %135 = vector.broadcast %cst_67 : f32 to vector<8x1xf32>
      %136 = arith.divf %134, %135 : vector<8x1xf32>
      %137 = vector.broadcast %129 : vector<8x1xf32> to vector<8x32xf32>
      %138 = arith.subf %119, %137 : vector<8x32xf32>
      %cst_68 = arith.constant 9.99999974E-6 : f32
      %139 = vector.broadcast %cst_68 : f32 to vector<8x1xf32>
      %140 = arith.addf %136, %139 : vector<8x1xf32>
      %141 = math.rsqrt %140 : vector<8x1xf32>
      %142 = vector.broadcast %141 : vector<8x1xf32> to vector<8x32xf32>
      %143 = arith.mulf %138, %142 : vector<8x32xf32>
      %144 = vector.broadcast %124 : vector<1x32xf32> to vector<8x32xf32>
      %145 = arith.mulf %143, %144 : vector<8x32xf32>
      %146 = vector.broadcast %125 : vector<1x32xf32> to vector<8x32xf32>
      %147 = arith.addf %145, %146 : vector<8x32xf32>
      %c0_69 = arith.constant 0 : index
      %c0_70 = arith.constant 0 : index
      %c0_71 = arith.constant 0 : index
      %148 = vector.load %arg20[%c0_69, %c0_70, %c0_71] : memref<1x8x32xf32, #tpu.memory_space<vmem>>, vector<1x8x32xf32>
      %149 = vector.shape_cast %148 : vector<1x8x32xf32> to vector<8x32xf32>
      %150 = vector.shape_cast %147 : vector<8x32xf32> to vector<1x8x32xf32>
      tpu.vector_store %arg20[%c0_69, %c0_70, %c0_71], %150 {strides = array<i32>} : memref<1x8x32xf32, #tpu.memory_space<vmem>>, vector<1x8x32xf32>,
    } else {
    }
    return
  }
  func.func @transform_0(%arg0: i32, %arg1: i32) -> (i32, i32, i32) {
    %c0_i32 = arith.constant 0 : i32
    %c0_i32_0 = arith.constant 0 : i32
    %c0_i32_1 = arith.constant 0 : i32
    return %arg0, %c0_i32, %c0_i32_0 : i32, i32, i32
  }
  func.func @transform_1(%arg0: i32, %arg1: i32) -> (i32, i32, i32) {
    %c0_i32 = arith.constant 0 : i32
    %c0_i32_0 = arith.constant 0 : i32
    %c0_i32_1 = arith.constant 0 : i32
    %c0_i32_2 = arith.constant 0 : i32
    return %c0_i32, %c0_i32_0, %c0_i32_1 : i32, i32, i32
  }
  func.func @transform_2(%arg0: i32, %arg1: i32) -> (i32, i32) {
    %c0_i32 = arith.constant 0 : i32
    %c0_i32_0 = arith.constant 0 : i32
    %c0_i32_1 = arith.constant 0 : i32
    return %c0_i32, %c0_i32_0 : i32, i32
  }
  func.func @transform_3(%arg0: i32, %arg1: i32) -> (i32, i32) {
    %c0_i32 = arith.constant 0 : i32
    %c0_i32_0 = arith.constant 0 : i32
    %c0_i32_1 = arith.constant 0 : i32
    return %c0_i32, %c0_i32_0 : i32, i32
  }
  func.func @transform_4(%arg0: i32, %arg1: i32) -> (i32, i32, i32) {
    %c0_i32 = arith.constant 0 : i32
    %c0_i32_0 = arith.constant 0 : i32
    %c0_i32_1 = arith.constant 0 : i32
    return %arg1, %c0_i32, %c0_i32_0 : i32, i32, i32
  }
  func.func @transform_5(%arg0: i32, %arg1: i32) -> (i32, i32, i32) {
    %c0_i32 = arith.constant 0 : i32
    %c0_i32_0 = arith.constant 0 : i32
    %c0_i32_1 = arith.constant 0 : i32
    return %arg1, %c0_i32, %c0_i32_0 : i32, i32, i32
  }
  func.func @transform_6(%arg0: i32, %arg1: i32) -> (i32, i32, i32) {
    %c0_i32 = arith.constant 0 : i32
    %c0_i32_0 = arith.constant 0 : i32
    %c0_i32_1 = arith.constant 0 : i32
    return %arg1, %c0_i32, %c0_i32_0 : i32, i32, i32
  }
  func.func @transform_7(%arg0: i32, %arg1: i32) -> (i32, i32, i32) {
    %c0_i32 = arith.constant 0 : i32
    %c0_i32_0 = arith.constant 0 : i32
    %c0_i32_1 = arith.constant 0 : i32
    return %arg1, %c0_i32, %c0_i32_0 : i32, i32, i32
  }
  func.func @transform_8(%arg0: i32, %arg1: i32) -> (i32, i32, i32) {
    %c0_i32 = arith.constant 0 : i32
    %c0_i32_0 = arith.constant 0 : i32
    %c0_i32_1 = arith.constant 0 : i32
    return %arg1, %c0_i32, %c0_i32_0 : i32, i32, i32
  }
  func.func @transform_9(%arg0: i32, %arg1: i32) -> (i32, i32, i32) {
    %c0_i32 = arith.constant 0 : i32
    %c0_i32_0 = arith.constant 0 : i32
    %c0_i32_1 = arith.constant 0 : i32
    return %arg1, %c0_i32, %c0_i32_0 : i32, i32, i32
  }
  func.func @transform_10(%arg0: i32, %arg1: i32) -> (i32, i32, i32) {
    %c0_i32 = arith.constant 0 : i32
    %c0_i32_0 = arith.constant 0 : i32
    %c0_i32_1 = arith.constant 0 : i32
    return %arg1, %c0_i32, %c0_i32_0 : i32, i32, i32
  }
  func.func @transform_11(%arg0: i32, %arg1: i32) -> (i32, i32, i32) {
    %c0_i32 = arith.constant 0 : i32
    %c0_i32_0 = arith.constant 0 : i32
    %c0_i32_1 = arith.constant 0 : i32
    return %arg1, %c0_i32, %c0_i32_0 : i32, i32, i32
  }
  func.func @transform_12(%arg0: i32, %arg1: i32) -> (i32, i32, i32) {
    %c0_i32 = arith.constant 0 : i32
    %c0_i32_0 = arith.constant 0 : i32
    %c0_i32_1 = arith.constant 0 : i32
    return %arg1, %c0_i32, %c0_i32_0 : i32, i32, i32
  }
  func.func @transform_13(%arg0: i32, %arg1: i32) -> (i32, i32, i32) {
    %c0_i32 = arith.constant 0 : i32
    %c0_i32_0 = arith.constant 0 : i32
    %c0_i32_1 = arith.constant 0 : i32
    return %arg1, %c0_i32, %c0_i32_0 : i32, i32, i32
  }
  func.func @transform_14(%arg0: i32, %arg1: i32) -> (i32, i32, i32) {
    %c0_i32 = arith.constant 0 : i32
    %c0_i32_0 = arith.constant 0 : i32
    %c0_i32_1 = arith.constant 0 : i32
    return %arg1, %c0_i32, %c0_i32_0 : i32, i32, i32
  }
  func.func @transform_15(%arg0: i32, %arg1: i32) -> (i32, i32, i32) {
    %c0_i32 = arith.constant 0 : i32
    %c0_i32_0 = arith.constant 0 : i32
    %c0_i32_1 = arith.constant 0 : i32
    return %arg1, %c0_i32, %c0_i32_0 : i32, i32, i32
  }
  func.func @transform_16(%arg0: i32, %arg1: i32) -> (i32, i32) {
    %c0_i32 = arith.constant 0 : i32
    %c0_i32_0 = arith.constant 0 : i32
    %c0_i32_1 = arith.constant 0 : i32
    return %c0_i32, %c0_i32_0 : i32, i32
  }
  func.func @transform_17(%arg0: i32, %arg1: i32) -> (i32, i32) {
    %c0_i32 = arith.constant 0 : i32
    %c0_i32_0 = arith.constant 0 : i32
    %c0_i32_1 = arith.constant 0 : i32
    return %c0_i32, %c0_i32_0 : i32, i32
  }
  func.func @transform_18(%arg0: i32, %arg1: i32) -> (i32, i32, i32) {
    %c0_i32 = arith.constant 0 : i32
    %c0_i32_0 = arith.constant 0 : i32
    %c0_i32_1 = arith.constant 0 : i32
    return %arg0, %c0_i32, %c0_i32_0 : i32, i32, i32
  }
}

module attributes {stable_mosaic.version = 11 : i64} {
  func.func @_dec_stack_kernel(%arg0: i32, %arg1: i32, %arg2: memref<1x8x32xf32, #tpu.memory_space<vmem>>, %arg3: memref<1x8x32xf32, #tpu.memory_space<vmem>>, %arg4: memref<1x1x32xf32, #tpu.memory_space<vmem>>, %arg5: memref<1x1x32xf32, #tpu.memory_space<vmem>>, %arg6: memref<1x32x96xbf16, #tpu.memory_space<vmem>>, %arg7: memref<1x1x96xf32, #tpu.memory_space<vmem>>, %arg8: memref<1x32x32xbf16, #tpu.memory_space<vmem>>, %arg9: memref<1x1x32xf32, #tpu.memory_space<vmem>>, %arg10: memref<1x1x32xf32, #tpu.memory_space<vmem>>, %arg11: memref<1x1x32xf32, #tpu.memory_space<vmem>>, %arg12: memref<1x32x96xbf16, #tpu.memory_space<vmem>>, %arg13: memref<1x1x96xf32, #tpu.memory_space<vmem>>, %arg14: memref<1x32x32xbf16, #tpu.memory_space<vmem>>, %arg15: memref<1x1x32xf32, #tpu.memory_space<vmem>>, %arg16: memref<1x1x32xf32, #tpu.memory_space<vmem>>, %arg17: memref<1x1x32xf32, #tpu.memory_space<vmem>>, %arg18: memref<1x32x64xbf16, #tpu.memory_space<vmem>>, %arg19: memref<1x1x64xf32, #tpu.memory_space<vmem>>, %arg20: memref<1x64x32xbf16, #tpu.memory_space<vmem>>, %arg21: memref<1x1x32xf32, #tpu.memory_space<vmem>>, %arg22: memref<1x32xf32, #tpu.memory_space<vmem>>, %arg23: memref<1x32xf32, #tpu.memory_space<vmem>>, %arg24: memref<32x128xbf16, #tpu.memory_space<vmem>>, %arg25: memref<1x128xf32, #tpu.memory_space<vmem>>, %arg26: memref<1x8x128xf32, #tpu.memory_space<vmem>>, %arg27: memref<1x8x128xf32, #tpu.memory_space<vmem>>, %arg28: memref<8x32xf32, #tpu.memory_space<vmem>>) attributes {dimension_semantics = [#tpu.dimension_semantics<parallel>, #tpu.dimension_semantics<arbitrary>], iteration_bounds = array<i64: 2, 2>, scalar_prefetch = 0 : i64, scratch_operands = 1 : i64, tpu.core_type = #tpu.core_type<tc>, window_params = [{transform_indices = @transform_0, window_bounds = array<i64: 1, 8, 32>}, {transform_indices = @transform_1, window_bounds = array<i64: 1, 8, 32>}, {transform_indices = @transform_2, window_bounds = array<i64: 1, 1, 32>}, {transform_indices = @transform_3, window_bounds = array<i64: 1, 1, 32>}, {transform_indices = @transform_4, window_bounds = array<i64: 1, 32, 96>}, {transform_indices = @transform_5, window_bounds = array<i64: 1, 1, 96>}, {transform_indices = @transform_6, window_bounds = array<i64: 1, 32, 32>}, {transform_indices = @transform_7, window_bounds = array<i64: 1, 1, 32>}, {transform_indices = @transform_8, window_bounds = array<i64: 1, 1, 32>}, {transform_indices = @transform_9, window_bounds = array<i64: 1, 1, 32>}, {transform_indices = @transform_10, window_bounds = array<i64: 1, 32, 96>}, {transform_indices = @transform_11, window_bounds = array<i64: 1, 1, 96>}, {transform_indices = @transform_12, window_bounds = array<i64: 1, 32, 32>}, {transform_indices = @transform_13, window_bounds = array<i64: 1, 1, 32>}, {transform_indices = @transform_14, window_bounds = array<i64: 1, 1, 32>}, {transform_indices = @transform_15, window_bounds = array<i64: 1, 1, 32>}, {transform_indices = @transform_16, window_bounds = array<i64: 1, 32, 64>}, {transform_indices = @transform_17, window_bounds = array<i64: 1, 1, 64>}, {transform_indices = @transform_18, window_bounds = array<i64: 1, 64, 32>}, {transform_indices = @transform_19, window_bounds = array<i64: 1, 1, 32>}, {pipeline_mode = #tpu.pipeline_mode<synchronous>, transform_indices = @transform_20, window_bounds = array<i64: 1, 32>}, {pipeline_mode = #tpu.pipeline_mode<synchronous>, transform_indices = @transform_21, window_bounds = array<i64: 1, 32>}, {pipeline_mode = #tpu.pipeline_mode<synchronous>, transform_indices = @transform_22, window_bounds = array<i64: 32, 128>}, {pipeline_mode = #tpu.pipeline_mode<synchronous>, transform_indices = @transform_23, window_bounds = array<i64: 1, 128>}, {transform_indices = @transform_24, window_bounds = array<i64: 1, 8, 128>}, {transform_indices = @transform_25, window_bounds = array<i64: 1, 8, 128>}]} {
    %c0_i32 = arith.constant 0 : i32
    %0 = arith.cmpi eq, %arg1, %c0_i32 : i32
    %1 = arith.extui %0 : i1 to i32
    %c0_i32_0 = arith.constant 0 : i32
    %2 = arith.cmpi ne, %1, %c0_i32_0 : i32
    scf.if %2 {
      %c0_96 = arith.constant 0 : index
      %c0_97 = arith.constant 0 : index
      %c0_98 = arith.constant 0 : index
      %213 = vector.load %arg2[%c0_96, %c0_97, %c0_98] : memref<1x8x32xf32, #tpu.memory_space<vmem>>, vector<1x8x32xf32>
      %214 = vector.shape_cast %213 : vector<1x8x32xf32> to vector<8x32xf32>
      %c0_99 = arith.constant 0 : index
      %c0_100 = arith.constant 0 : index
      %215 = vector.load %arg28[%c0_99, %c0_100] : memref<8x32xf32, #tpu.memory_space<vmem>>, vector<8x32xf32>
      tpu.vector_store %arg28[%c0_99, %c0_100], %214 {strides = array<i32>} : memref<8x32xf32, #tpu.memory_space<vmem>>, vector<8x32xf32>,
    } else {
    }
    %c0 = arith.constant 0 : index
    %c0_1 = arith.constant 0 : index
    %3 = vector.load %arg28[%c0, %c0_1] : memref<8x32xf32, #tpu.memory_space<vmem>>, vector<8x32xf32>
    %c0_2 = arith.constant 0 : index
    %c0_3 = arith.constant 0 : index
    %c0_4 = arith.constant 0 : index
    %4 = vector.load %arg4[%c0_2, %c0_3, %c0_4] : memref<1x1x32xf32, #tpu.memory_space<vmem>>, vector<1x1x32xf32>
    %5 = vector.shape_cast %4 : vector<1x1x32xf32> to vector<1x32xf32>
    %c0_5 = arith.constant 0 : index
    %c0_6 = arith.constant 0 : index
    %c0_7 = arith.constant 0 : index
    %6 = vector.load %arg5[%c0_5, %c0_6, %c0_7] : memref<1x1x32xf32, #tpu.memory_space<vmem>>, vector<1x1x32xf32>
    %7 = vector.shape_cast %6 : vector<1x1x32xf32> to vector<1x32xf32>
    %cst = arith.constant dense<0.000000e+00> : vector<8xf32>
    %8 = vector.multi_reduction <add>, %3, %cst [1] : vector<8x32xf32> to vector<8xf32>
    %9 = vector.shape_cast %8 : vector<8xf32> to vector<8x1xf32>
    %cst_8 = arith.constant 3.200000e+01 : f32
    %10 = vector.broadcast %cst_8 : f32 to vector<8x1xf32>
    %11 = arith.divf %9, %10 : vector<8x1xf32>
    %12 = vector.broadcast %11 : vector<8x1xf32> to vector<8x32xf32>
    %13 = arith.subf %3, %12 : vector<8x32xf32>
    %14 = arith.mulf %13, %13 : vector<8x32xf32>
    %cst_9 = arith.constant dense<0.000000e+00> : vector<8xf32>
    %15 = vector.multi_reduction <add>, %14, %cst_9 [1] : vector<8x32xf32> to vector<8xf32>
    %16 = vector.shape_cast %15 : vector<8xf32> to vector<8x1xf32>
    %cst_10 = arith.constant 3.200000e+01 : f32
    %17 = vector.broadcast %cst_10 : f32 to vector<8x1xf32>
    %18 = arith.divf %16, %17 : vector<8x1xf32>
    %19 = vector.broadcast %11 : vector<8x1xf32> to vector<8x32xf32>
    %20 = arith.subf %3, %19 : vector<8x32xf32>
    %cst_11 = arith.constant 9.99999974E-6 : f32
    %21 = vector.broadcast %cst_11 : f32 to vector<8x1xf32>
    %22 = arith.addf %18, %21 : vector<8x1xf32>
    %23 = math.rsqrt %22 : vector<8x1xf32>
    %24 = vector.broadcast %23 : vector<8x1xf32> to vector<8x32xf32>
    %25 = arith.mulf %20, %24 : vector<8x32xf32>
    %26 = vector.broadcast %5 : vector<1x32xf32> to vector<8x32xf32>
    %27 = arith.mulf %25, %26 : vector<8x32xf32>
    %28 = vector.broadcast %7 : vector<1x32xf32> to vector<8x32xf32>
    %29 = arith.addf %27, %28 : vector<8x32xf32>
    %c0_12 = arith.constant 0 : index
    %c0_13 = arith.constant 0 : index
    %c0_14 = arith.constant 0 : index
    %30 = vector.load %arg6[%c0_12, %c0_13, %c0_14] : memref<1x32x96xbf16, #tpu.memory_space<vmem>>, vector<1x32x96xbf16>
    %31 = vector.shape_cast %30 : vector<1x32x96xbf16> to vector<32x96xbf16>
    %c0_15 = arith.constant 0 : index
    %c0_16 = arith.constant 0 : index
    %c0_17 = arith.constant 0 : index
    %32 = vector.load %arg7[%c0_15, %c0_16, %c0_17] : memref<1x1x96xf32, #tpu.memory_space<vmem>>, vector<1x1x96xf32>
    %33 = vector.shape_cast %32 : vector<1x1x96xf32> to vector<1x96xf32>
    %c0_18 = arith.constant 0 : index
    %c0_19 = arith.constant 0 : index
    %c0_20 = arith.constant 0 : index
    %34 = vector.load %arg8[%c0_18, %c0_19, %c0_20] : memref<1x32x32xbf16, #tpu.memory_space<vmem>>, vector<1x32x32xbf16>
    %35 = vector.shape_cast %34 : vector<1x32x32xbf16> to vector<32x32xbf16>
    %c0_21 = arith.constant 0 : index
    %c0_22 = arith.constant 0 : index
    %c0_23 = arith.constant 0 : index
    %36 = vector.load %arg9[%c0_21, %c0_22, %c0_23] : memref<1x1x32xf32, #tpu.memory_space<vmem>>, vector<1x1x32xf32>
    %37 = vector.shape_cast %36 : vector<1x1x32xf32> to vector<1x32xf32>
    %38 = arith.truncf %29 : vector<8x32xf32> to vector<8x32xbf16>
    %cst_24 = arith.constant dense<0.000000e+00> : vector<8x96xf32>
    %39 = tpu.matmul %38, %31, %cst_24 {dimension_numbers = #tpu.dot_dimension_numbers<[1], [0], [0], [1], [0, 0, 1, 1], [], []>} : vector<8x32xbf16>, vector<32x96xbf16>, vector<8x96xf32> -> vector<8x96xf32>
    %40 = vector.broadcast %33 : vector<1x96xf32> to vector<8x96xf32>
    %41 = arith.addf %39, %40 : vector<8x96xf32>
    %42 = vector.extract_strided_slice %41 {offsets = [0, 0], sizes = [8, 32], strides = [1, 1]} : vector<8x96xf32> to vector<8x32xf32>
    %43 = vector.extract_strided_slice %41 {offsets = [0, 32], sizes = [8, 32], strides = [1, 1]} : vector<8x96xf32> to vector<8x32xf32>
    %44 = vector.extract_strided_slice %41 {offsets = [0, 64], sizes = [8, 32], strides = [1, 1]} : vector<8x96xf32> to vector<8x32xf32>
    %cst_25 = arith.constant 0.353553385 : f32
    %45 = vector.broadcast %cst_25 : f32 to vector<8x32xf32>
    %46 = arith.mulf %42, %45 : vector<8x32xf32>
    %47 = arith.truncf %46 : vector<8x32xf32> to vector<8x32xbf16>
    %48 = vector.shape_cast %47 : vector<8x32xbf16> to vector<8x4x8xbf16>
    %49 = tpu.transpose %48, [1, 0, 2] : vector<8x4x8xbf16> -> vector<4x8x8xbf16>
    %50 = arith.truncf %43 : vector<8x32xf32> to vector<8x32xbf16>
    %51 = vector.shape_cast %50 : vector<8x32xbf16> to vector<8x4x8xbf16>
    %52 = tpu.transpose %51, [1, 0, 2] : vector<8x4x8xbf16> -> vector<4x8x8xbf16>
    %53 = arith.truncf %44 : vector<8x32xf32> to vector<8x32xbf16>
    %54 = vector.shape_cast %53 : vector<8x32xbf16> to vector<8x4x8xbf16>
    %55 = tpu.transpose %54, [1, 0, 2] : vector<8x4x8xbf16> -> vector<4x8x8xbf16>
    "tpu.trace_start"() <{level = 10 : i32, message = "hqd,hkd->hqk"}> : () -> ()
    %cst_26 = arith.constant dense<0.000000e+00> : vector<4x8x8xf32>
    %56 = tpu.matmul %49, %52, %cst_26 {dimension_numbers = #tpu.dot_dimension_numbers<[2], [2], [1], [1], [0, 0, 0, 1, 1, 1], [0], [0]>} : vector<4x8x8xbf16>, vector<4x8x8xbf16>, vector<4x8x8xf32> -> vector<4x8x8xf32>
    "tpu.trace_stop"() : () -> ()
    %57 = tpu.iota {dimensions = array<i32: 0>} : vector<8x8xi32>
    %58 = tpu.iota {dimensions = array<i32: 1>} : vector<8x8xi32>
    %59 = arith.cmpi sle, %58, %57 : vector<8x8xi32>
    %cst_27 = arith.constant 0.000000e+00 : f32
    %cst_28 = arith.constant -1.000000e+30 : f32
    %60 = vector.broadcast %cst_27 : f32 to vector<8x8xf32>
    %61 = vector.broadcast %cst_28 : f32 to vector<8x8xf32>
    %62 = arith.select %59, %60, %61 : vector<8x8xi1>, vector<8x8xf32>
    %63 = vector.shape_cast %62 : vector<8x8xf32> to vector<1x8x8xf32>
    %64 = vector.broadcast %63 : vector<1x8x8xf32> to vector<4x8x8xf32>
    %65 = arith.addf %56, %64 : vector<4x8x8xf32>
    %cst_29 = arith.constant dense<0xFF800000> : vector<4x8xf32>
    %66 = vector.multi_reduction <maximumf>, %65, %cst_29 [2] : vector<4x8x8xf32> to vector<4x8xf32>
    %67 = vector.shape_cast %66 : vector<4x8xf32> to vector<4x8x1xf32>
    %68 = vector.broadcast %67 : vector<4x8x1xf32> to vector<4x8x8xf32>
    %69 = arith.subf %65, %68 : vector<4x8x8xf32>
    %70 = math.exp %69 : vector<4x8x8xf32>
    %cst_30 = arith.constant dense<0.000000e+00> : vector<4x8xf32>
    %71 = vector.multi_reduction <add>, %70, %cst_30 [2] : vector<4x8x8xf32> to vector<4x8xf32>
    %72 = vector.shape_cast %71 : vector<4x8xf32> to vector<4x8x1xf32>
    %73 = vector.broadcast %72 : vector<4x8x1xf32> to vector<4x8x8xf32>
    %74 = arith.divf %70, %73 : vector<4x8x8xf32>
    %75 = arith.truncf %74 : vector<4x8x8xf32> to vector<4x8x8xbf16>
    "tpu.trace_start"() <{level = 10 : i32, message = "hqk,hkd->hqd"}> : () -> ()
    %cst_31 = arith.constant dense<0.000000e+00> : vector<4x8x8xf32>
    %76 = tpu.matmul %75, %55, %cst_31 {dimension_numbers = #tpu.dot_dimension_numbers<[2], [1], [1], [2], [0, 0, 0, 1, 1, 2], [0], [0]>} : vector<4x8x8xbf16>, vector<4x8x8xbf16>, vector<4x8x8xf32> -> vector<4x8x8xf32>
    "tpu.trace_stop"() : () -> ()
    %77 = tpu.transpose %76, [1, 0, 2] : vector<4x8x8xf32> -> vector<8x4x8xf32>
    %78 = vector.shape_cast %77 : vector<8x4x8xf32> to vector<8x32xf32>
    %79 = arith.truncf %78 : vector<8x32xf32> to vector<8x32xbf16>
    %cst_32 = arith.constant dense<0.000000e+00> : vector<8x32xf32>
    %80 = tpu.matmul %79, %35, %cst_32 {dimension_numbers = #tpu.dot_dimension_numbers<[1], [0], [0], [1], [0, 0, 1, 1], [], []>} : vector<8x32xbf16>, vector<32x32xbf16>, vector<8x32xf32> -> vector<8x32xf32>
    %81 = vector.broadcast %37 : vector<1x32xf32> to vector<8x32xf32>
    %82 = arith.addf %80, %81 : vector<8x32xf32>
    %83 = arith.addf %3, %82 : vector<8x32xf32>
    %c0_33 = arith.constant 0 : index
    %c0_34 = arith.constant 0 : index
    %c0_35 = arith.constant 0 : index
    %84 = vector.load %arg10[%c0_33, %c0_34, %c0_35] : memref<1x1x32xf32, #tpu.memory_space<vmem>>, vector<1x1x32xf32>
    %85 = vector.shape_cast %84 : vector<1x1x32xf32> to vector<1x32xf32>
    %c0_36 = arith.constant 0 : index
    %c0_37 = arith.constant 0 : index
    %c0_38 = arith.constant 0 : index
    %86 = vector.load %arg11[%c0_36, %c0_37, %c0_38] : memref<1x1x32xf32, #tpu.memory_space<vmem>>, vector<1x1x32xf32>
    %87 = vector.shape_cast %86 : vector<1x1x32xf32> to vector<1x32xf32>
    %cst_39 = arith.constant dense<0.000000e+00> : vector<8xf32>
    %88 = vector.multi_reduction <add>, %83, %cst_39 [1] : vector<8x32xf32> to vector<8xf32>
    %89 = vector.shape_cast %88 : vector<8xf32> to vector<8x1xf32>
    %cst_40 = arith.constant 3.200000e+01 : f32
    %90 = vector.broadcast %cst_40 : f32 to vector<8x1xf32>
    %91 = arith.divf %89, %90 : vector<8x1xf32>
    %92 = vector.broadcast %91 : vector<8x1xf32> to vector<8x32xf32>
    %93 = arith.subf %83, %92 : vector<8x32xf32>
    %94 = arith.mulf %93, %93 : vector<8x32xf32>
    %cst_41 = arith.constant dense<0.000000e+00> : vector<8xf32>
    %95 = vector.multi_reduction <add>, %94, %cst_41 [1] : vector<8x32xf32> to vector<8xf32>
    %96 = vector.shape_cast %95 : vector<8xf32> to vector<8x1xf32>
    %cst_42 = arith.constant 3.200000e+01 : f32
    %97 = vector.broadcast %cst_42 : f32 to vector<8x1xf32>
    %98 = arith.divf %96, %97 : vector<8x1xf32>
    %99 = vector.broadcast %91 : vector<8x1xf32> to vector<8x32xf32>
    %100 = arith.subf %83, %99 : vector<8x32xf32>
    %cst_43 = arith.constant 9.99999974E-6 : f32
    %101 = vector.broadcast %cst_43 : f32 to vector<8x1xf32>
    %102 = arith.addf %98, %101 : vector<8x1xf32>
    %103 = math.rsqrt %102 : vector<8x1xf32>
    %104 = vector.broadcast %103 : vector<8x1xf32> to vector<8x32xf32>
    %105 = arith.mulf %100, %104 : vector<8x32xf32>
    %106 = vector.broadcast %85 : vector<1x32xf32> to vector<8x32xf32>
    %107 = arith.mulf %105, %106 : vector<8x32xf32>
    %108 = vector.broadcast %87 : vector<1x32xf32> to vector<8x32xf32>
    %109 = arith.addf %107, %108 : vector<8x32xf32>
    %c0_44 = arith.constant 0 : index
    %c0_45 = arith.constant 0 : index
    %c0_46 = arith.constant 0 : index
    %110 = vector.load %arg3[%c0_44, %c0_45, %c0_46] : memref<1x8x32xf32, #tpu.memory_space<vmem>>, vector<1x8x32xf32>
    %111 = vector.shape_cast %110 : vector<1x8x32xf32> to vector<8x32xf32>
    %c0_47 = arith.constant 0 : index
    %c0_48 = arith.constant 0 : index
    %c0_49 = arith.constant 0 : index
    %112 = vector.load %arg12[%c0_47, %c0_48, %c0_49] : memref<1x32x96xbf16, #tpu.memory_space<vmem>>, vector<1x32x96xbf16>
    %113 = vector.shape_cast %112 : vector<1x32x96xbf16> to vector<32x96xbf16>
    %c0_50 = arith.constant 0 : index
    %c0_51 = arith.constant 0 : index
    %c0_52 = arith.constant 0 : index
    %114 = vector.load %arg13[%c0_50, %c0_51, %c0_52] : memref<1x1x96xf32, #tpu.memory_space<vmem>>, vector<1x1x96xf32>
    %115 = vector.shape_cast %114 : vector<1x1x96xf32> to vector<1x96xf32>
    %c0_53 = arith.constant 0 : index
    %c0_54 = arith.constant 0 : index
    %c0_55 = arith.constant 0 : index
    %116 = vector.load %arg14[%c0_53, %c0_54, %c0_55] : memref<1x32x32xbf16, #tpu.memory_space<vmem>>, vector<1x32x32xbf16>
    %117 = vector.shape_cast %116 : vector<1x32x32xbf16> to vector<32x32xbf16>
    %c0_56 = arith.constant 0 : index
    %c0_57 = arith.constant 0 : index
    %c0_58 = arith.constant 0 : index
    %118 = vector.load %arg15[%c0_56, %c0_57, %c0_58] : memref<1x1x32xf32, #tpu.memory_space<vmem>>, vector<1x1x32xf32>
    %119 = vector.shape_cast %118 : vector<1x1x32xf32> to vector<1x32xf32>
    %120 = arith.truncf %109 : vector<8x32xf32> to vector<8x32xbf16>
    %121 = vector.extract_strided_slice %113 {offsets = [0, 0], sizes = [32, 32], strides = [1, 1]} : vector<32x96xbf16> to vector<32x32xbf16>
    %cst_59 = arith.constant dense<0.000000e+00> : vector<8x32xf32>
    %122 = tpu.matmul %120, %121, %cst_59 {dimension_numbers = #tpu.dot_dimension_numbers<[1], [0], [0], [1], [0, 0, 1, 1], [], []>} : vector<8x32xbf16>, vector<32x32xbf16>, vector<8x32xf32> -> vector<8x32xf32>
    %123 = vector.extract_strided_slice %115 {offsets = [0, 0], sizes = [1, 32], strides = [1, 1]} : vector<1x96xf32> to vector<1x32xf32>
    %124 = vector.broadcast %123 : vector<1x32xf32> to vector<8x32xf32>
    %125 = arith.addf %122, %124 : vector<8x32xf32>
    %126 = arith.truncf %111 : vector<8x32xf32> to vector<8x32xbf16>
    %127 = vector.extract_strided_slice %113 {offsets = [0, 32], sizes = [32, 64], strides = [1, 1]} : vector<32x96xbf16> to vector<32x64xbf16>
    %cst_60 = arith.constant dense<0.000000e+00> : vector<8x64xf32>
    %128 = tpu.matmul %126, %127, %cst_60 {dimension_numbers = #tpu.dot_dimension_numbers<[1], [0], [0], [1], [0, 0, 1, 1], [], []>} : vector<8x32xbf16>, vector<32x64xbf16>, vector<8x64xf32> -> vector<8x64xf32>
    %129 = vector.extract_strided_slice %115 {offsets = [0, 32], sizes = [1, 64], strides = [1, 1]} : vector<1x96xf32> to vector<1x64xf32>
    %130 = vector.broadcast %129 : vector<1x64xf32> to vector<8x64xf32>
    %131 = arith.addf %128, %130 : vector<8x64xf32>
    %132 = vector.extract_strided_slice %131 {offsets = [0, 0], sizes = [8, 32], strides = [1, 1]} : vector<8x64xf32> to vector<8x32xf32>
    %133 = vector.extract_strided_slice %131 {offsets = [0, 32], sizes = [8, 32], strides = [1, 1]} : vector<8x64xf32> to vector<8x32xf32>
    %cst_61 = arith.constant 0.353553385 : f32
    %134 = vector.broadcast %cst_61 : f32 to vector<8x32xf32>
    %135 = arith.mulf %125, %134 : vector<8x32xf32>
    %136 = arith.truncf %135 : vector<8x32xf32> to vector<8x32xbf16>
    %137 = vector.shape_cast %136 : vector<8x32xbf16> to vector<8x4x8xbf16>
    %138 = tpu.transpose %137, [1, 0, 2] : vector<8x4x8xbf16> -> vector<4x8x8xbf16>
    %139 = arith.truncf %132 : vector<8x32xf32> to vector<8x32xbf16>
    %140 = vector.shape_cast %139 : vector<8x32xbf16> to vector<8x4x8xbf16>
    %141 = tpu.transpose %140, [1, 0, 2] : vector<8x4x8xbf16> -> vector<4x8x8xbf16>
    %142 = arith.truncf %133 : vector<8x32xf32> to vector<8x32xbf16>
    %143 = vector.shape_cast %142 : vector<8x32xbf16> to vector<8x4x8xbf16>
    %144 = tpu.transpose %143, [1, 0, 2] : vector<8x4x8xbf16> -> vector<4x8x8xbf16>
    "tpu.trace_start"() <{level = 10 : i32, message = "hqd,hkd->hqk"}> : () -> ()
    %cst_62 = arith.constant dense<0.000000e+00> : vector<4x8x8xf32>
    %145 = tpu.matmul %138, %141, %cst_62 {dimension_numbers = #tpu.dot_dimension_numbers<[2], [2], [1], [1], [0, 0, 0, 1, 1, 1], [0], [0]>} : vector<4x8x8xbf16>, vector<4x8x8xbf16>, vector<4x8x8xf32> -> vector<4x8x8xf32>
    "tpu.trace_stop"() : () -> ()
    %cst_63 = arith.constant dense<0xFF800000> : vector<4x8xf32>
    %146 = vector.multi_reduction <maximumf>, %145, %cst_63 [2] : vector<4x8x8xf32> to vector<4x8xf32>
    %147 = vector.shape_cast %146 : vector<4x8xf32> to vector<4x8x1xf32>
    %148 = vector.broadcast %147 : vector<4x8x1xf32> to vector<4x8x8xf32>
    %149 = arith.subf %145, %148 : vector<4x8x8xf32>
    %150 = math.exp %149 : vector<4x8x8xf32>
    %cst_64 = arith.constant dense<0.000000e+00> : vector<4x8xf32>
    %151 = vector.multi_reduction <add>, %150, %cst_64 [2] : vector<4x8x8xf32> to vector<4x8xf32>
    %152 = vector.shape_cast %151 : vector<4x8xf32> to vector<4x8x1xf32>
    %153 = vector.broadcast %152 : vector<4x8x1xf32> to vector<4x8x8xf32>
    %154 = arith.divf %150, %153 : vector<4x8x8xf32>
    %155 = arith.truncf %154 : vector<4x8x8xf32> to vector<4x8x8xbf16>
    "tpu.trace_start"() <{level = 10 : i32, message = "hqk,hkd->hqd"}> : () -> ()
    %cst_65 = arith.constant dense<0.000000e+00> : vector<4x8x8xf32>
    %156 = tpu.matmul %155, %144, %cst_65 {dimension_numbers = #tpu.dot_dimension_numbers<[2], [1], [1], [2], [0, 0, 0, 1, 1, 2], [0], [0]>} : vector<4x8x8xbf16>, vector<4x8x8xbf16>, vector<4x8x8xf32> -> vector<4x8x8xf32>
    "tpu.trace_stop"() : () -> ()
    %157 = tpu.transpose %156, [1, 0, 2] : vector<4x8x8xf32> -> vector<8x4x8xf32>
    %158 = vector.shape_cast %157 : vector<8x4x8xf32> to vector<8x32xf32>
    %159 = arith.truncf %158 : vector<8x32xf32> to vector<8x32xbf16>
    %cst_66 = arith.constant dense<0.000000e+00> : vector<8x32xf32>
    %160 = tpu.matmul %159, %117, %cst_66 {dimension_numbers = #tpu.dot_dimension_numbers<[1], [0], [0], [1], [0, 0, 1, 1], [], []>} : vector<8x32xbf16>, vector<32x32xbf16>, vector<8x32xf32> -> vector<8x32xf32>
    %161 = vector.broadcast %119 : vector<1x32xf32> to vector<8x32xf32>
    %162 = arith.addf %160, %161 : vector<8x32xf32>
    %163 = arith.addf %83, %162 : vector<8x32xf32>
    %c0_67 = arith.constant 0 : index
    %c0_68 = arith.constant 0 : index
    %c0_69 = arith.constant 0 : index
    %164 = vector.load %arg16[%c0_67, %c0_68, %c0_69] : memref<1x1x32xf32, #tpu.memory_space<vmem>>, vector<1x1x32xf32>
    %165 = vector.shape_cast %164 : vector<1x1x32xf32> to vector<1x32xf32>
    %c0_70 = arith.constant 0 : index
    %c0_71 = arith.constant 0 : index
    %c0_72 = arith.constant 0 : index
    %166 = vector.load %arg17[%c0_70, %c0_71, %c0_72] : memref<1x1x32xf32, #tpu.memory_space<vmem>>, vector<1x1x32xf32>
    %167 = vector.shape_cast %166 : vector<1x1x32xf32> to vector<1x32xf32>
    %cst_73 = arith.constant dense<0.000000e+00> : vector<8xf32>
    %168 = vector.multi_reduction <add>, %163, %cst_73 [1] : vector<8x32xf32> to vector<8xf32>
    %169 = vector.shape_cast %168 : vector<8xf32> to vector<8x1xf32>
    %cst_74 = arith.constant 3.200000e+01 : f32
    %170 = vector.broadcast %cst_74 : f32 to vector<8x1xf32>
    %171 = arith.divf %169, %170 : vector<8x1xf32>
    %172 = vector.broadcast %171 : vector<8x1xf32> to vector<8x32xf32>
    %173 = arith.subf %163, %172 : vector<8x32xf32>
    %174 = arith.mulf %173, %173 : vector<8x32xf32>
    %cst_75 = arith.constant dense<0.000000e+00> : vector<8xf32>
    %175 = vector.multi_reduction <add>, %174, %cst_75 [1] : vector<8x32xf32> to vector<8xf32>
    %176 = vector.shape_cast %175 : vector<8xf32> to vector<8x1xf32>
    %cst_76 = arith.constant 3.200000e+01 : f32
    %177 = vector.broadcast %cst_76 : f32 to vector<8x1xf32>
    %178 = arith.divf %176, %177 : vector<8x1xf32>
    %179 = vector.broadcast %171 : vector<8x1xf32> to vector<8x32xf32>
    %180 = arith.subf %163, %179 : vector<8x32xf32>
    %cst_77 = arith.constant 9.99999974E-6 : f32
    %181 = vector.broadcast %cst_77 : f32 to vector<8x1xf32>
    %182 = arith.addf %178, %181 : vector<8x1xf32>
    %183 = math.rsqrt %182 : vector<8x1xf32>
    %184 = vector.broadcast %183 : vector<8x1xf32> to vector<8x32xf32>
    %185 = arith.mulf %180, %184 : vector<8x32xf32>
    %186 = vector.broadcast %165 : vector<1x32xf32> to vector<8x32xf32>
    %187 = arith.mulf %185, %186 : vector<8x32xf32>
    %188 = vector.broadcast %167 : vector<1x32xf32> to vector<8x32xf32>
    %189 = arith.addf %187, %188 : vector<8x32xf32>
    %190 = arith.truncf %189 : vector<8x32xf32> to vector<8x32xbf16>
    %c0_78 = arith.constant 0 : index
    %c0_79 = arith.constant 0 : index
    %c0_80 = arith.constant 0 : index
    %191 = vector.load %arg18[%c0_78, %c0_79, %c0_80] : memref<1x32x64xbf16, #tpu.memory_space<vmem>>, vector<1x32x64xbf16>
    %192 = vector.shape_cast %191 : vector<1x32x64xbf16> to vector<32x64xbf16>
    %cst_81 = arith.constant dense<0.000000e+00> : vector<8x64xf32>
    %193 = tpu.matmul %190, %192, %cst_81 {dimension_numbers = #tpu.dot_dimension_numbers<[1], [0], [0], [1], [0, 0, 1, 1], [], []>} : vector<8x32xbf16>, vector<32x64xbf16>, vector<8x64xf32> -> vector<8x64xf32>
    %c0_82 = arith.constant 0 : index
    %c0_83 = arith.constant 0 : index
    %c0_84 = arith.constant 0 : index
    %194 = vector.load %arg19[%c0_82, %c0_83, %c0_84] : memref<1x1x64xf32, #tpu.memory_space<vmem>>, vector<1x1x64xf32>
    %195 = vector.shape_cast %194 : vector<1x1x64xf32> to vector<1x64xf32>
    %196 = vector.broadcast %195 : vector<1x64xf32> to vector<8x64xf32>
    %197 = arith.addf %193, %196 : vector<8x64xf32>
    %cst_85 = arith.constant 0.000000e+00 : f32
    %198 = vector.broadcast %cst_85 : f32 to vector<8x64xf32>
    %199 = arith.maximumf %197, %198 : vector<8x64xf32>
    %200 = arith.truncf %199 : vector<8x64xf32> to vector<8x64xbf16>
    %c0_86 = arith.constant 0 : index
    %c0_87 = arith.constant 0 : index
    %c0_88 = arith.constant 0 : index
    %201 = vector.load %arg20[%c0_86, %c0_87, %c0_88] : memref<1x64x32xbf16, #tpu.memory_space<vmem>>, vector<1x64x32xbf16>
    %202 = vector.shape_cast %201 : vector<1x64x32xbf16> to vector<64x32xbf16>
    %cst_89 = arith.constant dense<0.000000e+00> : vector<8x32xf32>
    %203 = tpu.matmul %200, %202, %cst_89 {dimension_numbers = #tpu.dot_dimension_numbers<[1], [0], [0], [1], [0, 0, 1, 1], [], []>} : vector<8x64xbf16>, vector<64x32xbf16>, vector<8x32xf32> -> vector<8x32xf32>
    %204 = arith.addf %163, %203 : vector<8x32xf32>
    %c0_90 = arith.constant 0 : index
    %c0_91 = arith.constant 0 : index
    %c0_92 = arith.constant 0 : index
    %205 = vector.load %arg21[%c0_90, %c0_91, %c0_92] : memref<1x1x32xf32, #tpu.memory_space<vmem>>, vector<1x1x32xf32>
    %206 = vector.shape_cast %205 : vector<1x1x32xf32> to vector<1x32xf32>
    %207 = vector.broadcast %206 : vector<1x32xf32> to vector<8x32xf32>
    %208 = arith.addf %204, %207 : vector<8x32xf32>
    %c0_93 = arith.constant 0 : index
    %c0_94 = arith.constant 0 : index
    %209 = vector.load %arg28[%c0_93, %c0_94] : memref<8x32xf32, #tpu.memory_space<vmem>>, vector<8x32xf32>
    tpu.vector_store %arg28[%c0_93, %c0_94], %208 {strides = array<i32>} : memref<8x32xf32, #tpu.memory_space<vmem>>, vector<8x32xf32>,
    %c1_i32 = arith.constant 1 : i32
    %210 = arith.cmpi eq, %arg1, %c1_i32 : i32
    %211 = arith.extui %210 : i1 to i32
    %c0_i32_95 = arith.constant 0 : i32
    %212 = arith.cmpi ne, %211, %c0_i32_95 : i32
    scf.if %212 {
      %c0_96 = arith.constant 0 : index
      %c0_97 = arith.constant 0 : index
      %213 = vector.load %arg22[%c0_96, %c0_97] : memref<1x32xf32, #tpu.memory_space<vmem>>, vector<1x32xf32>
      %c0_98 = arith.constant 0 : index
      %c0_99 = arith.constant 0 : index
      %214 = vector.load %arg23[%c0_98, %c0_99] : memref<1x32xf32, #tpu.memory_space<vmem>>, vector<1x32xf32>
      %cst_100 = arith.constant dense<0.000000e+00> : vector<8xf32>
      %215 = vector.multi_reduction <add>, %208, %cst_100 [1] : vector<8x32xf32> to vector<8xf32>
      %216 = vector.shape_cast %215 : vector<8xf32> to vector<8x1xf32>
      %cst_101 = arith.constant 3.200000e+01 : f32
      %217 = vector.broadcast %cst_101 : f32 to vector<8x1xf32>
      %218 = arith.divf %216, %217 : vector<8x1xf32>
      %219 = vector.broadcast %218 : vector<8x1xf32> to vector<8x32xf32>
      %220 = arith.subf %208, %219 : vector<8x32xf32>
      %221 = arith.mulf %220, %220 : vector<8x32xf32>
      %cst_102 = arith.constant dense<0.000000e+00> : vector<8xf32>
      %222 = vector.multi_reduction <add>, %221, %cst_102 [1] : vector<8x32xf32> to vector<8xf32>
      %223 = vector.shape_cast %222 : vector<8xf32> to vector<8x1xf32>
      %cst_103 = arith.constant 3.200000e+01 : f32
      %224 = vector.broadcast %cst_103 : f32 to vector<8x1xf32>
      %225 = arith.divf %223, %224 : vector<8x1xf32>
      %226 = vector.broadcast %218 : vector<8x1xf32> to vector<8x32xf32>
      %227 = arith.subf %208, %226 : vector<8x32xf32>
      %cst_104 = arith.constant 9.99999974E-6 : f32
      %228 = vector.broadcast %cst_104 : f32 to vector<8x1xf32>
      %229 = arith.addf %225, %228 : vector<8x1xf32>
      %230 = math.rsqrt %229 : vector<8x1xf32>
      %231 = vector.broadcast %230 : vector<8x1xf32> to vector<8x32xf32>
      %232 = arith.mulf %227, %231 : vector<8x32xf32>
      %233 = vector.broadcast %213 : vector<1x32xf32> to vector<8x32xf32>
      %234 = arith.mulf %232, %233 : vector<8x32xf32>
      %235 = vector.broadcast %214 : vector<1x32xf32> to vector<8x32xf32>
      %236 = arith.addf %234, %235 : vector<8x32xf32>
      %237 = arith.truncf %236 : vector<8x32xf32> to vector<8x32xbf16>
      %c0_105 = arith.constant 0 : index
      %c0_106 = arith.constant 0 : index
      %238 = vector.load %arg24[%c0_105, %c0_106] : memref<32x128xbf16, #tpu.memory_space<vmem>>, vector<32x128xbf16>
      %cst_107 = arith.constant dense<0.000000e+00> : vector<8x128xf32>
      %239 = tpu.matmul %237, %238, %cst_107 {dimension_numbers = #tpu.dot_dimension_numbers<[1], [0], [0], [1], [0, 0, 1, 1], [], []>} : vector<8x32xbf16>, vector<32x128xbf16>, vector<8x128xf32> -> vector<8x128xf32>
      %c0_108 = arith.constant 0 : index
      %c0_109 = arith.constant 0 : index
      %240 = vector.load %arg25[%c0_108, %c0_109] : memref<1x128xf32, #tpu.memory_space<vmem>>, vector<1x128xf32>
      %241 = vector.broadcast %240 : vector<1x128xf32> to vector<8x128xf32>
      %242 = arith.addf %239, %241 : vector<8x128xf32>
      %c0_110 = arith.constant 0 : index
      %c0_111 = arith.constant 0 : index
      %c0_112 = arith.constant 0 : index
      %243 = vector.load %arg26[%c0_110, %c0_111, %c0_112] : memref<1x8x128xf32, #tpu.memory_space<vmem>>, vector<1x8x128xf32>
      %244 = vector.shape_cast %243 : vector<1x8x128xf32> to vector<8x128xf32>
      %245 = vector.shape_cast %242 : vector<8x128xf32> to vector<1x8x128xf32>
      tpu.vector_store %arg26[%c0_110, %c0_111, %c0_112], %245 {strides = array<i32>} : memref<1x8x128xf32, #tpu.memory_space<vmem>>, vector<1x8x128xf32>,
      %cst_113 = arith.constant dense<0xFF800000> : vector<8xf32>
      %246 = vector.multi_reduction <maximumf>, %242, %cst_113 [1] : vector<8x128xf32> to vector<8xf32>
      %247 = vector.shape_cast %246 : vector<8xf32> to vector<8x1xf32>
      %248 = vector.broadcast %247 : vector<8x1xf32> to vector<8x128xf32>
      %249 = arith.subf %242, %248 : vector<8x128xf32>
      %250 = math.exp %249 : vector<8x128xf32>
      %cst_114 = arith.constant dense<0.000000e+00> : vector<8xf32>
      %251 = vector.multi_reduction <add>, %250, %cst_114 [1] : vector<8x128xf32> to vector<8xf32>
      %252 = vector.shape_cast %251 : vector<8xf32> to vector<8x1xf32>
      %253 = vector.broadcast %252 : vector<8x1xf32> to vector<8x128xf32>
      %254 = arith.divf %250, %253 : vector<8x128xf32>
      %c0_115 = arith.constant 0 : index
      %c0_116 = arith.constant 0 : index
      %c0_117 = arith.constant 0 : index
      %255 = vector.load %arg27[%c0_115, %c0_116, %c0_117] : memref<1x8x128xf32, #tpu.memory_space<vmem>>, vector<1x8x128xf32>
      %256 = vector.shape_cast %255 : vector<1x8x128xf32> to vector<8x128xf32>
      %257 = vector.shape_cast %254 : vector<8x128xf32> to vector<1x8x128xf32>
      tpu.vector_store %arg27[%c0_115, %c0_116, %c0_117], %257 {strides = array<i32>} : memref<1x8x128xf32, #tpu.memory_space<vmem>>, vector<1x8x128xf32>,
    } else {
    }
    return
  }
  func.func @transform_0(%arg0: i32, %arg1: i32) -> (i32, i32, i32) {
    %c0_i32 = arith.constant 0 : i32
    %c0_i32_0 = arith.constant 0 : i32
    %c0_i32_1 = arith.constant 0 : i32
    return %arg0, %c0_i32, %c0_i32_0 : i32, i32, i32
  }
  func.func @transform_1(%arg0: i32, %arg1: i32) -> (i32, i32, i32) {
    %c0_i32 = arith.constant 0 : i32
    %c0_i32_0 = arith.constant 0 : i32
    %c0_i32_1 = arith.constant 0 : i32
    return %arg0, %c0_i32, %c0_i32_0 : i32, i32, i32
  }
  func.func @transform_2(%arg0: i32, %arg1: i32) -> (i32, i32, i32) {
    %c0_i32 = arith.constant 0 : i32
    %c0_i32_0 = arith.constant 0 : i32
    %c0_i32_1 = arith.constant 0 : i32
    return %arg1, %c0_i32, %c0_i32_0 : i32, i32, i32
  }
  func.func @transform_3(%arg0: i32, %arg1: i32) -> (i32, i32, i32) {
    %c0_i32 = arith.constant 0 : i32
    %c0_i32_0 = arith.constant 0 : i32
    %c0_i32_1 = arith.constant 0 : i32
    return %arg1, %c0_i32, %c0_i32_0 : i32, i32, i32
  }
  func.func @transform_4(%arg0: i32, %arg1: i32) -> (i32, i32, i32) {
    %c0_i32 = arith.constant 0 : i32
    %c0_i32_0 = arith.constant 0 : i32
    %c0_i32_1 = arith.constant 0 : i32
    return %arg1, %c0_i32, %c0_i32_0 : i32, i32, i32
  }
  func.func @transform_5(%arg0: i32, %arg1: i32) -> (i32, i32, i32) {
    %c0_i32 = arith.constant 0 : i32
    %c0_i32_0 = arith.constant 0 : i32
    %c0_i32_1 = arith.constant 0 : i32
    return %arg1, %c0_i32, %c0_i32_0 : i32, i32, i32
  }
  func.func @transform_6(%arg0: i32, %arg1: i32) -> (i32, i32, i32) {
    %c0_i32 = arith.constant 0 : i32
    %c0_i32_0 = arith.constant 0 : i32
    %c0_i32_1 = arith.constant 0 : i32
    return %arg1, %c0_i32, %c0_i32_0 : i32, i32, i32
  }
  func.func @transform_7(%arg0: i32, %arg1: i32) -> (i32, i32, i32) {
    %c0_i32 = arith.constant 0 : i32
    %c0_i32_0 = arith.constant 0 : i32
    %c0_i32_1 = arith.constant 0 : i32
    return %arg1, %c0_i32, %c0_i32_0 : i32, i32, i32
  }
  func.func @transform_8(%arg0: i32, %arg1: i32) -> (i32, i32, i32) {
    %c0_i32 = arith.constant 0 : i32
    %c0_i32_0 = arith.constant 0 : i32
    %c0_i32_1 = arith.constant 0 : i32
    return %arg1, %c0_i32, %c0_i32_0 : i32, i32, i32
  }
  func.func @transform_9(%arg0: i32, %arg1: i32) -> (i32, i32, i32) {
    %c0_i32 = arith.constant 0 : i32
    %c0_i32_0 = arith.constant 0 : i32
    %c0_i32_1 = arith.constant 0 : i32
    return %arg1, %c0_i32, %c0_i32_0 : i32, i32, i32
  }
  func.func @transform_10(%arg0: i32, %arg1: i32) -> (i32, i32, i32) {
    %c0_i32 = arith.constant 0 : i32
    %c0_i32_0 = arith.constant 0 : i32
    %c0_i32_1 = arith.constant 0 : i32
    return %arg1, %c0_i32, %c0_i32_0 : i32, i32, i32
  }
  func.func @transform_11(%arg0: i32, %arg1: i32) -> (i32, i32, i32) {
    %c0_i32 = arith.constant 0 : i32
    %c0_i32_0 = arith.constant 0 : i32
    %c0_i32_1 = arith.constant 0 : i32
    return %arg1, %c0_i32, %c0_i32_0 : i32, i32, i32
  }
  func.func @transform_12(%arg0: i32, %arg1: i32) -> (i32, i32, i32) {
    %c0_i32 = arith.constant 0 : i32
    %c0_i32_0 = arith.constant 0 : i32
    %c0_i32_1 = arith.constant 0 : i32
    return %arg1, %c0_i32, %c0_i32_0 : i32, i32, i32
  }
  func.func @transform_13(%arg0: i32, %arg1: i32) -> (i32, i32, i32) {
    %c0_i32 = arith.constant 0 : i32
    %c0_i32_0 = arith.constant 0 : i32
    %c0_i32_1 = arith.constant 0 : i32
    return %arg1, %c0_i32, %c0_i32_0 : i32, i32, i32
  }
  func.func @transform_14(%arg0: i32, %arg1: i32) -> (i32, i32, i32) {
    %c0_i32 = arith.constant 0 : i32
    %c0_i32_0 = arith.constant 0 : i32
    %c0_i32_1 = arith.constant 0 : i32
    return %arg1, %c0_i32, %c0_i32_0 : i32, i32, i32
  }
  func.func @transform_15(%arg0: i32, %arg1: i32) -> (i32, i32, i32) {
    %c0_i32 = arith.constant 0 : i32
    %c0_i32_0 = arith.constant 0 : i32
    %c0_i32_1 = arith.constant 0 : i32
    return %arg1, %c0_i32, %c0_i32_0 : i32, i32, i32
  }
  func.func @transform_16(%arg0: i32, %arg1: i32) -> (i32, i32, i32) {
    %c0_i32 = arith.constant 0 : i32
    %c0_i32_0 = arith.constant 0 : i32
    %c0_i32_1 = arith.constant 0 : i32
    return %arg1, %c0_i32, %c0_i32_0 : i32, i32, i32
  }
  func.func @transform_17(%arg0: i32, %arg1: i32) -> (i32, i32, i32) {
    %c0_i32 = arith.constant 0 : i32
    %c0_i32_0 = arith.constant 0 : i32
    %c0_i32_1 = arith.constant 0 : i32
    return %arg1, %c0_i32, %c0_i32_0 : i32, i32, i32
  }
  func.func @transform_18(%arg0: i32, %arg1: i32) -> (i32, i32, i32) {
    %c0_i32 = arith.constant 0 : i32
    %c0_i32_0 = arith.constant 0 : i32
    %c0_i32_1 = arith.constant 0 : i32
    return %arg1, %c0_i32, %c0_i32_0 : i32, i32, i32
  }
  func.func @transform_19(%arg0: i32, %arg1: i32) -> (i32, i32, i32) {
    %c0_i32 = arith.constant 0 : i32
    %c0_i32_0 = arith.constant 0 : i32
    %c0_i32_1 = arith.constant 0 : i32
    return %arg1, %c0_i32, %c0_i32_0 : i32, i32, i32
  }
  func.func @transform_20(%arg0: i32, %arg1: i32) -> (i32, i32) {
    %c0_i32 = arith.constant 0 : i32
    %c0_i32_0 = arith.constant 0 : i32
    %c0_i32_1 = arith.constant 0 : i32
    return %c0_i32, %c0_i32_0 : i32, i32
  }
  func.func @transform_21(%arg0: i32, %arg1: i32) -> (i32, i32) {
    %c0_i32 = arith.constant 0 : i32
    %c0_i32_0 = arith.constant 0 : i32
    %c0_i32_1 = arith.constant 0 : i32
    return %c0_i32, %c0_i32_0 : i32, i32
  }
  func.func @transform_22(%arg0: i32, %arg1: i32) -> (i32, i32) {
    %c0_i32 = arith.constant 0 : i32
    %c0_i32_0 = arith.constant 0 : i32
    %c0_i32_1 = arith.constant 0 : i32
    return %c0_i32, %c0_i32_0 : i32, i32
  }
  func.func @transform_23(%arg0: i32, %arg1: i32) -> (i32, i32) {
    %c0_i32 = arith.constant 0 : i32
    %c0_i32_0 = arith.constant 0 : i32
    %c0_i32_1 = arith.constant 0 : i32
    return %c0_i32, %c0_i32_0 : i32, i32
  }
  func.func @transform_24(%arg0: i32, %arg1: i32) -> (i32, i32, i32) {
    %c0_i32 = arith.constant 0 : i32
    %c0_i32_0 = arith.constant 0 : i32
    %c0_i32_1 = arith.constant 0 : i32
    return %arg0, %c0_i32, %c0_i32_0 : i32, i32, i32
  }
  func.func @transform_25(%arg0: i32, %arg1: i32) -> (i32, i32, i32) {
    %c0_i32 = arith.constant 0 : i32
    %c0_i32_0 = arith.constant 0 : i32
    %c0_i32_1 = arith.constant 0 : i32
    return %arg0, %c0_i32, %c0_i32_0 : i32, i32, i32
  }
}

</mosaic_0001>

<bundles_post_ra>
// kernel: deconv_bipartite_transformer_conv_forward.2
= control target key start
LH: loop header
LB: loop body
LE: loop exit
PB: predicated region body
PF: predicated region fallthrough
CT: control target
= control target key end

     0   :  { %s2446_s27 = smov 0   ;;  %s2448_s28 = smov 0   ;;  %s2843_s0 = inlined_call_operand.vmem [shape: f32[2,10,16], index: 0, kind: input, shape index: {}]   ;;  %s2844_s1 = inlined_call_operand.vmem [shape: bf16[3,16,32], index: 1, kind: input, shape index: {}]   ;;  %s2845_s2 = inlined_call_operand.vmem [shape: f32[1,32], index: 2, kind: input, shape index: {}]   ;;  %s2846_s3 = inlined_call_operand.vmem [shape: f32[8,32], index: 3, kind: input, shape index: {}]   ;;  %s2847_s4 = inlined_call_operand.vmem [shape: f32[2,1,32], index: 4, kind: input, shape index: {}]   ;;  %s2848_s5 = inlined_call_operand.vmem [shape: f32[2,1,32], index: 5, kind: input, shape index: {}]   ;;  %s2849_s6 = inlined_call_operand.vmem [shape: bf16[2,32,96], index: 6, kind: input, shape index: {}]   ;;  %s2850_s7 = inlined_call_operand.vmem [shape: f32[2,1,96], index: 7, kind: input, shape index: {}]   ;;  %s2851_s8 = inlined_call_operand.vmem [shape: bf16[2,32,32], index: 8, kind: input, shape index: {}]   ;;  %s2852_s9 = inlined_call_operand.vmem [shape: f32[2,1,32], index: 9, kind: input, shape index: {}]   ;;  %s2853_s10 = inlined_call_operand.vmem [shape: f32[2,1,32], index: 10, kind: input, shape index: {}]   ;;  %s2854_s11 = inlined_call_operand.vmem [shape: f32[2,1,32], index: 11, kind: input, shape index: {}]   ;;  %s2855_s12 = inlined_call_operand.vmem [shape: bf16[2,32,64], index: 12, kind: input, shape index: {}]   ;;  %s2856_s13 = inlined_call_operand.vmem [shape: f32[2,1,64], index: 13, kind: input, shape index: {}]   ;;  %s2857_s14 = inlined_call_operand.vmem [shape: bf16[2,64,32], index: 14, kind: input, shape index: {}]   ;;  %s2858_s15 = inlined_call_operand.vmem [shape: f32[2,1,32], index: 15, kind: input, shape index: {}]   ;;  %s2859_s16 = inlined_call_operand.vmem [shape: f32[1,32], index: 16, kind: input, shape index: {}]   ;;  %s2860_s17 = inlined_call_operand.vmem [shape: f32[1,32], index: 17, kind: input, shape index: {}]   ;;  %s2861_s18 = inlined_call_operand.vmem [shape: f32[2,8,32], index: 18, kind: output, shape index: {}]  }
   0x1   :  { %2867 = sst [smem:[#allocation9_spill]] %s2843_s0  ;;  %s2450_s29 = smov 0  }
   0x2   :  { %2868 = sst [smem:[#allocation10_spill]] %s2844_s1  ;;  %s2452_s30 = smov 0  }
   0x3   :  { %2869 = sst [smem:[#allocation11_spill]] %s2845_s2  ;;  %s2454_s0 = smov 0  }
   0x4   :  { %2870 = sst [smem:[#allocation12_spill]] %s2846_s3 }
   0x5   :  { %2871 = sst [smem:[#allocation13_spill]] %s2849_s6 }
   0x6   :  { %2872 = sst [smem:[#allocation14_spill]] %s2851_s8 }
   0x7   :  { %2873 = sst [smem:[#allocation15_spill]] %s2853_s10 }
   0x8   :  { %2874 = sst [smem:[#allocation16_spill]] %s2857_s14 }
   0x9   :  { %2875 = sst [smem:[#allocation17_spill]] %s2859_s16 }
   0xa   :  { %2876 = sst [smem:[#allocation18_spill]] %s2860_s17 }
   0xb   :  { %2877 = sst [smem:[#allocation19_spill]] %s2861_s18 }
   0xc LB: > { %2878 = sst [smem:[#allocation3_spill]] %s2322_s27  ;;  %s37_s19 = sadd.s32 1, %s2330_s29  ;;  %s2338_s0 = sphi %s2454_s0, %s28_s0   ;;  %s2334_s30 = sphi %s2452_s30, %s2909_s30   ;;  %s2330_s29 = sphi %s2450_s29, %s2908_s29   ;;  %s2326_s28 = sphi %s2448_s28, %s2907_s28   ;;  %s2322_s27 = sphi %s2446_s27, %s2906_s27  }
   0xd   : > { %2879 = sst [smem:[#allocation4_spill]] %s2330_s29  ;;  %s40_s1 = sadd.s32 1, %s2334_s30 }
   0xe   : > { %2880 = sst [smem:[#allocation5_spill]] %s2334_s30  ;;  %p38_p0 = scmp.ge.s32.totalorder %s37_s19, 2 }
   0xf   : > { %2881 = sst [smem:[#allocation6_spill]] %s2338_s0  ;;  %p2108_p1 = scmp.ge.s32.totalorder %s2338_s0, 1 }
  0x10   : > { %p628_p2 = scmp.lt.s32.totalorder %s2338_s0, 5  ;;  %s2911_s19 = smov (%p38_p0, %s37_s19), 0 }
  0x11   : > { %2882 = sst [smem:[#allocation7_spill]] %s2911_s19  ;;  %s2913_s1 = smov (!%p38_p0, %s40_s1), %s2334_s30 }
  0x12   : > { %p629_p3 = pnand %p2108_p1, %p628_p2  ;;  %p42_p4 = scmp.ge.s32.totalorder %s2913_s1, 2 }
  0x13   : > { %p725_p5 = scmp.lt.s32.totalorder (!%p629_p3), %s2326_s28, 1  ;;  %p730_p6 = scmp.lt.s32.totalorder (!%p629_p3), %s2322_s27, 1 }
  0x14   : > { %s2915_s1 = smov (%p42_p4, %s2913_s1), 0  ;;  %632 = sbr.rel (%p629_p3) target bundleno = 2496 (0x9c0), region = 92 }
  0x15   : > { %2883 = sst [smem:[#allocation8_spill]] %s2915_s1 }
  0x16   : > { %s2884_s24 = sld [smem:[#allocation9_spill]] (!%p629_p3) }
  0x17   : > { %s2885_s6 = sld [smem:[#allocation13_spill]] (!%p629_p3) }
  0x18   : > { %s2886_s8 = sld [smem:[#allocation14_spill]] (!%p629_p3) }
  0x19   : > { %s2917_s28 = smov (!%p725_p5, %s2326_s28), 1  ;;  %s2888_s0 = sld [smem:[#allocation16_spill]] }
  0x1a   : > { %s2480_s20 = scalar_select %p730_p6, %s2322_s27, 1 }
  0x1b   : > { %s2195_s21 = sshll.u32 %s2917_s28, 4  ;;  %s2119_s22 = sshll.u32 %s2917_s28, 3 }
  0x1c   : > { %s729_s25 = scalar_lea.vmem %s2884_s24, %s2195_s21  ;;  %s2196_s17 = sshll.u32 %s2480_s20, 4 }
  0x1d   : > { %s2497_s27 = scalar_lea.vmem %s2885_s6, %s2196_s17  ;;  %s2523_s28 = scalar_lea.vmem %s2855_s12, %s2196_s17 }
  0x1e   : > { %s2506_s23 = scalar_lea.vmem %s2886_s8, %s2196_s17  ;;  %s2199_s8 = sshll.u32 %s2480_s20, 5 }
  0x1f   : > { %s773_s29 = scalar_lea.vmem %s2858_s15, %s2480_s20  ;;  %s2537_s10 = scalar_lea.vmem %s2888_s0, %s2199_s8 }
  0x20   : > { %s2889_s19 = sld [smem:[#allocation19_spill]] }
  0x21   : > { %s2890_s17 = sld [smem:[#allocation3_spill]] }
  0x26   : > { %s2542_s6 = scalar_lea.vmem %s2889_s19, %s2119_s22 }
  0x27   : > { %p2120_p7 = scmp.ne.s32.totalorder %s2890_s17, 0 }
  0x28   : > { %s2891_s21 = sld [smem:[#allocation10_spill]] (!%p2120_p7) }
  0x29   : > { %782 = sbr.rel (%p2120_p7) target bundleno = 192 (0xc0), region = 96  ;;  %s2892_s22 = sld [smem:[#allocation11_spill]] (!%p2120_p7) }
  0x2a   : > { %s2893_s30 = sld [smem:[#allocation12_spill]] (!%p2120_p7) }
  0x2e   : > { %v2200_v0 = vld [vmem:[%s2891_s21] sm:$0xff]  ;;  %v2202_v1 = vld [vmem:[%s2891_s21 + $0x10] sm:$0xff]  ;;  %v784_v3 = vld [vmem:[%s729_s25 + $0x8] sm:$0x3]  ;;  %vm800_vm0 = vcmask 130048   ;;  %vm880_vm1 = vcmask 261120  }
  0x2f   : > { %v783_v2 = vld [vmem:[%s729_s25] sm:$0xff]  ;;  %v2201_v5 = vld [vmem:[%s2891_s21 + $0x8] sm:$0xff]  ;;  %811 = vmatpush.bf16.msra.mxu0 %v2200_v0  ;;  %873 = vmatpush.bf16.msra.mxu2 %v2202_v1 }
  0x30   : > { %v791_v4 = vpack.c.bf16 %v783_v2, %v783_v2  ;;  %v818_v6 = vpack.c.bf16 %v784_v3, %v783_v2  ;;  %845 = vmatpush.bf16.msra.mxu1 %v2201_v5  ;;  %v2264_v12 = vld [vmem:[%s2892_s22] ss:$0 sm:$0xff] }
  0x31   : > { %v785_v13 = vld [vmem:[%s2893_s30] sm:$0xff] }
  0x32   : > { %v856_v7 = vrot.slane %v818_v6, 1  ;;  %v823_v8 = vshrl.u32 %v818_v6, 16  ;;  %v825_v9 = vshll.u32 %v818_v6, 16  ;;  %2125 = vmatmul.msk.bf16.vlgmr.msra.gmra.mxu0 %vm800_vm0, %v791_v4  ;;  %v790_v14 = vadd.f32 %v2264_v12, %v785_v13 }
  0x34   : > { %2139 = vmatmul.msk.bf16.vlgmr.msra.gmra.mxu2 %vm800_vm0, %v856_v7  ;;  %v827_v10 = vrot.slane %v825_v9, 1 }
  0x36   : > { %v828_v11 = vor.u32 %v827_v10, %v823_v8 }
  0x38   : > { %2132 = vmatmul.msk.bf16.vlgmr.msra.gmra.mxu1 %vm800_vm0, %v828_v11 }
  0xaf   : > { %v813_v15 = vpop.f32.mrf.mxu0 }
  0xb0   : > { %v817_v16 = vadd.f32 %v813_v15, %v790_v14 }
  0xb5   : > { %v847_v17 = vpop.f32.mrf.mxu1 }
  0xb6   : > { %v851_v18 = vadd.f32 %v847_v17, %v817_v16 }
  0xb7   : > { %v875_v19 = vpop.f32.mrf.mxu2  ;;  %v815_v21 = vpop.f32.mrf.mxu0 }
  0xb8   : > { %v879_v20 = vadd.f32 %v875_v19, %v851_v18 }
  0xba   : > { %881 = vst.msk [vmem:[#allocation2] sm:$0xff] %vm880_vm1, %v879_v20 }
  0xbd   : > { %v849_v22 = vpop.f32.mrf.mxu1 }
  0xbf   : > { %v877_v23 = vpop.f32.mrf.mxu2 }
  0xc0 PF: > { %vm885_vm2 = vcmask 261120   ;;  %v2340_v26 = vmov 32.0   ;;  %v2204_v38 = vld [vmem:[%s2497_s27 + $0x8] sm:$0xff]  ;;  %v2203_v39 = vld [vmem:[%s2497_s27] sm:$0xff]  ;;  %s2894_s27 = scalar_lea.vmem %s2847_s4, %s2480_s20  ;;  %s2895_s18 = scalar_lea.vmem %s2848_s5, %s2480_s20  ;;  %v2346_v5 = vmov 1983009808  }
  0xc1   : > { %v882_v24 = vld [vmem:[#allocation2] sm:$0xff]  ;;  %2273 = vrcp.f32 %v2340_v26  ;;  %958 = vmatpush.bf16.msra.mxu0 %v2204_v38  ;;  %s2896_s8 = scalar_lea.vmem %s2850_s7, %s2480_s20  ;;  %s2341_s0 = smov 104   ;;  %v988_v6 = vunpack.c.l.s4 %v2346_v5  ;;  %v2347_v13 = vmov 1934713408   ;;  %vm997_vm7 = vcmask 1047556  }
  0xc2   : > { %v886_v25 = vsel %vm885_vm2, %v882_v24, 0.0  ;;  %v2265_v49 = vld [vmem:[%s2894_s27] ss:$0 sm:$0xff]  ;;  %s2342_s14 = smov 120   ;;  %s2343_s19 = smov 96   ;;  %v1002_v14 = vunpack.c.l.s4 %v2347_v13  ;;  %vm1341_vm8 = vcmask 64512  }
  0xc3   : > { %887 = vadd.xlane.f32.xlu0 %v886_v25  ;;  %v2266_v52 = vld [vmem:[%s2895_s18] ss:$0 sm:$0xff]  ;;  %s2344_s22 = smov 112   ;;  %s2345_s25 = smov 64   ;;  %v2594_v11 = vunpack.c.0.s8 %v988_v6  ;;  %vm1521_vm9 = vcmask 1043456  }
  0xc4   : > { %v2267_v56 = vld [vmem:[%s2896_s8] ss:$0 sm:$0xff]  ;;  %v2598_v23 = vunpack.c.0.s8 %v1002_v14  ;;  %s2348_s24 = smov 16   ;;  %s2349_s30 = smov 24  }
  0xc5   : > { %959 = vmatpush.bf16.msra.mxu0 %v2203_v39  ;;  %s2350_s26 = smov 8   ;;  %s2897_s16 = scalar_lea.vmem %s2852_s9, %s2480_s20 }
  0xc6   : > { %s2898_s17 = sld [smem:[#allocation15_spill]]  ;;  %s2900_s8 = scalar_lea.vmem %s2854_s11, %s2480_s20 }
  0xc7   : > { %v2274_v27 = vpop.eup %2273 }
  0xc8   : > { %v890_v28 = vmul.f32 32.0, %v2274_v27  ;;  %vm894_vm3 = vweird.f32 %v2274_v27 }
  0xca   : > { %v891_v29 = vsub.f32 1.0, %v890_v28 }
  0xcc   : > { %v892_v30 = vmul.f32 %v2274_v27, %v891_v29  ;;  %s2899_s18 = scalar_lea.vmem %s2898_s17, %s2480_s20 }
  0xce   : > { %v893_v31 = vadd.f32 %v2274_v27, %v892_v30 }
  0xd0   : > { %v2561_v32 = vsel %vm894_vm3, %v2274_v27, %v893_v31 }
 0x136   : > { %v888_v33 = vpop.xlane.xlu0 %887 }
 0x137   : > { %v896_v34 = vmul.f32 %v2561_v32, %v888_v33 }
 0x139   : > { %v897_v35 = vsub.f32 %v882_v24, %v896_v34 }
 0x13b   : > { %v898_v36 = vmul.f32 %v897_v35, %v897_v35 }
 0x13d   : > { %v899_v37 = vsel %vm885_vm2, %v898_v36, 0.0 }
 0x13e   : > { %900 = vadd.xlane.f32.xlu0 %v899_v37 }
 0x1b1   : > { %v901_v40 = vpop.xlane.xlu0 %900 }
 0x1b2   : > { %v902_v41 = vmul.f32 %v901_v40, %v2561_v32 }
 0x1b4   : > { %v903_v42 = vadd.f32 1e-05, %v902_v41 }
 0x1b6   : > { %2275 = vrsqrt.f32 %v903_v42  ;;  %vm910_vm5 = vweird.f32 %v903_v42 }
 0x1bc   : > { %v2276_v43 = vpop.eup %2275 }
 0x1bd   : > { %v905_v44 = vmul.f32 %v2276_v43, %v903_v42  ;;  %vm911_vm4 = vweird.f32 %v2276_v43 }
 0x1be   : > { %vm912_vm6 = vmor %vm910_vm5, %vm911_vm4 }
 0x1bf   : > { %v906_v45 = vmul.f32 %v2276_v43, %v905_v44 }
 0x1c1   : > { %v907_v46 = vmul.f32 0.5, %v906_v45 }
 0x1c3   : > { %v908_v47 = vsub.f32 1.5, %v907_v46 }
 0x1c5   : > { %v909_v48 = vmul.f32 %v2276_v43, %v908_v47 }
 0x1c7   : > { %v913_v50 = vsel %vm912_vm6, %v2276_v43, %v909_v48 }
 0x1c8   : > { %v914_v51 = vmul.f32 %v913_v50, %v897_v35 }
 0x1ca   : > { %v918_v53 = vmul.f32 %v2265_v49, %v914_v51 }
 0x1cc   : > { %v922_v54 = vadd.f32 %v2266_v52, %v918_v53 }
 0x1ce   : > { %v933_v55 = vpack.c.bf16 %v922_v54, %v922_v54 }
 0x1d0   : > { %2148 = vmatmul.msk.bf16.vlgmr.msra.gmra.mxu0 %vm885_vm2, %v933_v55 }
 0x24d   : > { %v961_v57 = vpop.f32.mrf.mxu0 }
 0x24e   : > { %v962_v58 = vadd.f32 %v2267_v56, %v961_v57 }
 0x250   : > { %v1089_v59 = vpack.c.bf16 %v962_v58, %v962_v58  ;;  %v965_v61 = vmul.f32 0.35355338, %v962_v58 }
 0x252   : > { %1095 = vrot.lane.b32.xlu2 %v1089_v59, %s2341_s0  ;;  %1091 = vrot.lane.b32.xlu1 %v1089_v59, %s2342_s14  ;;  %v966_v62 = vpack.c.bf16 %v965_v61, %v965_v61 }
 0x254   : > { %v977_v22 = vshrl.u32 %v966_v62, 16 }
 0x255   : > { %v963_v60 = vpop.f32.mrf.mxu0 }
 0x25a   : > { %1097 = vrot.lane.b32.xlu2 %v1089_v59, %s2343_s19  ;;  %1093 = vrot.lane.b32.xlu1 %v1089_v59, %s2344_s22 }
 0x262   : > { %968 = vrot.lane.b32.xlu1 %v966_v62, %s2342_s14 }
 0x2ac   : > { %v2584_v63 = vpop.permute.xlu2 %1095 }
 0x2ad   : > { %1103 = vrot.lane.b32.xlu2 %v2584_v63, %s2343_s19 }
 0x2b4   : > { %v1098_v2 = vpop.permute.xlu2 %1097 }
 0x2b5   : > { %970 = vrot.lane.b32.xlu2 %v966_v62, %s2344_s22  ;;  %v1108_v8 = vshrl.u32 %v1098_v2, 16 }
 0x2c4   : > { %v2587_v0 = vpop.permute.xlu1 %1091 }
 0x2c5   : > { %1099 = vrot.lane.b32.xlu0 %v2587_v0, %s2343_s19 }
 0x2cc   : > { %v2590_v1 = vpop.permute.xlu1 %1093 }
 0x2cd   : > { %1219 = vrot.lane.b32.xlu0 %v1089_v59, %s2345_s25  ;;  %1101 = vrot.lane.b32.xlu1 %v2590_v1, %s2343_s19  ;;  %s2901_s19 = scalar_lea.vmem %s2856_s13, %s2480_s20 }
 0x2d4   : > { %v969_v3 = vpop.permute.xlu1 %968 }
 0x2d5   : > { %972 = vrot.lane.b32.xlu1 %v966_v62, %s2341_s0  ;;  %v978_v16 = vshrl.u32 %v969_v3, 16  ;;  %v976_v24 = vpack.i.b16 %v969_v3, %v966_v62 }
 0x2d7   : > { %v979_v28 = vpack.i.b16 %v978_v16, %v977_v22  ;;  %v990_v36 = vperm.slane %v976_v24, %v2594_v11 }
 0x2d9   : > { %v1017_v40 = vperm.slane %v979_v28, %v2594_v11  ;;  %v999_v53 = vrot.slane %v990_v36, 4 }
 0x2db   : > { %v1025_v57 = vrot.slane %v1017_v40, 4 }
 0x307   : > { %v1104_v10 = vpop.permute.xlu2 %1103 }
 0x308   : > { %v1115_v18 = vshrl.u32 %v1104_v10, 16 }
 0x30f   : > { %v971_v34 = vpop.permute.xlu2 %970 }
 0x310   : > { %v983_v45 = vshrl.u32 %v971_v34, 16 }
 0x337   : > { %v1100_v4 = vpop.permute.xlu0 %1099 }
 0x338   : > { %v1109_v7 = vshrl.u32 %v1100_v4, 16  ;;  %v1107_v9 = vpack.i.b16 %v1100_v4, %v1098_v2 }
 0x33a   : > { %v1110_v12 = vpack.i.b16 %v1109_v7, %v1108_v8  ;;  %v1121_v15 = vperm.slane %v1107_v9, %v2594_v11 }
 0x33c   : > { %v1147_v19 = vperm.slane %v1110_v12, %v2594_v11  ;;  %v1129_v25 = vrot.slane %v1121_v15, 4 }
 0x33e   : > { %v1155_v29 = vrot.slane %v1147_v19, 4 }
 0x33f   : > { %v1102_v17 = vpop.permute.xlu1 %1101 }
 0x340   : > { %v1113_v20 = vpack.i.b16 %v1104_v10, %v1102_v17  ;;  %v1114_v21 = vshrl.u32 %v1102_v17, 16 }
 0x342   : > { %v1116_v26 = vpack.i.b16 %v1115_v18, %v1114_v21  ;;  %v1126_v27 = vperm.slane %v1113_v20, %v2594_v11 }
 0x344   : > { %v1127_v30 = vrot.slane %v1126_v27, 4  ;;  %v1130_v31 = vsel %vm997_vm7, %v1126_v27, %v1129_v25  ;;  %v1152_v33 = vperm.slane %v1116_v26, %v2594_v11 }
 0x345   : > { %v1138_v35 = vperm.slane %v1130_v31, %v2598_v23 }
 0x346   : > { %v1128_v37 = vsel %vm997_vm7, %v1127_v30, %v1121_v15  ;;  %v1153_v38 = vrot.slane %v1152_v33, 4  ;;  %v1156_v39 = vsel %vm997_vm7, %v1152_v33, %v1155_v29 }
 0x347   : > { %v1134_v41 = vperm.slane %v1128_v37, %v2598_v23  ;;  %v1141_v42 = vrot.slane %v1138_v35, 4  ;;  %v1164_v43 = vperm.slane %v1156_v39, %v2598_v23  ;;  %v973_v44 = vpop.permute.xlu1 %972 }
 0x348   : > { %v1154_v46 = vsel %vm997_vm7, %v1153_v38, %v1147_v19  ;;  %v982_v47 = vpack.i.b16 %v973_v44, %v971_v34  ;;  %v984_v48 = vshrl.u32 %v973_v44, 16 }
 0x349   : > { %v1139_v49 = vrot.slane %v1134_v41, 4  ;;  %v1142_v50 = vsel %vm997_vm7, 0, %v1141_v42  ;;  %v1160_v51 = vperm.slane %v1154_v46, %v2598_v23  ;;  %v1167_v52 = vrot.slane %v1164_v43, 4 }
 0x34a   : > { %v1174_v54 = vrot.slane %v1142_v50, 4  ;;  %v985_v55 = vpack.i.b16 %v984_v48, %v983_v45  ;;  %v995_v56 = vperm.slane %v982_v47, %v2594_v11  ;;  %v1169_v6 = vsel %vm997_vm7, %v1141_v42, %v1134_v41 }
 0x34b   : > { %v1140_v58 = vsel %vm997_vm7, 0, %v1139_v49  ;;  %v1165_v59 = vrot.slane %v1160_v51, 4  ;;  %v1168_v60 = vsel %vm997_vm7, 0, %v1167_v52  ;;  %v1188_v16 = vsel %vm997_vm7, %v1167_v52, %v1160_v51 }
 0x34c   : > { %v1193_v61 = vrot.slane %v1168_v60, 4  ;;  %v996_v62 = vrot.slane %v995_v56, 4  ;;  %v1000_v2 = vsel %vm997_vm7, %v995_v56, %v999_v53  ;;  %v1022_v3 = vperm.slane %v985_v55, %v2594_v11 }
 0x34d   : > { %v1008_v4 = vperm.slane %v1000_v2, %v2598_v23  ;;  %v1166_v5 = vsel %vm997_vm7, 0, %v1165_v59  ;;  %v1175_v7 = vsel %vm997_vm7, %v1174_v54, %v1140_v58  ;;  %v1173_v18 = vperm.slane %v1169_v6, %v2594_v11 }
 0x34e   : > { %v998_v8 = vsel %vm997_vm7, %v996_v62, %v990_v36  ;;  %v1023_v9 = vrot.slane %v1022_v3, 4  ;;  %v1026_v10 = vsel %vm997_vm7, %v1022_v3, %v1025_v57  ;;  %v1179_v12 = vperm.slane %v1175_v7, %v2594_v11 }
 0x34f   : > { %v1004_v13 = vperm.slane %v998_v8, %v2598_v23  ;;  %v1011_v14 = vrot.slane %v1008_v4, 4  ;;  %v1034_v15 = vperm.slane %v1026_v10, %v2598_v23  ;;  %v1194_v20 = vsel %vm997_vm7, %v1193_v61, %v1166_v5 }
 0x350   : > { %v1024_v17 = vsel %vm997_vm7, %v1023_v9, %v1017_v40  ;;  %v1180_v19 = vrot.slane %v1179_v12, 4  ;;  %v1192_v28 = vperm.slane %v1188_v16, %v2594_v11  ;;  %v1198_v29 = vperm.slane %v1194_v20, %v2594_v11 }
 0x351   : > { %v1009_v21 = vrot.slane %v1004_v13, 4  ;;  %v1012_v22 = vsel %vm997_vm7, 0, %v1011_v14  ;;  %v1030_v24 = vperm.slane %v1024_v17, %v2598_v23  ;;  %v1037_v25 = vrot.slane %v1034_v15, 4 }
 0x352   : > { %v1044_v26 = vrot.slane %v1012_v22, 4  ;;  %v1181_v27 = vsel %vm997_vm7, %v1180_v19, %v1173_v18  ;;  %v1039_v35 = vsel %vm997_vm7, %v1011_v14, %v1004_v13  ;;  %v1199_v37 = vrot.slane %v1198_v29, 4 }
 0x353   : > { %v1010_v30 = vsel %vm997_vm7, 0, %v1009_v21  ;;  %v1035_v31 = vrot.slane %v1030_v24, 4  ;;  %v1038_v33 = vsel %vm997_vm7, 0, %v1037_v25  ;;  %v1185_v34 = vperm.slane %v1181_v27, %v2598_v23 }
 0x354   : > { %v1063_v36 = vrot.slane %v1038_v33, 4  ;;  %v1045_v38 = vsel %vm997_vm7, %v1044_v26, %v1010_v30  ;;  %v1200_v42 = vsel %vm997_vm7, %v1199_v37, %v1192_v28  ;;  %v1043_v45 = vperm.slane %v1039_v35, %v2594_v11 }
 0x355   : > { %v1036_v39 = vsel %vm997_vm7, 0, %v1035_v31  ;;  %v1186_v40 = vrot.slane %v1185_v34, 4  ;;  %v1049_v41 = vperm.slane %v1045_v38, %v2594_v11  ;;  %v1204_v44 = vperm.slane %v1200_v42, %v2598_v23 }
 0x356   : > { %v1064_v43 = vsel %vm997_vm7, %v1063_v36, %v1036_v39  ;;  %v1058_v47 = vsel %vm997_vm7, %v1037_v25, %v1030_v24  ;;  %v1210_v48 = vshrl.u32 %v1185_v34, 16  ;;  %v1220_v36 = vpop.permute.xlu0 %1219 }
 0x357   : > { %v1050_v46 = vrot.slane %v1049_v41, 4  ;;  %v1187_v49 = vsel %vm997_vm7, 0, %v1186_v40  ;;  %v1068_v50 = vperm.slane %v1064_v43, %v2594_v11  ;;  %v1209_v51 = vpack.i.b16 %v1204_v44, %v1185_v34 }
 0x358   : > { %v1211_v52 = vshrl.u32 %v1204_v44, 16  ;;  %v1205_v53 = vrot.slane %v1204_v44, 4  ;;  %v1062_v56 = vperm.slane %v1058_v47, %v2594_v11  ;;  %v1216_v62 = vshrl.u32 %v1187_v49, 16 }
 0x359   : > { %v1051_v54 = vsel %vm997_vm7, %v1050_v46, %v1043_v45  ;;  %v1069_v57 = vrot.slane %v1068_v50, 4  ;;  %v1346_v58 = vsel %vm1341_vm8, %v1209_v51, 0  ;;  %v1230_v51 = vshrl.u32 %v1220_v36, 16 }
 0x35a   : > { %v1055_v55 = vperm.slane %v1051_v54, %v2598_v23  ;;  %v1212_v59 = vpack.i.b16 %v1211_v52, %v1210_v48  ;;  %v1206_v60 = vsel %vm997_vm7, 0, %v1205_v53  ;;  %1355 = vmatpush.bf16.xpose.msra.mxu1 %v1346_v58 }
 0x35b   : > { %v1215_v61 = vpack.i.b16 %v1206_v60, %v1187_v49  ;;  %v1217_v2 = vshrl.u32 %v1206_v60, 16  ;;  %v1070_v3 = vsel %vm997_vm7, %v1069_v57, %v1062_v56 }
 0x35c   : > { %v1365_v4 = vsel %vm1341_vm8, %v1212_v59, 0  ;;  %v1074_v5 = vperm.slane %v1070_v3, %v2598_v23  ;;  %v1056_v6 = vrot.slane %v1055_v55, 4  ;;  %v1080_v9 = vshrl.u32 %v1055_v55, 16 }
 0x35d   : > { %1374 = vmatpush.bf16.xpose.msra.mxu2 %v1365_v4  ;;  %v1384_v7 = vsel %vm1341_vm8, %v1215_v61, 0  ;;  %v1218_v8 = vpack.i.b16 %v1217_v2, %v1216_v62 }
 0x35e   : > { %1393 = vmatpush.bf16.xpose.msra.mxu3 %v1384_v7  ;;  %v1079_v10 = vpack.i.b16 %v1074_v5, %v1055_v55  ;;  %v1081_v12 = vshrl.u32 %v1074_v5, 16  ;;  %v1057_v13 = vsel %vm997_vm7, 0, %v1056_v6  ;;  %v1075_v14 = vrot.slane %v1074_v5, 4 }
 0x35f   : > { %v1403_v15 = vsel %vm1341_vm8, %v1218_v8, 0  ;;  %v1086_v19 = vshrl.u32 %v1057_v13, 16 }
 0x360   : > { %1412 = vmatpush.bf16.xpose.msrb.mxu0 %v1403_v15  ;;  %v1082_v16 = vpack.i.b16 %v1081_v12, %v1080_v9  ;;  %v1076_v17 = vsel %vm997_vm7, 0, %v1075_v14 }
 0x361   : > { %v1085_v18 = vpack.i.b16 %v1076_v17, %v1057_v13  ;;  %v1087_v20 = vshrl.u32 %v1076_v17, 16  ;;  %2149 = vmatmul.msk.bf16.vlgmr.msra.gmra.mxu1 %vm1341_vm8, %v1079_v10 }
 0x363   : > { %v1088_v21 = vpack.i.b16 %v1087_v20, %v1086_v19 }
 0x364   : > { %2150 = vmatmul.msk.bf16.vlgmr.msra.gmra.mxu2 %vm1341_vm8, %v1082_v16 }
 0x365   : > { %2151 = vmatmul.msk.bf16.vlgmr.msra.gmra.mxu3 %vm1341_vm8, %v1085_v18 }
 0x367   : > { %2152 = vmatmul.msk.bf16.vlgmr.msrb.gmra.mxu0 %vm1341_vm8, %v1088_v21 }
 0x3de   : > { %v1357_v22 = vpop.f32.mrf.mxu1 }
 0x3df   : > { %v1418_v24 = vsel %vm1341_vm8, %v1357_v22, -inf }
 0x3e0   : > { %1419 = vmax.xlane.f32.xlu1 %v1418_v24 }
 0x3e4   : > { %v1414_v25 = vpop.f32.mrf.mxu0 }
 0x3e5   : > { %v1427_v26 = vsel %vm1341_vm8, %v1414_v25, -inf }
 0x3e6   : > { %1428 = vmax.xlane.f32.xlu2 %v1427_v26  ;;  %v1359_v27 = vpop.f32.mrf.mxu1 }
 0x3e7   : > { %v1376_v28 = vpop.f32.mrf.mxu2 }
 0x3e8   : > { %v1395_v29 = vpop.f32.mrf.mxu3  ;;  %v1421_v30 = vsel %vm1341_vm8, %v1376_v28, -inf }
 0x3e9   : > { %1422 = vmax.xlane.f32.xlu0 %v1421_v30  ;;  %v1424_v33 = vsel %vm1341_vm8, %v1395_v29, -inf }
 0x3ec   : > { %v1416_v31 = vpop.f32.mrf.mxu0 }
 0x3ee   : > { %1425 = vmax.xlane.f32.xlu2 %v1424_v33 }
 0x3ef   : > { %v1378_v34 = vpop.f32.mrf.mxu2 }
 0x3f0   : > { %v1397_v35 = vpop.f32.mrf.mxu3 }
 0x3f9   : > { %1223 = vrot.lane.b32.xlu1 %v2590_v1, %s2345_s25 }
 0x3fd   : > { %1225 = vrot.lane.b32.xlu0 %v2584_v63, %s2345_s25 }
 0x406   : > { %1221 = vrot.lane.b32.xlu2 %v2587_v0, %s2345_s25 }
 0x453   : > { %v1420_v37 = vpop.xlane.xlu1 %1419 }
 0x454   : > { %v1430_v38 = vsub.f32 %v1357_v22, %v1420_v37 }
 0x456   : > { %v1434_v39 = vmul.f32 1.442695, %v1430_v38 }
 0x458   : > { %2277 = vpow2.f32 %v1434_v39 }
 0x459   : > { %v1429_v40 = vpop.xlane.xlu2 %1428 }
 0x45a   : > { %v1433_v46 = vsub.f32 %v1414_v25, %v1429_v40 }
 0x45c   : > { %v1423_v41 = vpop.xlane.xlu0 %1422  ;;  %v1440_v48 = vmul.f32 1.442695, %v1433_v46 }
 0x45d   : > { %v1431_v42 = vsub.f32 %v1376_v28, %v1423_v41 }
 0x45e   : > { %v2676_v43 = vpop.eup %2277 }
 0x45f   : > { %v1436_v44 = vmul.f32 1.442695, %v1431_v42  ;;  %v1442_v1 = vsel %vm1341_vm8, %v2676_v43, 0.0 }
 0x460   : > { %1443 = vadd.xlane.f32.xlu1 %v1442_v1 }
 0x461   : > { %2279 = vpow2.f32 %v1436_v44  ;;  %v1426_v63 = vpop.xlane.xlu2 %1425 }
 0x462   : > { %v1432_v45 = vsub.f32 %v1395_v29, %v1426_v63 }
 0x464   : > { %v1438_v0 = vmul.f32 1.442695, %v1432_v45 }
 0x466   : > { %2281 = vpow2.f32 %v1438_v0 }
 0x467   : > { %v2680_v47 = vpop.eup %2279  ;;  %2283 = vpow2.f32 %v1440_v48 }
 0x468   : > { %v1445_v49 = vsel %vm1341_vm8, %v2680_v47, 0.0 }
 0x469   : > { %1446 = vadd.xlane.f32.xlu0 %v1445_v49  ;;  %v1222_v50 = vpop.permute.xlu2 %1221 }
 0x46a   : > { %v1229_v52 = vpack.i.b16 %v1222_v50, %v1220_v36  ;;  %v1231_v53 = vshrl.u32 %v1222_v50, 16 }
 0x46b   : > { %v1224_v56 = vpop.permute.xlu1 %1223 }
 0x46c   : > { %v2684_v54 = vpop.eup %2281  ;;  %v1232_v55 = vpack.i.b16 %v1231_v53, %v1230_v51  ;;  %v1243_v58 = vperm.slane %v1229_v52, %v2594_v11  ;;  %v1236_v61 = vshrl.u32 %v1224_v56, 16 }
 0x46d   : > { %v1448_v57 = vsel %vm1341_vm8, %v2684_v54, 0.0  ;;  %v2690_v3 = vpop.eup %2283 }
 0x46e   : > { %1449 = vadd.xlane.f32.xlu2 %v1448_v57  ;;  %v1269_v60 = vperm.slane %v1232_v55, %v2594_v11  ;;  %v1251_v4 = vrot.slane %v1243_v58, 4  ;;  %v1451_v13 = vsel %vm1341_vm8, %v2690_v3, 0.0 }
 0x46f   : > { %v1226_v59 = vpop.permute.xlu0 %1225 }
 0x470   : > { %v1235_v62 = vpack.i.b16 %v1226_v59, %v1224_v56  ;;  %v1237_v2 = vshrl.u32 %v1226_v59, 16  ;;  %v1277_v7 = vrot.slane %v1269_v60, 4 }
 0x472   : > { %v1238_v5 = vpack.i.b16 %v1237_v2, %v1236_v61  ;;  %v1248_v6 = vperm.slane %v1235_v62, %v2594_v11 }
 0x474   : > { %v1249_v8 = vrot.slane %v1248_v6, 4  ;;  %v1252_v9 = vsel %vm997_vm7, %v1248_v6, %v1251_v4  ;;  %v1274_v10 = vperm.slane %v1238_v5, %v2594_v11 }
 0x475   : > { %v1260_v12 = vperm.slane %v1252_v9, %v2598_v23 }
 0x476   : > { %v1250_v14 = vsel %vm997_vm7, %v1249_v8, %v1243_v58  ;;  %v1275_v15 = vrot.slane %v1274_v10, 4  ;;  %v1278_v16 = vsel %vm997_vm7, %v1274_v10, %v1277_v7  ;;  %1452 = vadd.xlane.f32.xlu2 %v1451_v13 }
 0x477   : > { %v1256_v17 = vperm.slane %v1250_v14, %v2598_v23  ;;  %v1263_v18 = vrot.slane %v1260_v12, 4  ;;  %v1286_v19 = vperm.slane %v1278_v16, %v2598_v23 }
 0x478   : > { %v1276_v20 = vsel %vm997_vm7, %v1275_v15, %v1269_v60 }
 0x479   : > { %v1261_v21 = vrot.slane %v1256_v17, 4  ;;  %v1264_v22 = vsel %vm997_vm7, 0, %v1263_v18  ;;  %v1282_v24 = vperm.slane %v1276_v20, %v2598_v23  ;;  %v1289_v25 = vrot.slane %v1286_v19, 4 }
 0x47a   : > { %v1296_v26 = vrot.slane %v1264_v22, 4  ;;  %v1291_v31 = vsel %vm997_vm7, %v1263_v18, %v1256_v17 }
 0x47b   : > { %v1262_v27 = vsel %vm997_vm7, 0, %v1261_v21  ;;  %v1287_v28 = vrot.slane %v1282_v24, 4  ;;  %v1290_v29 = vsel %vm997_vm7, 0, %v1289_v25  ;;  %v1310_v36 = vsel %vm997_vm7, %v1289_v25, %v1282_v24 }
 0x47c   : > { %v1315_v30 = vrot.slane %v1290_v29, 4  ;;  %v1297_v33 = vsel %vm997_vm7, %v1296_v26, %v1262_v27  ;;  %v1295_v38 = vperm.slane %v1291_v31, %v2594_v11  ;;  %v1314_v42 = vperm.slane %v1310_v36, %v2594_v11 }
 0x47d   : > { %v1288_v34 = vsel %vm997_vm7, 0, %v1287_v28  ;;  %v1301_v35 = vperm.slane %v1297_v33, %v2594_v11 }
 0x47e   : > { %v1316_v37 = vsel %vm997_vm7, %v1315_v30, %v1288_v34 }
 0x47f   : > { %v1302_v39 = vrot.slane %v1301_v35, 4  ;;  %v1320_v40 = vperm.slane %v1316_v37, %v2594_v11 }
 0x481   : > { %v1303_v41 = vsel %vm997_vm7, %v1302_v39, %v1295_v38  ;;  %v1321_v44 = vrot.slane %v1320_v40, 4 }
 0x482   : > { %v1307_v1 = vperm.slane %v1303_v41, %v2598_v23 }
 0x483   : > { %v1322_v63 = vsel %vm997_vm7, %v1321_v44, %v1314_v42 }
 0x484   : > { %v1326_v45 = vperm.slane %v1322_v63, %v2598_v23  ;;  %v1308_v46 = vrot.slane %v1307_v1, 4  ;;  %v1332_v0 = vshrl.u32 %v1307_v1, 16 }
 0x486   : > { %v1331_v48 = vpack.i.b16 %v1326_v45, %v1307_v1  ;;  %v1333_v49 = vshrl.u32 %v1326_v45, 16  ;;  %v1309_v50 = vsel %vm997_vm7, 0, %v1308_v46  ;;  %v1327_v51 = vrot.slane %v1326_v45, 4 }
 0x487   : > { %v1338_v57 = vshrl.u32 %v1309_v50, 16 }
 0x488   : > { %v1523_v52 = vsel %vm1521_vm9, %v1331_v48, 0  ;;  %v1334_v53 = vpack.i.b16 %v1333_v49, %v1332_v0  ;;  %v1328_v55 = vsel %vm997_vm7, 0, %v1327_v51 }
 0x489   : > { %1532 = vmatpush.bf16.msrb.mxu1 %v1523_v52  ;;  %v1337_v56 = vpack.i.b16 %v1328_v55, %v1309_v50  ;;  %v1339_v58 = vshrl.u32 %v1328_v55, 16 }
 0x48a   : > { %v1542_v59 = vsel %vm1521_vm9, %v1334_v53, 0 }
 0x48b   : > { %1551 = vmatpush.bf16.msrb.mxu2 %v1542_v59  ;;  %v1561_v60 = vsel %vm1521_vm9, %v1337_v56, 0  ;;  %v1340_v61 = vpack.i.b16 %v1339_v58, %v1338_v57 }
 0x48c   : > { %1570 = vmatpush.bf16.msrb.mxu3 %v1561_v60 }
 0x48d   : > { %v1580_v62 = vsel %vm1521_vm9, %v1340_v61, 0 }
 0x48e   : > { %1589 = vmatpush.bf16.msra.mxu0 %v1580_v62 }
 0x4d3   : > { %v1444_v2 = vpop.xlane.xlu1 %1443 }
 0x4d4   : > { %2285 = vrcp.f32 %v1444_v2  ;;  %v1465_v8 = vand.u32 2147483648, %v1444_v2  ;;  %v1463_v10 = vand.u32 2147483647, %v1444_v2  ;;  %vm1459_vm11 = vweird.f32 %v1444_v2 }
 0x4d6   : > { %v1466_v15 = vor.u32 1.1754944e-38, %v1465_v8  ;;  %vm1464_vm13 = vcmp.eq.f32.partialorder %v1463_v10, 8.507059e+37 }
 0x4da   : > { %v2286_v4 = vpop.eup %2285 }
 0x4db   : > { %v1455_v5 = vmul.f32 %v2286_v4, %v1444_v2  ;;  %vm1460_vm10 = vweird.f32 %v2286_v4 }
 0x4dc   : > { %v1447_v6 = vpop.xlane.xlu0 %1446  ;;  %vm1461_vm12 = vmor %vm1459_vm11, %vm1460_vm10 }
 0x4dd   : > { %2287 = vrcp.f32 %v1447_v6  ;;  %v1456_v7 = vsub.f32 1.0, %v1455_v5  ;;  %v1480_v21 = vand.u32 2147483648, %v1447_v6  ;;  %v1478_v25 = vand.u32 2147483647, %v1447_v6 }
 0x4de   : > { %vm1474_vm15 = vweird.f32 %v1447_v6 }
 0x4df   : > { %v1457_v9 = vmul.f32 %v2286_v4, %v1456_v7  ;;  %v1481_v30 = vor.u32 1.1754944e-38, %v1480_v21  ;;  %vm1479_vm1 = vcmp.eq.f32.partialorder %v1478_v25, 8.507059e+37 }
 0x4e1   : > { %v1450_v12 = vpop.xlane.xlu2 %1449  ;;  %v1458_v13 = vadd.f32 %v2286_v4, %v1457_v9 }
 0x4e2   : > { %2289 = vrcp.f32 %v1450_v12  ;;  %v1495_v33 = vand.u32 2147483648, %v1450_v12  ;;  %v1493_v35 = vand.u32 2147483647, %v1450_v12  ;;  %vm1489_vm4 = vweird.f32 %v1450_v12 }
 0x4e3   : > { %v2288_v14 = vpop.eup %2287  ;;  %v1462_v17 = vsel %vm1461_vm12, %v2286_v4, %v1458_v13 }
 0x4e4   : > { %v1470_v16 = vmul.f32 %v2288_v14, %v1447_v6  ;;  %v1467_v18 = vsel %vm1464_vm13, %v1466_v15, %v1462_v17  ;;  %vm1475_vm14 = vweird.f32 %v2288_v14  ;;  %v1496_v40 = vor.u32 1.1754944e-38, %v1495_v33 }
 0x4e5   : > { %v1468_v20 = vmul.f32 %v2676_v43, %v1467_v18  ;;  %vm1476_vm0 = vmor %vm1474_vm15, %vm1475_vm14  ;;  %vm1494_vm6 = vcmp.eq.f32.partialorder %v1493_v35, 8.507059e+37  ;;  %vm1719_vm13 = vcmask 130048   ;;  %vm1721_vm14 = vcmask 195584  }
 0x4e6   : > { %v1471_v19 = vsub.f32 1.0, %v1470_v16 }
 0x4e7   : > { %v1514_v26 = vpack.c.bf16 %v1468_v20, %v1468_v20 }
 0x4e8   : > { %v2290_v22 = vpop.eup %2289  ;;  %v1472_v24 = vmul.f32 %v2288_v14, %v1471_v19 }
 0x4e9   : > { %v1485_v27 = vmul.f32 %v2290_v22, %v1450_v12  ;;  %v1453_v28 = vpop.xlane.xlu2 %1452  ;;  %2153 = vmatmul.msk.bf16.vlgmr.msrb.gmra.mxu1 %vm1341_vm8, %v1514_v26  ;;  %vm1490_vm3 = vweird.f32 %v2290_v22 }
 0x4ea   : > { %v1473_v29 = vadd.f32 %v2288_v14, %v1472_v24  ;;  %2291 = vrcp.f32 %v1453_v28  ;;  %vm1491_vm5 = vmor %vm1489_vm4, %vm1490_vm3  ;;  %v1510_v46 = vand.u32 2147483648, %v1453_v28  ;;  %v1508_v48 = vand.u32 2147483647, %v1453_v28 }
 0x4eb   : > { %v1486_v31 = vsub.f32 1.0, %v1485_v27  ;;  %vm1504_vm10 = vweird.f32 %v1453_v28 }
 0x4ec   : > { %v1477_v34 = vsel %vm1476_vm0, %v2288_v14, %v1473_v29  ;;  %v1511_v50 = vor.u32 1.1754944e-38, %v1510_v46  ;;  %vm1509_vm12 = vcmp.eq.f32.partialorder %v1508_v48, 8.507059e+37  ;;  %vm1859_vm0 = vcmask 523264  }
 0x4ed   : > { %v1487_v43 = vmul.f32 %v2290_v22, %v1486_v31  ;;  %v1482_v36 = vsel %vm1479_vm1, %v1481_v30, %v1477_v34 }
 0x4ee   : > { %v1483_v37 = vmul.f32 %v2680_v47, %v1482_v36 }
 0x4ef   : > { %v1488_v38 = vadd.f32 %v2290_v22, %v1487_v43 }
 0x4f0   : > { %v2292_v39 = vpop.eup %2291  ;;  %v1515_v41 = vpack.c.bf16 %v1483_v37, %v1483_v37 }
 0x4f1   : > { %v1500_v42 = vmul.f32 %v2292_v39, %v1453_v28  ;;  %v1492_v44 = vsel %vm1491_vm5, %v2290_v22, %v1488_v38  ;;  %vm1505_vm9 = vweird.f32 %v2292_v39 }
 0x4f2   : > { %2154 = vmatmul.msk.bf16.vlgmr.msrb.gmra.mxu2 %vm1341_vm8, %v1515_v41  ;;  %v1497_v1 = vsel %vm1494_vm6, %v1496_v40, %v1492_v44  ;;  %vm1506_vm11 = vmor %vm1504_vm10, %vm1505_vm9 }
 0x4f3   : > { %v1501_v63 = vsub.f32 1.0, %v1500_v42  ;;  %v1498_v45 = vmul.f32 %v2684_v54, %v1497_v1 }
 0x4f5   : > { %v1502_v0 = vmul.f32 %v2292_v39, %v1501_v63  ;;  %v1516_v47 = vpack.c.bf16 %v1498_v45, %v1498_v45 }
 0x4f7   : > { %v1503_v49 = vadd.f32 %v2292_v39, %v1502_v0  ;;  %2155 = vmatmul.msk.bf16.vlgmr.msrb.gmra.mxu3 %vm1341_vm8, %v1516_v47 }
 0x4f9   : > { %v1507_v51 = vsel %vm1506_vm11, %v2292_v39, %v1503_v49 }
 0x4fa   : > { %v1512_v52 = vsel %vm1509_vm12, %v1511_v50, %v1507_v51 }
 0x4fb   : > { %v1513_v53 = vmul.f32 %v2690_v3, %v1512_v52 }
 0x4fd   : > { %v1517_v55 = vpack.c.bf16 %v1513_v53, %v1513_v53 }
 0x4ff   : > { %2156 = vmatmul.msk.bf16.vlgmr.msra.gmra.mxu0 %vm1341_vm8, %v1517_v55 }
 0x566   : > { %v1534_v54 = vpop.f32.mrf.mxu1 }
 0x567   : > { %v1598_v58 = vrot.slane %v1534_v54, 4 }
 0x56e   : > { %v1536_v56 = vpop.f32.mrf.mxu1 }
 0x575   : > { %v1553_v57 = vpop.f32.mrf.mxu2 }
 0x576   : > { %v1610_v60 = vrot.slane %v1553_v57, 4 }
 0x57a   : > { %v1572_v59 = vpop.f32.mrf.mxu3 }
 0x57b   : > { %v1595_v61 = vrot.slane %v1572_v59, 4  ;;  %v1599_v62 = vsel %vm997_vm7, %v1572_v59, %v1598_v58 }
 0x57c   : > { %v1607_v2 = vperm.slane %v1599_v62, %v2594_v11  ;;  %v1591_v4 = vpop.f32.mrf.mxu0 }
 0x57d   : > { %v1597_v5 = vsel %vm997_vm7, %v1595_v61, %v1534_v54  ;;  %v1608_v6 = vrot.slane %v1591_v4, 4  ;;  %v1611_v3 = vsel %vm997_vm7, %v1591_v4, %v1610_v60  ;;  %v1555_v7 = vpop.f32.mrf.mxu2  ;;  %v2205_v4 = vld [vmem:[%s2506_s23] sm:$0xff] }
 0x57e   : > { %v1603_v8 = vperm.slane %v1597_v5, %v2594_v11  ;;  %v1634_v9 = vrot.slane %v1607_v2, 4  ;;  %v1619_v10 = vperm.slane %v1611_v3, %v2594_v11 }
 0x57f   : > { %v1609_v12 = vsel %vm997_vm7, %v1608_v6, %v1553_v57 }
 0x580   : > { %v1622_v13 = vrot.slane %v1603_v8, 4  ;;  %v1615_v14 = vperm.slane %v1609_v12, %v2594_v11  ;;  %v1632_v15 = vrot.slane %v1619_v10, 4  ;;  %v1635_v16 = vsel %vm997_vm7, %v1619_v10, %v1634_v9  ;;  %v2268_v10 = vld [vmem:[%s2897_s16] ss:$0 sm:$0xff] }
 0x581   : > { %v1643_v17 = vperm.slane %v1635_v16, %v2598_v23 }
 0x582   : > { %v1620_v18 = vrot.slane %v1615_v14, 4  ;;  %v1623_v19 = vsel %vm997_vm7, %v1615_v14, %v1622_v13  ;;  %v1633_v20 = vsel %vm997_vm7, %v1632_v15, %v1607_v2  ;;  %v1574_v21 = vpop.f32.mrf.mxu3  ;;  %v2206_v2 = vld [vmem:[%s2506_s23 + $0x8] sm:$0xff]  ;;  %v2295_v14 = vld [vmem:[#allocation2] sm:$0xff] }
 0x583   : > { %v1631_v22 = vperm.slane %v1623_v19, %v2598_v23  ;;  %v1639_v24 = vperm.slane %v1633_v20, %v2598_v23  ;;  %v1650_v25 = vrot.slane %v1643_v17, 4  ;;  %1748 = vmatpush.bf16.msra.mxu1 %v2206_v2 }
 0x584   : > { %v1621_v26 = vsel %vm997_vm7, %v1620_v18, %v1603_v8  ;;  %v1593_v27 = vpop.f32.mrf.mxu0 }
 0x585   : > { %v1627_v28 = vperm.slane %v1621_v26, %v2598_v23  ;;  %v1646_v29 = vrot.slane %v1631_v22, 4  ;;  %v1648_v30 = vrot.slane %v1639_v24, 4  ;;  %v1651_v31 = vsel %vm997_vm7, 0.0, %v1650_v25  ;;  %v2212_v26 = vld [vmem:[%s2537_s10 + $0x18] sm:$0xff] }
 0x586   : > { %v1663_v33 = vsel %vm997_vm7, %v1650_v25, %v1639_v24  ;;  %v1668_v34 = vrot.slane %v1651_v31, 4  ;;  %v2208_v24 = vld [vmem:[%s2523_s28 + $0x8] sm:$0xff]  ;;  %v2207_v25 = vld [vmem:[%s2523_s28] sm:$0xff]  ;;  %1867 = vmatpush.bf16.msra.mxu3 %v2212_v26 }
 0x587   : > { %v1644_v43 = vrot.slane %v1627_v28, 4  ;;  %v1647_v35 = vsel %vm997_vm7, 0.0, %v1646_v29  ;;  %v1649_v36 = vsel %vm997_vm7, 0.0, %v1648_v30  ;;  %v1667_v37 = vperm.slane %v1663_v33, %v2594_v11  ;;  %1749 = vmatpush.bf16.msra.mxu1 %v2205_v4  ;;  %1818 = vmatpush.bf16.msra.mxu2 %v2208_v24 }
 0x588   : > { %v1657_v38 = vrot.slane %v1647_v35, 4  ;;  %v1652_v39 = vsel %vm997_vm7, %v1646_v29, %v1627_v28  ;;  %v1669_v40 = vsel %vm997_vm7, %v1668_v34, %v1649_v36  ;;  %v2211_v29 = vld [vmem:[%s2537_s10 + $0x10] sm:$0xff] }
 0x589   : > { %v1645_v41 = vsel %vm997_vm7, 0.0, %v1644_v43  ;;  %v1656_v42 = vperm.slane %v1652_v39, %v2594_v11  ;;  %v1673_v44 = vperm.slane %v1669_v40, %v2594_v11  ;;  %v1688_v1 = vrot.slane %v1667_v37, 4  ;;  %v2270_v40 = vld [vmem:[%s2900_s8] ss:$0 sm:$0xff] }
 0x58a   : > { %v1658_v63 = vsel %vm997_vm7, %v1657_v38, %v1645_v41  ;;  %1868 = vmatpush.bf16.msra.mxu3 %v2211_v29 }
 0x58b   : > { %v1662_v45 = vperm.slane %v1658_v63, %v2594_v11  ;;  %v1676_v46 = vrot.slane %v1656_v42, 4  ;;  %v1689_v0 = vsel %vm997_vm7, %v1673_v44, %v1688_v1  ;;  %v1686_v48 = vrot.slane %v1673_v44, 4  ;;  %1819 = vmatpush.bf16.msra.mxu2 %v2207_v25  ;;  %v2210_v1 = vld [vmem:[%s2537_s10 + $0x8] sm:$0xff]  ;;  %v2209_v63 = vld [vmem:[%s2537_s10] sm:$0xff]  ;;  %s2902_s10 = sld [smem:[#allocation3_spill]] }
 0x58c   : > { %v1697_v47 = vperm.slane %v1689_v0, %v2598_v23 }
 0x58d   : > { %v1677_v49 = vsel %vm997_vm7, %v1662_v45, %v1676_v46  ;;  %v1674_v50 = vrot.slane %v1662_v45, 4  ;;  %v1687_v51 = vsel %vm997_vm7, %v1686_v48, %v1667_v37  ;;  %v2269_v37 = vld [vmem:[%s2899_s18] ss:$0 sm:$0xff] }
 0x58e   : > { %v1685_v52 = vperm.slane %v1677_v49, %v2598_v23  ;;  %v1702_v53 = vrot.slane %v1697_v47, 4  ;;  %v1693_v55 = vperm.slane %v1687_v51, %v2598_v23  ;;  %1869 = vmatpush.bf16.msra.mxu3 %v2210_v1  ;;  %v2271_v45 = vld [vmem:[%s2901_s19] ss:$0 sm:$0xff] }
 0x58f   : > { %v1675_v54 = vsel %vm997_vm7, %v1674_v50, %v1656_v42  ;;  %v2272_v50 = vld [vmem:[%s773_s29] ss:$0 sm:$0xff] }
 0x590   : > { %v1703_v11 = vsel %vm997_vm7, %v1702_v53, %v1685_v52  ;;  %v1704_v56 = vrot.slane %v1685_v52, 4  ;;  %v1681_v57 = vperm.slane %v1675_v54, %v2598_v23  ;;  %v1698_v58 = vrot.slane %v1693_v55, 4 }
 0x591   : > { %1711 = vrot.lane.b32.xlu1 %v1703_v11, %s2348_s24  ;;  %p2192_p8 = scmp.ne.s32.totalorder %s2902_s10, 1 }
 0x592   : > { %v1705_v59 = vsel %vm997_vm7, %v1697_v47, %v1704_v56  ;;  %v1700_v60 = vrot.slane %v1681_v57, 4  ;;  %v1699_v61 = vsel %vm997_vm7, %v1698_v58, %v1681_v57  ;;  %1870 = vmatpush.bf16.msra.mxu3 %v2209_v63  ;;  %s2903_s24 = sld [smem:[#allocation17_spill]] (!%p2192_p8) }
 0x593   : > { %1715 = vrot.lane.b32.xlu2 %v1705_v59, %s2349_s30  ;;  %s2904_s3 = sld [smem:[#allocation18_spill]] (!%p2192_p8) }
 0x594   : > { %v1701_v62 = vsel %vm997_vm7, %v1693_v55, %v1700_v60 }
 0x595   : > { %1707 = vrot.lane.b32.xlu0 %v1701_v62, %s2350_s26 }
 0x5ed   : > { %v1716_v3 = vpop.permute.xlu2 %1715 }
 0x603   : > { %v1712_v5 = vpop.permute.xlu1 %1711 }
 0x607   : > { %v1708_v23 = vpop.permute.xlu0 %1707 }
 0x608   : > { %v1718_v6 = vsel %vm1341_vm8, %v1699_v61, %v1708_v23 }
 0x609   : > { %v1720_v7 = vsel %vm1719_vm13, %v1718_v6, %v1712_v5 }
 0x60a   : > { %v1722_v8 = vsel %vm1721_vm14, %v1720_v7, %v1716_v3 }
 0x60b   : > { %v1723_v9 = vpack.c.bf16 %v1722_v8, %v1722_v8 }
 0x60d   : > { %2165 = vmatmul.msk.bf16.vlgmr.msra.gmra.mxu1 %vm885_vm2, %v1723_v9 }
 0x68a   : > { %v1751_v12 = vpop.f32.mrf.mxu1 }
 0x68b   : > { %v1752_v13 = vadd.f32 %v2268_v10, %v1751_v12 }
 0x68d   : > { %v1755_v15 = vadd.f32 %v2295_v14, %v1752_v13 }
 0x68f   : > { %v1758_v16 = vsel %vm885_vm2, %v1755_v15, 0.0 }
 0x690   : > { %1759 = vadd.xlane.f32.xlu0 %v1758_v16 }
 0x692   : > { %v1753_v17 = vpop.f32.mrf.mxu1 }
 0x703   : > { %v1760_v18 = vpop.xlane.xlu0 %1759 }
 0x704   : > { %v1761_v19 = vmul.f32 %v1760_v18, %v2561_v32 }
 0x706   : > { %v1762_v20 = vsub.f32 %v1755_v15, %v1761_v19 }
 0x708   : > { %v1763_v21 = vmul.f32 %v1762_v20, %v1762_v20 }
 0x70a   : > { %v1764_v22 = vsel %vm885_vm2, %v1763_v21, 0.0 }
 0x70b   : > { %1765 = vadd.xlane.f32.xlu1 %v1764_v22 }
 0x77e   : > { %v1766_v27 = vpop.xlane.xlu1 %1765 }
 0x77f   : > { %v1767_v28 = vmul.f32 %v1766_v27, %v2561_v32 }
 0x781   : > { %v1768_v30 = vadd.f32 1e-05, %v1767_v28 }
 0x783   : > { %2293 = vrsqrt.f32 %v1768_v30  ;;  %vm1775_vm8 = vweird.f32 %v1768_v30 }
 0x789   : > { %v2294_v31 = vpop.eup %2293 }
 0x78a   : > { %v1770_v33 = vmul.f32 %v2294_v31, %v1768_v30  ;;  %vm1776_vm7 = vweird.f32 %v2294_v31 }
 0x78b   : > { %vm1777_vm15 = vmor %vm1775_vm8, %vm1776_vm7 }
 0x78c   : > { %v1771_v34 = vmul.f32 %v2294_v31, %v1770_v33 }
 0x78e   : > { %v1772_v43 = vmul.f32 0.5, %v1771_v34 }
 0x790   : > { %v1773_v35 = vsub.f32 1.5, %v1772_v43 }
 0x792   : > { %v1774_v36 = vmul.f32 %v2294_v31, %v1773_v35 }
 0x794   : > { %v1778_v38 = vsel %vm1777_vm15, %v2294_v31, %v1774_v36 }
 0x795   : > { %v1779_v39 = vmul.f32 %v1778_v38, %v1762_v20 }
 0x797   : > { %v1783_v41 = vmul.f32 %v2269_v37, %v1779_v39 }
 0x799   : > { %v1787_v42 = vadd.f32 %v2270_v40, %v1783_v41 }
 0x79b   : > { %v1788_v44 = vpack.c.bf16 %v1787_v42, %v1787_v42 }
 0x79d   : > { %2174 = vmatmul.msk.bf16.vlgmr.msra.gmra.mxu2 %vm885_vm2, %v1788_v44 }
 0x820   : > { %v1821_v46 = vpop.f32.mrf.mxu2 }
 0x821   : > { %v1822_v0 = vadd.f32 %v2271_v45, %v1821_v46 }
 0x823   : > { %v1825_v48 = vmax.f32 %v1822_v0, 0.0 }
 0x825   : > { %v1826_v47 = vpack.c.bf16 %v1825_v48, %v1825_v48 }
 0x827   : > { %2191 = vmatmul.msk.bf16.vlgmr.msra.gmra.mxu3 %vm1859_vm0, %v1826_v47 }
 0x828   : > { %v1823_v49 = vpop.f32.mrf.mxu2 }
 0x8aa   : > { %v1872_v51 = vpop.f32.mrf.mxu3 }
 0x8ab   : > { %v1876_v52 = vadd.f32 %v1872_v51, %v1755_v15 }
 0x8ad   : > { %v1881_v53 = vadd.f32 %v2272_v50, %v1876_v52 }
 0x8ae   : > { %1886 = sbr.rel (%p2192_p8) target bundleno = 2496 (0x9c0), region = 100 }
 0x8af   : > { %1882 = vst.msk [vmem:[#allocation2] sm:$0xff] %vm885_vm2, %v1881_v53 }
 0x8b2   : > { %v1874_v55 = vpop.f32.mrf.mxu3 }
 0x8b3   : > { %v1889_v54 = vsel %vm885_vm2, %v1881_v53, 0.0  ;;  %v2296_v7 = vld [vmem:[%s2903_s24] ss:$0 sm:$0xff] }
 0x8b4   : > { %1890 = vadd.xlane.f32.xlu0 %v1889_v54 }
 0x927   : > { %v1891_v11 = vpop.xlane.xlu0 %1890 }
 0x928   : > { %v1892_v56 = vmul.f32 %v1891_v11, %v2561_v32 }
 0x92a   : > { %v1893_v57 = vsub.f32 %v1881_v53, %v1892_v56 }
 0x92c   : > { %v1894_v58 = vmul.f32 %v1893_v57, %v1893_v57 }
 0x92e   : > { %v1895_v59 = vsel %vm885_vm2, %v1894_v58, 0.0 }
 0x92f   : > { %1896 = vadd.xlane.f32.xlu0 %v1895_v59 }
 0x9a2   : > { %v1897_v60 = vpop.xlane.xlu0 %1896 }
 0x9a3   : > { %v1898_v61 = vmul.f32 %v1897_v60, %v2561_v32  ;;  %v2297_v32 = vld [vmem:[%s2904_s3] ss:$0 sm:$0xff] }
 0x9a5   : > { %v1899_v62 = vadd.f32 1e-05, %v1898_v61 }
 0x9a7   : > { %2298 = vrsqrt.f32 %v1899_v62  ;;  %vm1906_vm3 = vweird.f32 %v1899_v62 }
 0x9ad   : > { %v2299_v2 = vpop.eup %2298 }
 0x9ae   : > { %v1901_v4 = vmul.f32 %v2299_v2, %v1899_v62  ;;  %vm1907_vm1 = vweird.f32 %v2299_v2 }
 0x9af   : > { %vm1908_vm4 = vmor %vm1906_vm3, %vm1907_vm1 }
 0x9b0   : > { %v1902_v23 = vmul.f32 %v2299_v2, %v1901_v4 }
 0x9b2   : > { %v1903_v5 = vmul.f32 0.5, %v1902_v23 }
 0x9b4   : > { %v1904_v6 = vsub.f32 1.5, %v1903_v5 }
 0x9b6   : > { %v1905_v3 = vmul.f32 %v2299_v2, %v1904_v6 }
 0x9b8   : > { %v1909_v8 = vsel %vm1908_vm4, %v2299_v2, %v1905_v3 }
 0x9b9   : > { %v1910_v9 = vmul.f32 %v1909_v8, %v1893_v57 }
 0x9bb   : > { %v1914_v10 = vmul.f32 %v2296_v7, %v1910_v9 }
 0x9bd   : > { %v1918_v12 = vadd.f32 %v2297_v32, %v1914_v10 }
 0x9bf   : > { %1919 = vst.msk [vmem:[%s2542_s6] sm:$0xff] %vm885_vm2, %v1918_v12 }
 0x9c0 PF: > { %s2905_s27 = sld [smem:[#allocation6_spill]] }
 0x9c1   : > { %s2907_s28 = sld [smem:[#allocation5_spill]] }
 0x9c2   : > { %s2908_s29 = sld [smem:[#allocation7_spill]] }
 0x9c3   : > { %s2909_s30 = sld [smem:[#allocation8_spill]] }
 0x9c6   : > { %s28_s0 = sadd.s32 1, %s2905_s27   ;;  %s2906_s27 = sld [smem:[#allocation4_spill]] }
 0x9c7   : > { %p25_p9 = scmp.ge.s32.totalorder %s28_s0, 6  }
 0x9c9   :  { %27 = sbr.rel (!%p25_p9) target bundleno = 12 (0xc), region = 168 }

// kernel: deconv_bipartite_transformer_conv_forward.3
= control target key start
LH: loop header
LB: loop body
LE: loop exit
PB: predicated region body
PF: predicated region fallthrough
CT: control target
= control target key end

     0   :  { %s4744_s0 = inlined_call_operand.vmem [shape: f32[2,8,32], index: 0, kind: input, shape index: {}]   ;;  %s4745_s1 = inlined_call_operand.vmem [shape: f32[2,8,32], index: 1, kind: input, shape index: {}]   ;;  %s4746_s2 = inlined_call_operand.vmem [shape: f32[2,1,32], index: 2, kind: input, shape index: {}]   ;;  %s4747_s3 = inlined_call_operand.vmem [shape: f32[2,1,32], index: 3, kind: input, shape index: {}]   ;;  %s4748_s4 = inlined_call_operand.vmem [shape: bf16[2,32,96], index: 4, kind: input, shape index: {}]   ;;  %s4749_s5 = inlined_call_operand.vmem [shape: f32[2,1,96], index: 5, kind: input, shape index: {}]   ;;  %s4750_s6 = inlined_call_operand.vmem [shape: bf16[2,32,32], index: 6, kind: input, shape index: {}]   ;;  %s4751_s7 = inlined_call_operand.vmem [shape: f32[2,1,32], index: 7, kind: input, shape index: {}]   ;;  %s4752_s8 = inlined_call_operand.vmem [shape: f32[2,1,32], index: 8, kind: input, shape index: {}]   ;;  %s4753_s9 = inlined_call_operand.vmem [shape: f32[2,1,32], index: 9, kind: input, shape index: {}]   ;;  %s4754_s10 = inlined_call_operand.vmem [shape: bf16[2,32,96], index: 10, kind: input, shape index: {}]   ;;  %s4755_s11 = inlined_call_operand.vmem [shape: f32[2,1,96], index: 11, kind: input, shape index: {}]   ;;  %s4756_s12 = inlined_call_operand.vmem [shape: bf16[2,32,32], index: 12, kind: input, shape index: {}]   ;;  %s4757_s13 = inlined_call_operand.vmem [shape: f32[2,1,32], index: 13, kind: input, shape index: {}]   ;;  %s4758_s14 = inlined_call_operand.vmem [shape: f32[2,1,32], index: 14, kind: input, shape index: {}]   ;;  %s4759_s15 = inlined_call_operand.vmem [shape: f32[2,1,32], index: 15, kind: input, shape index: {}]   ;;  %s4760_s16 = inlined_call_operand.vmem [shape: bf16[2,32,64], index: 16, kind: input, shape index: {}]   ;;  %s4761_s17 = inlined_call_operand.vmem [shape: f32[2,1,64], index: 17, kind: input, shape index: {}]   ;;  %s4762_s18 = inlined_call_operand.vmem [shape: bf16[2,64,32], index: 18, kind: input, shape index: {}]   ;;  %s4763_s19 = inlined_call_operand.vmem [shape: f32[2,1,32], index: 19, kind: input, shape index: {}]   ;;  %s4764_s20 = inlined_call_operand.vmem [shape: f32[1,32], index: 20, kind: input, shape index: {}]   ;;  %s4765_s21 = inlined_call_operand.vmem [shape: f32[1,32], index: 21, kind: input, shape index: {}]   ;;  %s4766_s22 = inlined_call_operand.vmem [shape: bf16[32,128], index: 22, kind: input, shape index: {}]   ;;  %s4767_s23 = inlined_call_operand.vmem [shape: f32[1,128], index: 23, kind: input, shape index: {}]   ;;  %s4768_s24 = inlined_call_operand.hbm [shape: f32[2,8,128], index: 24, kind: output, shape index: {0}]   ;;  %s4769_s25 = inlined_call_operand.hbm [shape: f32[2,8,128], index: 25, kind: output, shape index: {1}]  }
   0x1   :  { %4790 = sst [smem:[#allocation26_spill]] %s4744_s0 }
   0x2   :  { %4791 = sst [smem:[#allocation27_spill]] %s4745_s1 }
   0x3   :  { %4792 = sst [smem:[#allocation28_spill]] %s4746_s2 }
   0x4   :  { %4793 = sst [smem:[#allocation29_spill]] %s4747_s3 }
   0x5   :  { %4794 = sst [smem:[#allocation30_spill]] %s4748_s4 }
   0x6   :  { %4795 = sst [smem:[#allocation31_spill]] %s4749_s5 }
   0x7   :  { %4796 = sst [smem:[#allocation32_spill]] %s4750_s6 }
   0x8   :  { %4797 = sst [smem:[#allocation33_spill]] %s4751_s7 }
   0x9   :  { %4798 = sst [smem:[#allocation34_spill]] %s4752_s8 }
   0xa   :  { %4799 = sst [smem:[#allocation35_spill]] %s4753_s9 }
   0xb   :  { %4800 = sst [smem:[#allocation36_spill]] %s4762_s18 }
   0xc   :  { %4801 = sst [smem:[#allocation37_spill]] %s4763_s19 }
   0xd   :  { %4802 = sst [smem:[#allocation38_spill]] %s4764_s20 }
   0xe   :  { %4803 = sst [smem:[#allocation39_spill]] %s4765_s21 }
   0xf   :  { %4804 = sst [smem:[#allocation40_spill]] %s4766_s22 }
  0x10   :  { %4805 = sst [smem:[#allocation41_spill]] %s4767_s23 }
  0x11   :  { %4806 = sst [smem:[#allocation42_spill]] %s4768_s24 }
  0x12   :  { %4807 = sst [smem:[#allocation43_spill]] %s4769_s25 }
  0x13   :  { %31 = vsyncpa [#allocation4], 0 }
  0x14   :  { %33 = vsyncpa [#allocation4 + $0x1], 0 }
  0x15   :  { %34 = vsyncpa [#allocation6], 0 }
  0x16   :  { %36 = vsyncpa [#allocation6 + $0x1], 0  ;;  %s3967_s29 = smov 0   ;;  %s3969_s2 = smov 0  }
  0x17   :  { %s3971_s6 = smov 0   ;;  %s3973_s30 = smov 0  }
  0x18   :  { %s3975_s7 = smov 0   ;;  %s3977_s3 = smov 0  }
  0x19   :  { %s3979_s26 = smov 0   ;;  %s3981_s1 = smov 0  }
  0x1a LB: > { %4808 = sst [smem:[#allocation9_spill]] %s3795_s29  ;;  %s3408_s8 = sadd.s32 4294967295, %s3823_s1   ;;  %s3823_s1 = sphi %s3981_s1, %s42_s1   ;;  %s3819_s26 = sphi %s3979_s26, %s4880_s26   ;;  %s3815_s3 = sphi %s3977_s3, %s4879_s3   ;;  %s3811_s7 = sphi %s3975_s7, %s4878_s7   ;;  %s3807_s30 = sphi %s3973_s30, %s4877_s30   ;;  %s3803_s6 = sphi %s3971_s6, %s4876_s6   ;;  %s3799_s2 = sphi %s3969_s2, %s4875_s2   ;;  %s3795_s29 = sphi %s3967_s29, %s4874_s29  }
  0x1b   : > { %4809 = sst [smem:[#allocation10_spill]] %s3799_s2  ;;  %s3409_s27 = sadd.s32 4294967294, %s3823_s1  }
  0x1c   : > { %4810 = sst [smem:[#allocation11_spill]] %s3803_s6  ;;  %s51_s4 = sadd.s32 1, %s3815_s3 }
  0x1d   : > { %4811 = sst [smem:[#allocation12_spill]] %s3807_s30  ;;  %p52_p0 = scmp.ge.s32.totalorder %s51_s4, 2 }
  0x1e   : > { %4812 = sst [smem:[#allocation13_spill]] %s3811_s7  ;;  %s54_s28 = sadd.s32 1, %s3819_s26 }
  0x1f   : > { %4813 = sst [smem:[#allocation14_spill]] %s3815_s3  ;;  %p675_p1 = scmp.ne.s32.totalorder %s3803_s6, %s3799_s2 }
  0x20   : > { %4814 = sst [smem:[#allocation15_spill]] %s3819_s26  ;;  %p676_p2 = scmp.eq.s32.totalorder %s3408_s8, 3 }
  0x21   : > { %4815 = sst [smem:[#allocation16_spill]] %s3823_s1  ;;  %s4882_s4 = smov (%p52_p0, %s51_s4), 0 }
  0x22   : > { %4816 = sst [smem:[#allocation17_spill]] %s4882_s4  ;;  %s4884_s28 = smov (!%p52_p0, %s54_s28), %s3819_s26 }
  0x23   : > { %p4016_p3 = por %p676_p2, %p675_p1  ;;  %p681_p4 = scmp.ne.s32.totalorder %s3799_s2, %s3795_s29 }
  0x24   : > { %p56_p5 = scmp.ge.s32.totalorder %s4884_s28, 2  ;;  %p682_p6 = scmp.eq.s32.totalorder %s3409_s27, 3 }
  0x25   : > { %s4817_s9 = scalar_select %p4016_p3, 1, 0 }
  0x26   : > { %p3412_p7 = scmp.ge.s32.totalorder %s3823_s1, 1  ;;  %p872_p8 = scmp.lt.s32.totalorder %s3823_s1, 5 }
  0x27   : > { %4818 = sst [smem:[#allocation18_spill]] %s4817_s9  ;;  %s4886_s28 = smov (%p56_p5, %s4884_s28), 0 }
  0x28   : > { %4819 = sst [smem:[#allocation19_spill]] %s4886_s28  ;;  %p4026_p9 = por %p682_p6, %p681_p4 }
  0x29   : > { %p873_p10 = pnand %p3412_p7, %p872_p8  ;;  %s662_s0 = ssub.s32 %s3819_s26, %s4886_s28 }
  0x2a   : > { %s4820_s5 = scalar_select %p4026_p9, 1, 0 }
  0x2b   : > { %s665_s8 = sadd.s32 1, %s3803_s6  ;;  %p663_p11 = scmp.eq.s32.totalorder %s662_s0, 0 }
  0x2c   : > { %4821 = sst [smem:[#allocation20_spill]] %s4820_s5  ;;  %876 = sbr.rel (%p873_p10) target bundleno = 4177 (0x1051), region = 116 }
  0x2d   : > { %s4034_s4 = scalar_select %p663_p11, %s3803_s6, %s665_s8  }
  0x2f   : > { %4822 = sst [smem:[#allocation21_spill]] %s4034_s4 }
  0x31   : > { %s4037_s27 = sand.u32 1, %s3799_s2   ;;  %p1014_p12 = scmp.lt.s32.totalorder %s3811_s7, 1 }
  0x32   : > { %4823 = sst [smem:[#allocation22_spill]] %s4037_s27  ;;  %s3413_s3 = sshll.u32 %s4037_s27, 3 }
  0x33   : > { %p1022_p13 = scmp.lt.s32.totalorder %s3807_s30, 1  ;;  %s4824_s26 = sld [smem:[#allocation26_spill]] }
  0x34   : > { %s1015_s29 = scalar_select %p1014_p12, %s3811_s7, 1 }
  0x35   : > { %s4044_s5 = scalar_select %p1022_p13, %s3807_s30, 1 }
  0x36   : > { %s3415_s0 = sshll.u32 %s1015_s29, 3  ;;  %s4825_s1 = sld [smem:[#allocation27_spill]] }
  0x37   : > { %s3525_s22 = sshll.u32 %s4044_s5, 4  ;;  %s4830_s6 = sld [smem:[#allocation30_spill]] }
  0x38   : > { %s4832_s9 = sld [smem:[#allocation32_spill]]  ;;  %s4101_s23 = scalar_lea.vmem %s4756_s12, %s3525_s22 }
  0x39   : > { %s1017_s4 = scalar_lea.vmem %s4824_s26, %s3415_s0  ;;  %s4118_s24 = scalar_lea.vmem %s4760_s16, %s3525_s22 }
  0x3a   : > { %s1079_s28 = scalar_lea.vmem %s4761_s17, %s4044_s5  ;;  %s4837_s7 = sld [smem:[#allocation36_spill]] }
  0x3b   : > { %s4838_s8 = sld [smem:[#allocation37_spill]]  ;;  %s4134_s2 = scalar_lea.vmem [#allocation3], %s3413_s3 }
  0x3c   : > { %s4052_s25 = scalar_lea.vmem %s4825_s1, %s3415_s0 }
  0x3d   : > { %4826 = sst [smem:[#allocation23_spill]] %s4052_s25  ;;  %s4070_s1 = scalar_lea.vmem %s4830_s6, %s3525_s22 }
  0x3e   : > { %4831 = sst [smem:[#allocation24_spill]] %s4070_s1  ;;  %s4075_s27 = scalar_lea.vmem %s4832_s9, %s3525_s22 }
  0x3f   : > { %4833 = sst [smem:[#allocation25_spill]] %s4075_s27  ;;  %s4092_s1 = scalar_lea.vmem %s4754_s10, %s3525_s22 }
  0x40   : > { %s3530_s9 = sshll.u32 %s4044_s5, 5  ;;  %s4136_s6 = scalar_lea.vmem [#allocation5], %s3413_s3 }
  0x41   : > { %s4128_s29 = scalar_lea.vmem %s4837_s7, %s3530_s9  ;;  %s1087_s26 = scalar_lea.vmem %s4838_s8, %s4044_s5 }
  0x42   : > { %s4839_s22 = sld [smem:[#allocation12_spill]] }
  0x48   : > { %p3429_p0 = scmp.ne.s32.totalorder %s4839_s22, 0 }
  0x4a   : > { %1092 = sbr.rel (%p3429_p0) target bundleno = 81 (0x51), region = 120 }
  0x4f   : > { %v1093_v0 = vld [vmem:[%s1017_s4] sm:$0xff]  ;;  %vm1094_vm0 = vcmask 261120  }
  0x50   : > { %1095 = vst.msk [vmem:[#allocation2] sm:$0xff] %vm1094_vm0, %v1093_v0 }
  0x51 PF: > { %vm1099_vm1 = vcmask 261120   ;;  %s4840_s19 = sld [smem:[#allocation24_spill]]  ;;  %v3825_v3 = vmov 32.0   ;;  %s3826_s22 = smov 104   ;;  %v3831_v46 = vmov 1983009808  }
  0x52   : > { %3647 = vrcp.f32 %v3825_v3  ;;  %s4841_s9 = sld [smem:[#allocation28_spill]]  ;;  %s3828_s3 = smov 96   ;;  %v1202_v47 = vunpack.c.l.s4 %v3831_v46  ;;  %v3832_v54 = vmov 1934713408   ;;  %vm1211_vm6 = vcmask 1047556  }
  0x53   : > { %s4843_s27 = sld [smem:[#allocation29_spill]]  ;;  %s3829_s4 = smov 112   ;;  %v1216_v55 = vunpack.c.l.s4 %v3832_v54  ;;  %vm1561_vm7 = vcmask 64512   ;;  %vm1741_vm9 = vcmask 1043456  }
  0x54   : > { %s4845_s20 = sld [smem:[#allocation31_spill]]  ;;  %v4183_v52 = vunpack.c.0.s8 %v1202_v47  ;;  %s3834_s8 = smov 16  }
  0x55   : > { %v4187_v0 = vunpack.c.0.s8 %v1216_v55  ;;  %s3835_s0 = smov 24   ;;  %s4852_s18 = sld [smem:[#allocation34_spill]] }
  0x57   : > { %v1096_v1 = vld [vmem:[#allocation2] sm:$0xff]  ;;  %v3532_v15 = vld [vmem:[%s4840_s19 + $0x8] sm:$0xff] }
  0x58   : > { %v1100_v2 = vsel %vm1099_vm1, %v1096_v1, 0.0  ;;  %v3648_v4 = vpop.eup %3647  ;;  %1172 = vmatpush.bf16.msra.mxu0 %v3532_v15  ;;  %v3531_v16 = vld [vmem:[%s4840_s19] sm:$0xff]  ;;  %s4842_s7 = scalar_lea.vmem %s4841_s9, %s4044_s5  ;;  %s3827_s19 = smov 120  }
  0x59   : > { %1101 = vadd.xlane.f32.xlu0 %v1100_v2  ;;  %v1104_v5 = vmul.f32 32.0, %v3648_v4  ;;  %vm1108_vm2 = vweird.f32 %v3648_v4  ;;  %v3635_v26 = vld [vmem:[%s4842_s7] ss:$0 sm:$0xff]  ;;  %s4844_s21 = scalar_lea.vmem %s4843_s27, %s4044_s5  ;;  %s3830_s9 = smov 64  }
  0x5a   : > { %v3636_v29 = vld [vmem:[%s4844_s21] ss:$0 sm:$0xff]  ;;  %s4846_s30 = scalar_lea.vmem %s4845_s20, %s4044_s5  ;;  %s4847_s7 = sld [smem:[#allocation25_spill]] }
  0x5b   : > { %v1105_v6 = vsub.f32 1.0, %v1104_v5  ;;  %v3637_v33 = vld [vmem:[%s4846_s30] ss:$0 sm:$0xff]  ;;  %s3836_s27 = smov 8   ;;  %s4848_s21 = sld [smem:[#allocation23_spill]] }
  0x5c   : > { %1173 = vmatpush.bf16.msra.mxu0 %v3531_v16  ;;  %s4849_s20 = sld [smem:[#allocation33_spill]] }
  0x5d   : > { %v1106_v7 = vmul.f32 %v3648_v4, %v1105_v6 }
  0x5f   : > { %v1107_v8 = vadd.f32 %v3648_v4, %v1106_v7 }
  0x61   : > { %v4140_v9 = vsel %vm1108_vm2, %v3648_v4, %v1107_v8 }
  0x62   : > { %s4850_s30 = scalar_lea.vmem %s4849_s20, %s4044_s5  ;;  %s4853_s20 = scalar_lea.vmem %s4852_s18, %s4044_s5 }
  0xcc   : > { %v1102_v10 = vpop.xlane.xlu0 %1101 }
  0xcd   : > { %v1110_v11 = vmul.f32 %v4140_v9, %v1102_v10 }
  0xcf   : > { %v1111_v12 = vsub.f32 %v1096_v1, %v1110_v11 }
  0xd1   : > { %v1112_v13 = vmul.f32 %v1111_v12, %v1111_v12 }
  0xd3   : > { %v1113_v14 = vsel %vm1099_vm1, %v1112_v13, 0.0 }
  0xd4   : > { %1114 = vadd.xlane.f32.xlu0 %v1113_v14 }
 0x147   : > { %v1115_v17 = vpop.xlane.xlu0 %1114 }
 0x148   : > { %v1116_v18 = vmul.f32 %v1115_v17, %v4140_v9 }
 0x14a   : > { %v1117_v19 = vadd.f32 1e-05, %v1116_v18 }
 0x14c   : > { %3649 = vrsqrt.f32 %v1117_v19  ;;  %vm1124_vm4 = vweird.f32 %v1117_v19 }
 0x152   : > { %v3650_v20 = vpop.eup %3649 }
 0x153   : > { %v1119_v21 = vmul.f32 %v3650_v20, %v1117_v19  ;;  %vm1125_vm3 = vweird.f32 %v3650_v20 }
 0x154   : > { %vm1126_vm5 = vmor %vm1124_vm4, %vm1125_vm3 }
 0x155   : > { %v1120_v22 = vmul.f32 %v3650_v20, %v1119_v21 }
 0x157   : > { %v1121_v23 = vmul.f32 0.5, %v1120_v22 }
 0x159   : > { %v1122_v24 = vsub.f32 1.5, %v1121_v23 }
 0x15b   : > { %v1123_v25 = vmul.f32 %v3650_v20, %v1122_v24 }
 0x15d   : > { %v1127_v27 = vsel %vm1126_vm5, %v3650_v20, %v1123_v25 }
 0x15e   : > { %v1128_v28 = vmul.f32 %v1127_v27, %v1111_v12 }
 0x160   : > { %v1132_v30 = vmul.f32 %v3635_v26, %v1128_v28 }
 0x162   : > { %v1136_v31 = vadd.f32 %v3636_v29, %v1132_v30 }
 0x164   : > { %v1147_v32 = vpack.c.bf16 %v1136_v31, %v1136_v31 }
 0x166   : > { %3438 = vmatmul.msk.bf16.vlgmr.msra.gmra.mxu0 %vm1099_vm1, %v1147_v32 }
 0x1e3   : > { %v1175_v34 = vpop.f32.mrf.mxu0 }
 0x1e4   : > { %v1176_v35 = vadd.f32 %v3637_v33, %v1175_v34 }
 0x1e6   : > { %v1303_v36 = vpack.c.bf16 %v1176_v35, %v1176_v35  ;;  %v1179_v38 = vmul.f32 0.35355338, %v1176_v35 }
 0x1e8   : > { %1309 = vrot.lane.b32.xlu2 %v1303_v36, %s3826_s22  ;;  %1305 = vrot.lane.b32.xlu1 %v1303_v36, %s3827_s19  ;;  %v1180_v39 = vpack.c.bf16 %v1179_v38, %v1179_v38 }
 0x1ea   : > { %v1191_v63 = vshrl.u32 %v1180_v39, 16 }
 0x1eb   : > { %v1177_v37 = vpop.f32.mrf.mxu0 }
 0x1f0   : > { %1311 = vrot.lane.b32.xlu2 %v1303_v36, %s3828_s3  ;;  %1307 = vrot.lane.b32.xlu1 %v1303_v36, %s3829_s4 }
 0x1f8   : > { %1182 = vrot.lane.b32.xlu1 %v1180_v39, %s3827_s19 }
 0x242   : > { %v4168_v40 = vpop.permute.xlu2 %1309 }
 0x243   : > { %1317 = vrot.lane.b32.xlu2 %v4168_v40, %s3828_s3 }
 0x24a   : > { %v1312_v43 = vpop.permute.xlu2 %1311 }
 0x24b   : > { %1184 = vrot.lane.b32.xlu2 %v1180_v39, %s3829_s4  ;;  %v1322_v49 = vshrl.u32 %v1312_v43, 16 }
 0x25a   : > { %v4173_v41 = vpop.permute.xlu1 %1305 }
 0x25b   : > { %1313 = vrot.lane.b32.xlu0 %v4173_v41, %s3828_s3 }
 0x262   : > { %v4177_v42 = vpop.permute.xlu1 %1307 }
 0x263   : > { %1433 = vrot.lane.b32.xlu0 %v1303_v36, %s3830_s9  ;;  %1315 = vrot.lane.b32.xlu1 %v4177_v42, %s3828_s3 }
 0x26a   : > { %v1183_v44 = vpop.permute.xlu1 %1182 }
 0x26b   : > { %1186 = vrot.lane.b32.xlu1 %v1180_v39, %s3826_s22  ;;  %v1192_v57 = vshrl.u32 %v1183_v44, 16  ;;  %v1190_v1 = vpack.i.b16 %v1183_v44, %v1180_v39 }
 0x26d   : > { %v1193_v5 = vpack.i.b16 %v1192_v57, %v1191_v63  ;;  %v1204_v13 = vperm.slane %v1190_v1, %v4183_v52 }
 0x26f   : > { %v1231_v17 = vperm.slane %v1193_v5, %v4183_v52  ;;  %v1213_v30 = vrot.slane %v1204_v13, 4 }
 0x271   : > { %v1239_v34 = vrot.slane %v1231_v17, 4 }
 0x29d   : > { %v1318_v51 = vpop.permute.xlu2 %1317 }
 0x29e   : > { %v1329_v59 = vshrl.u32 %v1318_v51, 16 }
 0x2a5   : > { %v1185_v11 = vpop.permute.xlu2 %1184 }
 0x2a6   : > { %v1197_v22 = vshrl.u32 %v1185_v11, 16 }
 0x2cd   : > { %v1314_v45 = vpop.permute.xlu0 %1313 }
 0x2ce   : > { %v1323_v48 = vshrl.u32 %v1314_v45, 16  ;;  %v1321_v50 = vpack.i.b16 %v1314_v45, %v1312_v43 }
 0x2d0   : > { %v1324_v53 = vpack.i.b16 %v1323_v48, %v1322_v49  ;;  %v1335_v56 = vperm.slane %v1321_v50, %v4183_v52 }
 0x2d2   : > { %v1361_v60 = vperm.slane %v1324_v53, %v4183_v52  ;;  %v1343_v2 = vrot.slane %v1335_v56, 4 }
 0x2d4   : > { %v1369_v6 = vrot.slane %v1361_v60, 4 }
 0x2d5   : > { %v1316_v58 = vpop.permute.xlu1 %1315 }
 0x2d6   : > { %v1327_v61 = vpack.i.b16 %v1318_v51, %v1316_v58  ;;  %v1328_v62 = vshrl.u32 %v1316_v58, 16 }
 0x2d8   : > { %v1330_v3 = vpack.i.b16 %v1329_v59, %v1328_v62  ;;  %v1340_v4 = vperm.slane %v1327_v61, %v4183_v52 }
 0x2da   : > { %v1341_v7 = vrot.slane %v1340_v4, 4  ;;  %v1344_v8 = vsel %vm1211_vm6, %v1340_v4, %v1343_v2  ;;  %v1366_v10 = vperm.slane %v1330_v3, %v4183_v52 }
 0x2db   : > { %v1352_v12 = vperm.slane %v1344_v8, %v4187_v0 }
 0x2dc   : > { %v1342_v14 = vsel %vm1211_vm6, %v1341_v7, %v1335_v56  ;;  %v1367_v15 = vrot.slane %v1366_v10, 4  ;;  %v1370_v16 = vsel %vm1211_vm6, %v1366_v10, %v1369_v6 }
 0x2dd   : > { %v1348_v18 = vperm.slane %v1342_v14, %v4187_v0  ;;  %v1355_v19 = vrot.slane %v1352_v12, 4  ;;  %v1378_v20 = vperm.slane %v1370_v16, %v4187_v0  ;;  %v1187_v21 = vpop.permute.xlu1 %1186 }
 0x2de   : > { %v1368_v23 = vsel %vm1211_vm6, %v1367_v15, %v1361_v60  ;;  %v1196_v24 = vpack.i.b16 %v1187_v21, %v1185_v11  ;;  %v1198_v25 = vshrl.u32 %v1187_v21, 16 }
 0x2df   : > { %v1353_v26 = vrot.slane %v1348_v18, 4  ;;  %v1356_v27 = vsel %vm1211_vm6, 0, %v1355_v19  ;;  %v1374_v28 = vperm.slane %v1368_v23, %v4187_v0  ;;  %v1381_v29 = vrot.slane %v1378_v20, 4 }
 0x2e0   : > { %v1388_v31 = vrot.slane %v1356_v27, 4  ;;  %v1199_v32 = vpack.i.b16 %v1198_v25, %v1197_v22  ;;  %v1209_v33 = vperm.slane %v1196_v24, %v4183_v52  ;;  %v1383_v47 = vsel %vm1211_vm6, %v1355_v19, %v1348_v18 }
 0x2e1   : > { %v1354_v35 = vsel %vm1211_vm6, 0, %v1353_v26  ;;  %v1379_v36 = vrot.slane %v1374_v28, 4  ;;  %v1382_v37 = vsel %vm1211_vm6, 0, %v1381_v29  ;;  %v1402_v57 = vsel %vm1211_vm6, %v1381_v29, %v1374_v28 }
 0x2e2   : > { %v1407_v38 = vrot.slane %v1382_v37, 4  ;;  %v1210_v39 = vrot.slane %v1209_v33, 4  ;;  %v1214_v43 = vsel %vm1211_vm6, %v1209_v33, %v1213_v30  ;;  %v1236_v44 = vperm.slane %v1199_v32, %v4183_v52 }
 0x2e3   : > { %v1222_v45 = vperm.slane %v1214_v43, %v4187_v0  ;;  %v1380_v46 = vsel %vm1211_vm6, 0, %v1379_v36  ;;  %v1389_v48 = vsel %vm1211_vm6, %v1388_v31, %v1354_v35  ;;  %v1387_v59 = vperm.slane %v1383_v47, %v4183_v52 }
 0x2e4   : > { %v1212_v49 = vsel %vm1211_vm6, %v1210_v39, %v1204_v13  ;;  %v1237_v50 = vrot.slane %v1236_v44, 4  ;;  %v1240_v51 = vsel %vm1211_vm6, %v1236_v44, %v1239_v34  ;;  %v1393_v53 = vperm.slane %v1389_v48, %v4183_v52 }
 0x2e5   : > { %v1218_v54 = vperm.slane %v1212_v49, %v4187_v0  ;;  %v1225_v55 = vrot.slane %v1222_v45, 4  ;;  %v1248_v56 = vperm.slane %v1240_v51, %v4187_v0  ;;  %v1408_v61 = vsel %vm1211_vm6, %v1407_v38, %v1380_v46 }
 0x2e6   : > { %v1238_v58 = vsel %vm1211_vm6, %v1237_v50, %v1231_v17  ;;  %v1394_v60 = vrot.slane %v1393_v53, 4  ;;  %v1406_v5 = vperm.slane %v1402_v57, %v4183_v52  ;;  %v1412_v6 = vperm.slane %v1408_v61, %v4183_v52 }
 0x2e7   : > { %v1223_v62 = vrot.slane %v1218_v54, 4  ;;  %v1226_v63 = vsel %vm1211_vm6, 0, %v1225_v55  ;;  %v1244_v1 = vperm.slane %v1238_v58, %v4187_v0  ;;  %v1251_v2 = vrot.slane %v1248_v56, 4 }
 0x2e8   : > { %v1258_v3 = vrot.slane %v1226_v63, 4  ;;  %v1395_v4 = vsel %vm1211_vm6, %v1394_v60, %v1387_v59  ;;  %v1253_v12 = vsel %vm1211_vm6, %v1225_v55, %v1218_v54  ;;  %v1413_v14 = vrot.slane %v1412_v6, 4 }
 0x2e9   : > { %v1224_v7 = vsel %vm1211_vm6, 0, %v1223_v62  ;;  %v1249_v8 = vrot.slane %v1244_v1, 4  ;;  %v1252_v10 = vsel %vm1211_vm6, 0, %v1251_v2  ;;  %v1399_v11 = vperm.slane %v1395_v4, %v4187_v0 }
 0x2ea   : > { %v1277_v13 = vrot.slane %v1252_v10, 4  ;;  %v1259_v15 = vsel %vm1211_vm6, %v1258_v3, %v1224_v7  ;;  %v1414_v19 = vsel %vm1211_vm6, %v1413_v14, %v1406_v5  ;;  %v1257_v22 = vperm.slane %v1253_v12, %v4183_v52 }
 0x2eb   : > { %v1250_v16 = vsel %vm1211_vm6, 0, %v1249_v8  ;;  %v1400_v17 = vrot.slane %v1399_v11, 4  ;;  %v1263_v18 = vperm.slane %v1259_v15, %v4183_v52  ;;  %v1418_v21 = vperm.slane %v1414_v19, %v4187_v0 }
 0x2ec   : > { %v1278_v20 = vsel %vm1211_vm6, %v1277_v13, %v1250_v16  ;;  %v1272_v24 = vsel %vm1211_vm6, %v1251_v2, %v1244_v1  ;;  %v1424_v25 = vshrl.u32 %v1399_v11, 16  ;;  %v1555_v63 = vlaneseq }
 0x2ed   : > { %v1264_v23 = vrot.slane %v1263_v18, 4  ;;  %v1401_v26 = vsel %vm1211_vm6, 0, %v1400_v17  ;;  %v1282_v27 = vperm.slane %v1278_v20, %v4183_v52  ;;  %v1423_v28 = vpack.i.b16 %v1418_v21, %v1399_v11 }
 0x2ee   : > { %v1425_v29 = vshrl.u32 %v1418_v21, 16  ;;  %v1419_v30 = vrot.slane %v1418_v21, 4  ;;  %v1276_v33 = vperm.slane %v1272_v24, %v4183_v52  ;;  %v1430_v39 = vshrl.u32 %v1401_v26, 16 }
 0x2ef   : > { %v1265_v31 = vsel %vm1211_vm6, %v1264_v23, %v1257_v22  ;;  %v1283_v34 = vrot.slane %v1282_v27, 4  ;;  %v1566_v35 = vsel %vm1561_vm7, %v1423_v28, 0  ;;  %v1556_v1 = vshrl.u32 %v1555_v63, 7  ;;  %v1434_v22 = vpop.permute.xlu0 %1433 }
 0x2f0   : > { %v1269_v32 = vperm.slane %v1265_v31, %v4187_v0  ;;  %v1426_v36 = vpack.i.b16 %v1425_v29, %v1424_v25  ;;  %v1420_v37 = vsel %vm1211_vm6, 0, %v1419_v30  ;;  %1575 = vmatpush.bf16.xpose.msra.mxu1 %v1566_v35  ;;  %v1558_v2 = vand.u32 127, %v1555_v63 }
 0x2f1   : > { %v1429_v38 = vpack.i.b16 %v1420_v37, %v1401_v26  ;;  %v1431_v43 = vshrl.u32 %v1420_v37, 16  ;;  %v1284_v44 = vsel %vm1211_vm6, %v1283_v34, %v1276_v33  ;;  %v3833_v3 = vmov -1e+30  }
 0x2f2   : > { %v1585_v45 = vsel %vm1561_vm7, %v1426_v36, 0  ;;  %v1288_v46 = vperm.slane %v1284_v44, %v4187_v0  ;;  %v1270_v47 = vrot.slane %v1269_v32, 4  ;;  %v1294_v50 = vshrl.u32 %v1269_v32, 16 }
 0x2f3   : > { %1594 = vmatpush.bf16.xpose.msra.mxu2 %v1585_v45  ;;  %v1604_v48 = vsel %vm1561_vm7, %v1429_v38, 0  ;;  %v1432_v49 = vpack.i.b16 %v1431_v43, %v1430_v39  ;;  %vm1559_vm8 = vcmp.le.s32.totalorder %v1558_v2, %v1556_v1  ;;  %v1444_v37 = vshrl.u32 %v1434_v22, 16 }
 0x2f4   : > { %1613 = vmatpush.bf16.xpose.msra.mxu3 %v1604_v48  ;;  %v1293_v51 = vpack.i.b16 %v1288_v46, %v1269_v32  ;;  %v1295_v53 = vshrl.u32 %v1288_v46, 16  ;;  %v1271_v54 = vsel %vm1211_vm6, 0, %v1270_v47  ;;  %v1289_v55 = vrot.slane %v1288_v46, 4 }
 0x2f5   : > { %v1623_v56 = vsel %vm1561_vm7, %v1432_v49, 0  ;;  %v1300_v60 = vshrl.u32 %v1271_v54, 16  ;;  %v1560_v4 = vsel %vm1559_vm8, 0.0, %v3833_v3 }
 0x2f6   : > { %1632 = vmatpush.bf16.xpose.msrb.mxu0 %v1623_v56  ;;  %v1296_v57 = vpack.i.b16 %v1295_v53, %v1294_v50  ;;  %v1290_v58 = vsel %vm1211_vm6, 0, %v1289_v55 }
 0x2f7   : > { %v1299_v59 = vpack.i.b16 %v1290_v58, %v1271_v54  ;;  %v1301_v61 = vshrl.u32 %v1290_v58, 16  ;;  %3439 = vmatmul.msk.bf16.vlgmr.msra.gmra.mxu1 %vm1561_vm7, %v1293_v51 }
 0x2f9   : > { %v1302_v62 = vpack.i.b16 %v1301_v61, %v1300_v60 }
 0x2fa   : > { %3440 = vmatmul.msk.bf16.vlgmr.msra.gmra.mxu2 %vm1561_vm7, %v1296_v57 }
 0x2fb   : > { %3441 = vmatmul.msk.bf16.vlgmr.msra.gmra.mxu3 %vm1561_vm7, %v1299_v59 }
 0x2fd   : > { %3442 = vmatmul.msk.bf16.vlgmr.msrb.gmra.mxu0 %vm1561_vm7, %v1302_v62 }
 0x374   : > { %v1577_v5 = vpop.f32.mrf.mxu1 }
 0x375   : > { %v1578_v6 = vadd.f32 %v1577_v5, %v1560_v4 }
 0x377   : > { %v1638_v7 = vsel %vm1561_vm7, %v1578_v6, -inf }
 0x378   : > { %1639 = vmax.xlane.f32.xlu1 %v1638_v7 }
 0x37a   : > { %v1634_v8 = vpop.f32.mrf.mxu0 }
 0x37b   : > { %v1635_v10 = vadd.f32 %v1634_v8, %v1560_v4 }
 0x37c   : > { %v1579_v11 = vpop.f32.mrf.mxu1 }
 0x37d   : > { %v1596_v12 = vpop.f32.mrf.mxu2  ;;  %v1647_v13 = vsel %vm1561_vm7, %v1635_v10, -inf }
 0x37e   : > { %v1597_v14 = vadd.f32 %v1596_v12, %v1560_v4  ;;  %1648 = vmax.xlane.f32.xlu2 %v1647_v13  ;;  %v1615_v15 = vpop.f32.mrf.mxu3 }
 0x37f   : > { %v1616_v17 = vadd.f32 %v1615_v15, %v1560_v4 }
 0x380   : > { %v1641_v16 = vsel %vm1561_vm7, %v1597_v14, -inf }
 0x381   : > { %1642 = vmax.xlane.f32.xlu0 %v1641_v16  ;;  %v1644_v20 = vsel %vm1561_vm7, %v1616_v17, -inf }
 0x382   : > { %v1636_v18 = vpop.f32.mrf.mxu0 }
 0x385   : > { %v1598_v19 = vpop.f32.mrf.mxu2 }
 0x386   : > { %v1617_v21 = vpop.f32.mrf.mxu3  ;;  %1645 = vmax.xlane.f32.xlu2 %v1644_v20 }
 0x391   : > { %1437 = vrot.lane.b32.xlu1 %v4177_v42, %s3830_s9 }
 0x395   : > { %1439 = vrot.lane.b32.xlu0 %v4168_v40, %s3830_s9 }
 0x39e   : > { %1435 = vrot.lane.b32.xlu2 %v4173_v41, %s3830_s9  ;;  %s4854_s9 = sld [smem:[#allocation35_spill]] }
 0x3eb   : > { %v1640_v23 = vpop.xlane.xlu1 %1639 }
 0x3ec   : > { %v1650_v24 = vsub.f32 %v1578_v6, %v1640_v23 }
 0x3ee   : > { %v1654_v25 = vmul.f32 1.442695, %v1650_v24 }
 0x3f0   : > { %3651 = vpow2.f32 %v1654_v25 }
 0x3f1   : > { %v1649_v26 = vpop.xlane.xlu2 %1648 }
 0x3f2   : > { %v1653_v32 = vsub.f32 %v1635_v10, %v1649_v26 }
 0x3f4   : > { %v1643_v27 = vpop.xlane.xlu0 %1642  ;;  %v1660_v34 = vmul.f32 1.442695, %v1653_v32 }
 0x3f5   : > { %v1651_v28 = vsub.f32 %v1597_v14, %v1643_v27 }
 0x3f6   : > { %v4265_v29 = vpop.eup %3651 }
 0x3f7   : > { %v1656_v30 = vmul.f32 1.442695, %v1651_v28  ;;  %v1662_v42 = vsel %vm1561_vm7, %v4265_v29, 0.0 }
 0x3f8   : > { %1663 = vadd.xlane.f32.xlu1 %v1662_v42 }
 0x3f9   : > { %3653 = vpow2.f32 %v1656_v30  ;;  %v1646_v40 = vpop.xlane.xlu2 %1645 }
 0x3fa   : > { %v1652_v31 = vsub.f32 %v1616_v17, %v1646_v40 }
 0x3fc   : > { %v1658_v41 = vmul.f32 1.442695, %v1652_v31 }
 0x3fe   : > { %3655 = vpow2.f32 %v1658_v41 }
 0x3ff   : > { %v4269_v33 = vpop.eup %3653  ;;  %3657 = vpow2.f32 %v1660_v34 }
 0x400   : > { %v1665_v35 = vsel %vm1561_vm7, %v4269_v33, 0.0 }
 0x401   : > { %1666 = vadd.xlane.f32.xlu0 %v1665_v35  ;;  %v1436_v36 = vpop.permute.xlu2 %1435 }
 0x402   : > { %v1443_v38 = vpack.i.b16 %v1436_v36, %v1434_v22  ;;  %v1445_v39 = vshrl.u32 %v1436_v36, 16 }
 0x403   : > { %v1438_v45 = vpop.permute.xlu1 %1437 }
 0x404   : > { %v4273_v43 = vpop.eup %3655  ;;  %v1446_v44 = vpack.i.b16 %v1445_v39, %v1444_v37  ;;  %v1457_v47 = vperm.slane %v1443_v38, %v4183_v52  ;;  %v1450_v50 = vshrl.u32 %v1438_v45, 16 }
 0x405   : > { %v1668_v46 = vsel %vm1561_vm7, %v4273_v43, 0.0  ;;  %v4279_v54 = vpop.eup %3657 }
 0x406   : > { %1669 = vadd.xlane.f32.xlu2 %v1668_v46  ;;  %v1483_v49 = vperm.slane %v1446_v44, %v4183_v52  ;;  %v1465_v55 = vrot.slane %v1457_v47, 4  ;;  %v1671_v63 = vsel %vm1561_vm7, %v4279_v54, 0.0 }
 0x407   : > { %v1440_v48 = vpop.permute.xlu0 %1439 }
 0x408   : > { %v1449_v51 = vpack.i.b16 %v1440_v48, %v1438_v45  ;;  %v1451_v53 = vshrl.u32 %v1440_v48, 16  ;;  %v1491_v58 = vrot.slane %v1483_v49, 4 }
 0x40a   : > { %v1452_v56 = vpack.i.b16 %v1451_v53, %v1450_v50  ;;  %v1462_v57 = vperm.slane %v1449_v51, %v4183_v52 }
 0x40c   : > { %v1463_v59 = vrot.slane %v1462_v57, 4  ;;  %v1466_v60 = vsel %vm1211_vm6, %v1462_v57, %v1465_v55  ;;  %v1488_v61 = vperm.slane %v1452_v56, %v4183_v52 }
 0x40d   : > { %v1474_v62 = vperm.slane %v1466_v60, %v4187_v0 }
 0x40e   : > { %v1464_v1 = vsel %vm1211_vm6, %v1463_v59, %v1457_v47  ;;  %v1489_v2 = vrot.slane %v1488_v61, 4  ;;  %v1492_v3 = vsel %vm1211_vm6, %v1488_v61, %v1491_v58  ;;  %1672 = vadd.xlane.f32.xlu2 %v1671_v63 }
 0x40f   : > { %v1470_v4 = vperm.slane %v1464_v1, %v4187_v0  ;;  %v1477_v5 = vrot.slane %v1474_v62, 4  ;;  %v1500_v6 = vperm.slane %v1492_v3, %v4187_v0 }
 0x410   : > { %v1490_v7 = vsel %vm1211_vm6, %v1489_v2, %v1483_v49 }
 0x411   : > { %v1475_v8 = vrot.slane %v1470_v4, 4  ;;  %v1478_v10 = vsel %vm1211_vm6, 0, %v1477_v5  ;;  %v1496_v11 = vperm.slane %v1490_v7, %v4187_v0  ;;  %v1503_v12 = vrot.slane %v1500_v6, 4 }
 0x412   : > { %v1510_v13 = vrot.slane %v1478_v10, 4  ;;  %v1505_v18 = vsel %vm1211_vm6, %v1477_v5, %v1470_v4 }
 0x413   : > { %v1476_v14 = vsel %vm1211_vm6, 0, %v1475_v8  ;;  %v1501_v15 = vrot.slane %v1496_v11, 4  ;;  %v1504_v16 = vsel %vm1211_vm6, 0, %v1503_v12  ;;  %v1524_v22 = vsel %vm1211_vm6, %v1503_v12, %v1496_v11 }
 0x414   : > { %v1529_v17 = vrot.slane %v1504_v16, 4  ;;  %v1511_v19 = vsel %vm1211_vm6, %v1510_v13, %v1476_v14  ;;  %v1509_v24 = vperm.slane %v1505_v18, %v4183_v52  ;;  %v1528_v28 = vperm.slane %v1524_v22, %v4183_v52 }
 0x415   : > { %v1502_v20 = vsel %vm1211_vm6, 0, %v1501_v15  ;;  %v1515_v21 = vperm.slane %v1511_v19, %v4183_v52 }
 0x416   : > { %v1530_v23 = vsel %vm1211_vm6, %v1529_v17, %v1502_v20 }
 0x417   : > { %v1516_v25 = vrot.slane %v1515_v21, 4  ;;  %v1534_v26 = vperm.slane %v1530_v23, %v4183_v52 }
 0x419   : > { %v1517_v27 = vsel %vm1211_vm6, %v1516_v25, %v1509_v24  ;;  %v1535_v30 = vrot.slane %v1534_v26, 4 }
 0x41a   : > { %v1521_v42 = vperm.slane %v1517_v27, %v4187_v0 }
 0x41b   : > { %v1536_v40 = vsel %vm1211_vm6, %v1535_v30, %v1528_v28 }
 0x41c   : > { %v1540_v31 = vperm.slane %v1536_v40, %v4187_v0  ;;  %v1522_v32 = vrot.slane %v1521_v42, 4  ;;  %v1546_v41 = vshrl.u32 %v1521_v42, 16 }
 0x41e   : > { %v1545_v34 = vpack.i.b16 %v1540_v31, %v1521_v42  ;;  %v1547_v35 = vshrl.u32 %v1540_v31, 16  ;;  %v1523_v36 = vsel %vm1211_vm6, 0, %v1522_v32  ;;  %v1541_v37 = vrot.slane %v1540_v31, 4 }
 0x41f   : > { %v1552_v46 = vshrl.u32 %v1523_v36, 16 }
 0x420   : > { %v1743_v38 = vsel %vm1741_vm9, %v1545_v34, 0  ;;  %v1548_v39 = vpack.i.b16 %v1547_v35, %v1546_v41  ;;  %v1542_v44 = vsel %vm1211_vm6, 0, %v1541_v37 }
 0x421   : > { %1752 = vmatpush.bf16.msrb.mxu1 %v1743_v38  ;;  %v1551_v45 = vpack.i.b16 %v1542_v44, %v1523_v36  ;;  %v1553_v47 = vshrl.u32 %v1542_v44, 16 }
 0x422   : > { %v1762_v48 = vsel %vm1741_vm9, %v1548_v39, 0 }
 0x423   : > { %1771 = vmatpush.bf16.msrb.mxu2 %v1762_v48  ;;  %v1781_v49 = vsel %vm1741_vm9, %v1551_v45, 0  ;;  %v1554_v50 = vpack.i.b16 %v1553_v47, %v1552_v46 }
 0x424   : > { %1790 = vmatpush.bf16.msrb.mxu3 %v1781_v49 }
 0x425   : > { %v1800_v51 = vsel %vm1741_vm9, %v1554_v50, 0 }
 0x426   : > { %1809 = vmatpush.bf16.msra.mxu0 %v1800_v51 }
 0x46b   : > { %v1664_v53 = vpop.xlane.xlu1 %1663 }
 0x46c   : > { %3659 = vrcp.f32 %v1664_v53  ;;  %v1685_v59 = vand.u32 2147483648, %v1664_v53  ;;  %v1683_v61 = vand.u32 2147483647, %v1664_v53  ;;  %vm1679_vm11 = vweird.f32 %v1664_v53 }
 0x46e   : > { %v1686_v2 = vor.u32 1.1754944e-38, %v1685_v59  ;;  %vm1684_vm13 = vcmp.eq.f32.partialorder %v1683_v61, 8.507059e+37 }
 0x472   : > { %v3660_v55 = vpop.eup %3659 }
 0x473   : > { %v1675_v56 = vmul.f32 %v3660_v55, %v1664_v53  ;;  %vm1680_vm10 = vweird.f32 %v3660_v55 }
 0x474   : > { %v1667_v57 = vpop.xlane.xlu0 %1666  ;;  %vm1681_vm12 = vmor %vm1679_vm11, %vm1680_vm10 }
 0x475   : > { %3661 = vrcp.f32 %v1667_v57  ;;  %v1676_v58 = vsub.f32 1.0, %v1675_v56  ;;  %v1700_v8 = vand.u32 2147483648, %v1667_v57  ;;  %v1698_v12 = vand.u32 2147483647, %v1667_v57 }
 0x476   : > { %vm1694_vm15 = vweird.f32 %v1667_v57 }
 0x477   : > { %v1677_v60 = vmul.f32 %v3660_v55, %v1676_v58  ;;  %v1701_v17 = vor.u32 1.1754944e-38, %v1700_v8  ;;  %vm1699_vm2 = vcmp.eq.f32.partialorder %v1698_v12, 8.507059e+37 }
 0x479   : > { %v1670_v62 = vpop.xlane.xlu2 %1669  ;;  %v1678_v63 = vadd.f32 %v3660_v55, %v1677_v60 }
 0x47a   : > { %3663 = vrcp.f32 %v1670_v62  ;;  %v1715_v19 = vand.u32 2147483648, %v1670_v62  ;;  %v1713_v21 = vand.u32 2147483647, %v1670_v62  ;;  %vm1709_vm4 = vweird.f32 %v1670_v62 }
 0x47b   : > { %v3662_v1 = vpop.eup %3661  ;;  %v1682_v4 = vsel %vm1681_vm12, %v3660_v55, %v1678_v63 }
 0x47c   : > { %v1690_v3 = vmul.f32 %v3662_v1, %v1667_v57  ;;  %v1687_v5 = vsel %vm1684_vm13, %v1686_v2, %v1682_v4  ;;  %vm1695_vm14 = vweird.f32 %v3662_v1  ;;  %v1716_v26 = vor.u32 1.1754944e-38, %v1715_v19 }
 0x47d   : > { %v1688_v7 = vmul.f32 %v4265_v29, %v1687_v5  ;;  %vm1696_vm0 = vmor %vm1694_vm15, %vm1695_vm14  ;;  %vm1714_vm8 = vcmp.eq.f32.partialorder %v1713_v21, 8.507059e+37  ;;  %vm1939_vm14 = vcmask 130048   ;;  %vm1941_vm15 = vcmask 195584  }
 0x47e   : > { %v1691_v6 = vsub.f32 1.0, %v1690_v3 }
 0x47f   : > { %v1734_v13 = vpack.c.bf16 %v1688_v7, %v1688_v7 }
 0x480   : > { %v3664_v10 = vpop.eup %3663  ;;  %v1692_v11 = vmul.f32 %v3662_v1, %v1691_v6 }
 0x481   : > { %v1705_v14 = vmul.f32 %v3664_v10, %v1670_v62  ;;  %v1673_v15 = vpop.xlane.xlu2 %1672  ;;  %3443 = vmatmul.msk.bf16.vlgmr.msrb.gmra.mxu1 %vm1561_vm7, %v1734_v13  ;;  %vm1710_vm3 = vweird.f32 %v3664_v10 }
 0x482   : > { %v1693_v16 = vadd.f32 %v3662_v1, %v1692_v11  ;;  %3665 = vrcp.f32 %v1673_v15  ;;  %vm1711_vm5 = vmor %vm1709_vm4, %vm1710_vm3  ;;  %v1730_v32 = vand.u32 2147483648, %v1673_v15  ;;  %v1728_v34 = vand.u32 2147483647, %v1673_v15 }
 0x483   : > { %v1706_v18 = vsub.f32 1.0, %v1705_v14  ;;  %vm1724_vm11 = vweird.f32 %v1673_v15 }
 0x484   : > { %v1697_v20 = vsel %vm1696_vm0, %v3662_v1, %v1693_v16  ;;  %v1731_v36 = vor.u32 1.1754944e-38, %v1730_v32  ;;  %vm1729_vm13 = vcmp.eq.f32.partialorder %v1728_v34, 8.507059e+37 }
 0x485   : > { %v1707_v29 = vmul.f32 %v3664_v10, %v1706_v18  ;;  %v1702_v22 = vsel %vm1699_vm2, %v1701_v17, %v1697_v20 }
 0x486   : > { %v1703_v23 = vmul.f32 %v4269_v33, %v1702_v22 }
 0x487   : > { %v1708_v24 = vadd.f32 %v3664_v10, %v1707_v29 }
 0x488   : > { %v3666_v25 = vpop.eup %3665  ;;  %v1735_v27 = vpack.c.bf16 %v1703_v23, %v1703_v23 }
 0x489   : > { %v1720_v28 = vmul.f32 %v3666_v25, %v1673_v15  ;;  %v1712_v30 = vsel %vm1711_vm5, %v3664_v10, %v1708_v24  ;;  %vm1725_vm10 = vweird.f32 %v3666_v25 }
 0x48a   : > { %3444 = vmatmul.msk.bf16.vlgmr.msrb.gmra.mxu2 %vm1561_vm7, %v1735_v27  ;;  %v1717_v42 = vsel %vm1714_vm8, %v1716_v26, %v1712_v30  ;;  %vm1726_vm12 = vmor %vm1724_vm11, %vm1725_vm10 }
 0x48b   : > { %v1721_v40 = vsub.f32 1.0, %v1720_v28  ;;  %v1718_v31 = vmul.f32 %v4273_v43, %v1717_v42 }
 0x48d   : > { %v1722_v41 = vmul.f32 %v3666_v25, %v1721_v40  ;;  %v1736_v33 = vpack.c.bf16 %v1718_v31, %v1718_v31 }
 0x48f   : > { %v1723_v35 = vadd.f32 %v3666_v25, %v1722_v41  ;;  %3445 = vmatmul.msk.bf16.vlgmr.msrb.gmra.mxu3 %vm1561_vm7, %v1736_v33 }
 0x491   : > { %v1727_v37 = vsel %vm1726_vm12, %v3666_v25, %v1723_v35 }
 0x492   : > { %v1732_v38 = vsel %vm1729_vm13, %v1731_v36, %v1727_v37 }
 0x493   : > { %v1733_v39 = vmul.f32 %v4279_v54, %v1732_v38 }
 0x495   : > { %v1737_v44 = vpack.c.bf16 %v1733_v39, %v1733_v39 }
 0x497   : > { %3446 = vmatmul.msk.bf16.vlgmr.msra.gmra.mxu0 %vm1561_vm7, %v1737_v44 }
 0x4fe   : > { %v1754_v43 = vpop.f32.mrf.mxu1 }
 0x4ff   : > { %v1818_v47 = vrot.slane %v1754_v43, 4 }
 0x506   : > { %v1756_v45 = vpop.f32.mrf.mxu1 }
 0x50d   : > { %v1773_v46 = vpop.f32.mrf.mxu2 }
 0x50e   : > { %v1830_v49 = vrot.slane %v1773_v46, 4 }
 0x512   : > { %v1792_v48 = vpop.f32.mrf.mxu3 }
 0x513   : > { %v1815_v50 = vrot.slane %v1792_v48, 4  ;;  %v1819_v51 = vsel %vm1211_vm6, %v1792_v48, %v1818_v47 }
 0x514   : > { %v1827_v53 = vperm.slane %v1819_v51, %v4183_v52  ;;  %v1811_v55 = vpop.f32.mrf.mxu0 }
 0x515   : > { %v1817_v56 = vsel %vm1211_vm6, %v1815_v50, %v1754_v43  ;;  %v1828_v57 = vrot.slane %v1811_v55, 4  ;;  %v1831_v54 = vsel %vm1211_vm6, %v1811_v55, %v1830_v49  ;;  %v1775_v58 = vpop.f32.mrf.mxu2  ;;  %v3534_v55 = vld [vmem:[%s4847_s7 + $0x8] sm:$0xff] }
 0x516   : > { %v1823_v59 = vperm.slane %v1817_v56, %v4183_v52  ;;  %v1854_v60 = vrot.slane %v1827_v53, 4  ;;  %v1839_v61 = vperm.slane %v1831_v54, %v4183_v52  ;;  %1968 = vmatpush.bf16.msra.mxu1 %v3534_v55  ;;  %v3533_v56 = vld [vmem:[%s4847_s7] sm:$0xff]  ;;  %s4851_s7 = scalar_lea.vmem %s4755_s11, %s4044_s5 }
 0x517   : > { %v1829_v62 = vsel %vm1211_vm6, %v1828_v57, %v1773_v46 }
 0x518   : > { %v1842_v63 = vrot.slane %v1823_v59, 4  ;;  %v1835_v1 = vperm.slane %v1829_v62, %v4183_v52  ;;  %v1852_v2 = vrot.slane %v1839_v61, 4  ;;  %v1855_v3 = vsel %vm1211_vm6, %v1839_v61, %v1854_v60 }
 0x519   : > { %v1863_v4 = vperm.slane %v1855_v3, %v4187_v0 }
 0x51a   : > { %v1840_v5 = vrot.slane %v1835_v1, 4  ;;  %v1843_v6 = vsel %vm1211_vm6, %v1835_v1, %v1842_v63  ;;  %v1853_v7 = vsel %vm1211_vm6, %v1852_v2, %v1827_v53  ;;  %v1794_v8 = vpop.f32.mrf.mxu3  ;;  %1969 = vmatpush.bf16.msra.mxu1 %v3533_v56  ;;  %v3536_v63 = vld [vmem:[%s4092_s1 + $0x8] sm:$0xff]  ;;  %v3535_v1 = vld [vmem:[%s4092_s1] sm:$0xff] }
 0x51b   : > { %v1851_v10 = vperm.slane %v1843_v6, %v4187_v0  ;;  %v1859_v11 = vperm.slane %v1853_v7, %v4187_v0  ;;  %v1870_v12 = vrot.slane %v1863_v4, 4  ;;  %2044 = vmatpush.bf16.msra.mxu2 %v3536_v63  ;;  %v3638_v2 = vld [vmem:[%s4850_s30] ss:$0 sm:$0xff] }
 0x51c   : > { %v1841_v13 = vsel %vm1211_vm6, %v1840_v5, %v1823_v59  ;;  %v1813_v14 = vpop.f32.mrf.mxu0  ;;  %v3687_v5 = vld [vmem:[#allocation2] sm:$0xff] }
 0x51d   : > { %v1847_v15 = vperm.slane %v1841_v13, %v4187_v0  ;;  %v1866_v16 = vrot.slane %v1851_v10, 4  ;;  %v1868_v17 = vrot.slane %v1859_v11, 4  ;;  %v1871_v18 = vsel %vm1211_vm6, 0.0, %v1870_v12 }
 0x51e   : > { %v1883_v19 = vsel %vm1211_vm6, %v1870_v12, %v1859_v11  ;;  %v1888_v20 = vrot.slane %v1871_v18, 4  ;;  %v4390_v11 = vld [vmem:[%s4851_s7] ss:$0 sm:$0xff]  ;;  %s4855_s7 = scalar_lea.vmem %s4854_s9, %s4044_s5 }
 0x51f   : > { %v1864_v29 = vrot.slane %v1847_v15, 4  ;;  %v1867_v21 = vsel %vm1211_vm6, 0.0, %v1866_v16  ;;  %v1869_v22 = vsel %vm1211_vm6, 0.0, %v1868_v17  ;;  %v1887_v23 = vperm.slane %v1883_v19, %v4183_v52  ;;  %2045 = vmatpush.bf16.msra.mxu2 %v3535_v1  ;;  %v2008_v12 = vld [vmem:[%s4848_s21] sm:$0xff] }
 0x520   : > { %v1877_v24 = vrot.slane %v1867_v21, 4  ;;  %v1872_v25 = vsel %vm1211_vm6, %v1866_v16, %v1847_v15  ;;  %v1889_v26 = vsel %vm1211_vm6, %v1888_v20, %v1869_v22  ;;  %v2051_v14 = vpack.c.bf16 %v2008_v12, %v2008_v12 }
 0x521   : > { %v1865_v27 = vsel %vm1211_vm6, 0.0, %v1864_v29  ;;  %v1876_v28 = vperm.slane %v1872_v25, %v4183_v52  ;;  %v1893_v30 = vperm.slane %v1889_v26, %v4183_v52  ;;  %v1908_v42 = vrot.slane %v1887_v23, 4 }
 0x522   : > { %v1878_v40 = vsel %vm1211_vm6, %v1877_v24, %v1865_v27 }
 0x523   : > { %v1882_v31 = vperm.slane %v1878_v40, %v4183_v52  ;;  %v1896_v32 = vrot.slane %v1876_v28, 4  ;;  %v1909_v41 = vsel %vm1211_vm6, %v1893_v30, %v1908_v42  ;;  %v1906_v34 = vrot.slane %v1893_v30, 4 }
 0x524   : > { %v1917_v33 = vperm.slane %v1909_v41, %v4187_v0 }
 0x525   : > { %v1897_v35 = vsel %vm1211_vm6, %v1882_v31, %v1896_v32  ;;  %v1894_v36 = vrot.slane %v1882_v31, 4  ;;  %v1907_v37 = vsel %vm1211_vm6, %v1906_v34, %v1887_v23  ;;  %v3640_v32 = vld [vmem:[%s4853_s20] ss:$0 sm:$0xff] }
 0x526   : > { %v1905_v38 = vperm.slane %v1897_v35, %v4187_v0  ;;  %v1922_v39 = vrot.slane %v1917_v33, 4  ;;  %v1913_v44 = vperm.slane %v1907_v37, %v4187_v0 }
 0x527   : > { %v1895_v43 = vsel %vm1211_vm6, %v1894_v36, %v1876_v28 }
 0x528   : > { %v1923_v45 = vsel %vm1211_vm6, %v1922_v39, %v1905_v38  ;;  %v1924_v46 = vrot.slane %v1905_v38, 4  ;;  %v1901_v47 = vperm.slane %v1895_v43, %v4187_v0  ;;  %v1918_v48 = vrot.slane %v1913_v44, 4 }
 0x529   : > { %1931 = vrot.lane.b32.xlu1 %v1923_v45, %s3834_s8 }
 0x52a   : > { %v1925_v49 = vsel %vm1211_vm6, %v1917_v33, %v1924_v46  ;;  %v1920_v50 = vrot.slane %v1901_v47, 4  ;;  %v1919_v51 = vsel %vm1211_vm6, %v1918_v48, %v1901_v47  ;;  %v3641_v33 = vld [vmem:[%s4855_s7] ss:$0 sm:$0xff] }
 0x52b   : > { %1935 = vrot.lane.b32.xlu2 %v1925_v49, %s3835_s0 }
 0x52c   : > { %v1921_v53 = vsel %vm1211_vm6, %v1913_v44, %v1920_v50 }
 0x52d   : > { %1927 = vrot.lane.b32.xlu0 %v1921_v53, %s3836_s27 }
 0x533   : > { %2054 = vrot.lane.b32.xlu2 %v3536_v63, %s3828_s3 }
 0x53b   : > { %2052 = vrot.lane.b32.xlu2 %v3535_v1, %s3828_s3 }
 0x543   : > { %2058 = vrot.lane.b32.xlu2 %v4390_v11, %s3828_s3 }
 0x585   : > { %v1936_v59 = vpop.permute.xlu2 %1935 }
 0x58d   : > { %v2055_v10 = vpop.permute.xlu2 %2054 }
 0x58e   : > { %2070 = vmatpush.bf16.msra.mxu3 %v2055_v10 }
 0x595   : > { %v2053_v13 = vpop.permute.xlu2 %2052 }
 0x596   : > { %2071 = vmatpush.bf16.msra.mxu3 %v2053_v13 }
 0x599   : > { %3465 = vmatmul.msk.bf16.vlgmr.msra.gmra.mxu3 %vm1099_vm1, %v2051_v14 }
 0x59b   : > { %v1932_v54 = vpop.permute.xlu1 %1931 }
 0x59d   : > { %v2059_v29 = vpop.permute.xlu2 %2058 }
 0x59f   : > { %v1928_v57 = vpop.permute.xlu0 %1927 }
 0x5a0   : > { %v1938_v58 = vsel %vm1561_vm7, %v1919_v51, %v1928_v57 }
 0x5a1   : > { %v1940_v60 = vsel %vm1939_vm14, %v1938_v58, %v1932_v54 }
 0x5a2   : > { %v1942_v61 = vsel %vm1941_vm15, %v1940_v60, %v1936_v59 }
 0x5a3   : > { %v1943_v62 = vpack.c.bf16 %v1942_v61, %v1942_v61 }
 0x5a5   : > { %3455 = vmatmul.msk.bf16.vlgmr.msra.gmra.mxu1 %vm1099_vm1, %v1943_v62 }
 0x61c   : > { %v2073_v20 = vpop.f32.mrf.mxu3 }
 0x61d   : > { %v2074_v22 = vadd.f32 %v2073_v20, %v2059_v29 }
 0x61f   : > { %v4400_v24 = vpack.c.bf16 %v2074_v22, %v2074_v22 }
 0x621   : > { %2202 = vrot.lane.b32.xlu2 %v4400_v24, %s3827_s19  ;;  %v2211_v39 = vshrl.u32 %v4400_v24, 16 }
 0x622   : > { %v1971_v3 = vpop.f32.mrf.mxu1 }
 0x623   : > { %v1972_v4 = vadd.f32 %v3638_v2, %v1971_v3 }
 0x624   : > { %v2075_v26 = vpop.f32.mrf.mxu3 }
 0x625   : > { %v4381_v6 = vadd.f32 %v3687_v5, %v1972_v4 }
 0x627   : > { %v1978_v7 = vsel %vm1099_vm1, %v4381_v6, 0.0 }
 0x628   : > { %1979 = vadd.xlane.f32.xlu0 %v1978_v7 }
 0x629   : > { %2206 = vrot.lane.b32.xlu2 %v4400_v24, %s3826_s22 }
 0x62a   : > { %v1973_v8 = vpop.f32.mrf.mxu1 }
 0x63c   : > { %2204 = vrot.lane.b32.xlu0 %v4400_v24, %s3829_s4 }
 0x67b   : > { %v4419_v38 = vpop.permute.xlu2 %2202 }
 0x67c   : > { %v2212_v44 = vshrl.u32 %v4419_v38, 16  ;;  %v2210_v43 = vpack.i.b16 %v4419_v38, %v4400_v24 }
 0x67e   : > { %v2213_v45 = vpack.i.b16 %v2212_v44, %v2211_v39  ;;  %v2224_v47 = vperm.slane %v2210_v43, %v4183_v52 }
 0x680   : > { %v2250_v48 = vperm.slane %v2213_v45, %v4183_v52  ;;  %v2232_v51 = vrot.slane %v2224_v47, 4 }
 0x682   : > { %v2258_v56 = vrot.slane %v2250_v48, 4 }
 0x683   : > { %v4425_v46 = vpop.permute.xlu2 %2206 }
 0x684   : > { %v2218_v49 = vshrl.u32 %v4425_v46, 16 }
 0x69b   : > { %v1980_v15 = vpop.xlane.xlu0 %1979 }
 0x69c   : > { %v1981_v16 = vmul.f32 %v1980_v15, %v4140_v9 }
 0x69e   : > { %v1982_v17 = vsub.f32 %v4381_v6, %v1981_v16 }
 0x6a0   : > { %v1983_v18 = vmul.f32 %v1982_v17, %v1982_v17 }
 0x6a2   : > { %v1984_v19 = vsel %vm1099_vm1, %v1983_v18, 0.0 }
 0x6a3   : > { %1985 = vadd.xlane.f32.xlu1 %v1984_v19 }
 0x6ae   : > { %v4430_v50 = vpop.permute.xlu0 %2204 }
 0x6af   : > { %v2216_v53 = vpack.i.b16 %v4425_v46, %v4430_v50  ;;  %v2217_v55 = vshrl.u32 %v4430_v50, 16 }
 0x6b1   : > { %v2219_v57 = vpack.i.b16 %v2218_v49, %v2217_v55  ;;  %v2229_v54 = vperm.slane %v2216_v53, %v4183_v52 }
 0x6b3   : > { %v2230_v58 = vrot.slane %v2229_v54, 4  ;;  %v2233_v59 = vsel %vm1211_vm6, %v2229_v54, %v2232_v51  ;;  %v2255_v60 = vperm.slane %v2219_v57, %v4183_v52 }
 0x6b4   : > { %v2241_v61 = vperm.slane %v2233_v59, %v4187_v0 }
 0x6b5   : > { %v2231_v62 = vsel %vm1211_vm6, %v2230_v58, %v2224_v47  ;;  %v2256_v63 = vrot.slane %v2255_v60, 4  ;;  %v2259_v1 = vsel %vm1211_vm6, %v2255_v60, %v2258_v56 }
 0x6b6   : > { %v2237_v2 = vperm.slane %v2231_v62, %v4187_v0  ;;  %v2244_v3 = vrot.slane %v2241_v61, 4  ;;  %v2267_v4 = vperm.slane %v2259_v1, %v4187_v0 }
 0x6b7   : > { %v2257_v5 = vsel %vm1211_vm6, %v2256_v63, %v2250_v48 }
 0x6b8   : > { %v2263_v7 = vperm.slane %v2257_v5, %v4187_v0  ;;  %v2270_v8 = vrot.slane %v2267_v4, 4  ;;  %v2242_v10 = vrot.slane %v2237_v2, 4  ;;  %v2245_v12 = vsel %vm1211_vm6, 0, %v2244_v3 }
 0x6b9   : > { %v2277_v15 = vrot.slane %v2245_v12, 4  ;;  %v2272_v19 = vsel %vm1211_vm6, %v2244_v3, %v2237_v2 }
 0x6ba   : > { %v2268_v13 = vrot.slane %v2263_v7, 4  ;;  %v2271_v14 = vsel %vm1211_vm6, 0, %v2270_v8 }
 0x6bb   : > { %v2296_v16 = vrot.slane %v2271_v14, 4 }
 0x6bc   : > { %v2269_v18 = vsel %vm1211_vm6, 0, %v2268_v13 }
 0x6bd   : > { %v2297_v29 = vsel %vm1211_vm6, %v2296_v16, %v2269_v18 }
 0x6be   : > { %v2301_v22 = vperm.slane %v2297_v29, %v4183_v52 }
 0x716   : > { %v1986_v21 = vpop.xlane.xlu1 %1985 }
 0x717   : > { %v1987_v23 = vmul.f32 %v1986_v21, %v4140_v9 }
 0x719   : > { %v1988_v25 = vadd.f32 1e-05, %v1987_v23  ;;  %v2291_v23 = vsel %vm1211_vm6, %v2270_v8, %v2263_v7 }
 0x71b   : > { %3667 = vrsqrt.f32 %v1988_v25  ;;  %vm1995_vm2 = vweird.f32 %v1988_v25 }
 0x721   : > { %v3668_v27 = vpop.eup %3667 }
 0x722   : > { %v1990_v28 = vmul.f32 %v3668_v27, %v1988_v25  ;;  %vm1996_vm0 = vweird.f32 %v3668_v27  ;;  %v2276_v25 = vperm.slane %v2272_v19, %v4183_v52 }
 0x723   : > { %vm1997_vm3 = vmor %vm1995_vm2, %vm1996_vm0 }
 0x724   : > { %v1991_v30 = vmul.f32 %v3668_v27, %v1990_v28  ;;  %v2302_v28 = vrot.slane %v2301_v22, 4 }
 0x726   : > { %v1992_v42 = vmul.f32 0.5, %v1991_v30 }
 0x728   : > { %v1993_v40 = vsub.f32 1.5, %v1992_v42 }
 0x72a   : > { %v1994_v31 = vmul.f32 %v3668_v27, %v1993_v40 }
 0x72c   : > { %v1998_v41 = vsel %vm1997_vm3, %v3668_v27, %v1994_v31  ;;  %v2295_v27 = vperm.slane %v2291_v23, %v4183_v52 }
 0x72d   : > { %v1999_v34 = vmul.f32 %v1998_v41, %v1982_v17  ;;  %v2243_v17 = vsel %vm1211_vm6, 0, %v2242_v10 }
 0x72e   : > { %v2278_v20 = vsel %vm1211_vm6, %v2277_v15, %v2243_v17  ;;  %v2303_v42 = vsel %vm1211_vm6, %v2302_v28, %v2295_v27 }
 0x72f   : > { %v2003_v35 = vmul.f32 %v3640_v32, %v1999_v34  ;;  %v2282_v21 = vperm.slane %v2278_v20, %v4183_v52  ;;  %v2307_v31 = vperm.slane %v2303_v42, %v4187_v0 }
 0x731   : > { %v2007_v36 = vadd.f32 %v3641_v33, %v2003_v35  ;;  %v2283_v26 = vrot.slane %v2282_v21, 4  ;;  %v2314_v34 = vshrl.u32 %v2307_v31, 16  ;;  %v2308_v35 = vrot.slane %v2307_v31, 4 }
 0x733   : > { %v2019_v37 = vpack.c.bf16 %v2007_v36, %v2007_v36  ;;  %v2284_v30 = vsel %vm1211_vm6, %v2283_v26, %v2276_v25  ;;  %v2309_v44 = vsel %vm1211_vm6, 0, %v2308_v35 }
 0x734   : > { %v2288_v40 = vperm.slane %v2284_v30, %v4187_v0  ;;  %v2320_v48 = vshrl.u32 %v2309_v44, 16 }
 0x735   : > { %3464 = vmatmul.msk.bf16.vlgmr.msra.gmra.mxu2 %vm1099_vm1, %v2019_v37 }
 0x736   : > { %v2312_v32 = vpack.i.b16 %v2307_v31, %v2288_v40  ;;  %v2313_v41 = vshrl.u32 %v2288_v40, 16  ;;  %v2289_v33 = vrot.slane %v2288_v40, 4 }
 0x738   : > { %v2448_v36 = vsel %vm1561_vm7, %v2312_v32, 0  ;;  %v2315_v37 = vpack.i.b16 %v2314_v34, %v2313_v41  ;;  %v2290_v39 = vsel %vm1211_vm6, 0, %v2289_v33 }
 0x739   : > { %2457 = vmatpush.bf16.xpose.msrb.mxu0 %v2448_v36  ;;  %v2319_v43 = vshrl.u32 %v2290_v39, 16  ;;  %v2318_v47 = vpack.i.b16 %v2309_v44, %v2290_v39 }
 0x73a   : > { %v2467_v45 = vsel %vm1561_vm7, %v2315_v37, 0 }
 0x73b   : > { %2476 = vmatpush.bf16.xpose.msrb.mxu1 %v2467_v45  ;;  %v2486_v49 = vsel %vm1561_vm7, %v2318_v47, 0  ;;  %v2321_v51 = vpack.i.b16 %v2320_v48, %v2319_v43 }
 0x73c   : > { %2495 = vmatpush.bf16.xpose.msrb.mxu2 %v2486_v49 }
 0x73d   : > { %v2505_v53 = vsel %vm1561_vm7, %v2321_v51, 0 }
 0x73e   : > { %2514 = vmatpush.bf16.xpose.msrb.mxu3 %v2505_v53 }
 0x7b8   : > { %v2047_v55 = vpop.f32.mrf.mxu2 }
 0x7b9   : > { %v2048_v56 = vadd.f32 %v4390_v11, %v2047_v55 }
 0x7bb   : > { %v2077_v57 = vmul.f32 0.35355338, %v2048_v56 }
 0x7bd   : > { %v2078_v54 = vpack.c.bf16 %v2077_v57, %v2077_v57 }
 0x7bf   : > { %2082 = vrot.lane.b32.xlu2 %v2078_v54, %s3829_s4  ;;  %2080 = vrot.lane.b32.xlu1 %v2078_v54, %s3827_s19  ;;  %v2089_v5 = vshrl.u32 %v2078_v54, 16  ;;  %s4857_s4 = scalar_lea.vmem %s4758_s14, %s4044_s5 }
 0x7c0   : > { %v2049_v58 = vpop.f32.mrf.mxu2 }
 0x7c7   : > { %2084 = vrot.lane.b32.xlu2 %v2078_v54, %s3826_s22 }
 0x7cf   : > { %2322 = vrot.lane.b32.xlu2 %v4400_v24, %s3828_s3 }
 0x819   : > { %v2083_v59 = vpop.permute.xlu2 %2082 }
 0x81a   : > { %v2095_v62 = vshrl.u32 %v2083_v59, 16 }
 0x821   : > { %v2085_v60 = vpop.permute.xlu2 %2084 }
 0x822   : > { %v2096_v61 = vshrl.u32 %v2085_v60, 16  ;;  %v2094_v63 = vpack.i.b16 %v2085_v60, %v2083_v59 }
 0x824   : > { %v2097_v1 = vpack.i.b16 %v2096_v61, %v2095_v62  ;;  %v2107_v11 = vperm.slane %v2094_v63, %v4183_v52 }
 0x826   : > { %v2133_v3 = vperm.slane %v2097_v1, %v4183_v52  ;;  %v2108_v8 = vrot.slane %v2107_v11, 4 }
 0x828   : > { %v2134_v13 = vrot.slane %v2133_v3, 4 }
 0x831   : > { %v2081_v2 = vpop.permute.xlu1 %2080 }
 0x832   : > { %v2088_v4 = vpack.i.b16 %v2081_v2, %v2078_v54  ;;  %v2090_v7 = vshrl.u32 %v2081_v2, 16 }
 0x834   : > { %v2091_v10 = vpack.i.b16 %v2090_v7, %v2089_v5  ;;  %v2102_v12 = vperm.slane %v2088_v4, %v4183_v52 }
 0x836   : > { %v2109_v24 = vsel %vm1211_vm6, %v2108_v8, %v2102_v12  ;;  %v2110_v14 = vrot.slane %v2102_v12, 4  ;;  %v2128_v15 = vperm.slane %v2091_v10, %v4183_v52 }
 0x837   : > { %v2115_v16 = vperm.slane %v2109_v24, %v4187_v0 }
 0x838   : > { %v2111_v17 = vsel %vm1211_vm6, %v2107_v11, %v2110_v14  ;;  %v2135_v18 = vsel %vm1211_vm6, %v2134_v13, %v2128_v15  ;;  %v2136_v19 = vrot.slane %v2128_v15, 4 }
 0x839   : > { %v2119_v20 = vperm.slane %v2111_v17, %v4187_v0  ;;  %v2141_v29 = vperm.slane %v2135_v18, %v4187_v0  ;;  %v2120_v22 = vrot.slane %v2115_v16, 4  ;;  %v2323_v18 = vpop.permute.xlu2 %2322 }
 0x83a   : > { %v2137_v21 = vsel %vm1211_vm6, %v2133_v3, %v2136_v19 }
 0x83b   : > { %v2122_v23 = vrot.slane %v2119_v20, 4  ;;  %v2145_v25 = vperm.slane %v2137_v21, %v4187_v0  ;;  %v2146_v27 = vrot.slane %v2141_v29, 4  ;;  %v2121_v42 = vsel %vm1211_vm6, 0, %v2120_v22 }
 0x83d   : > { %v2123_v26 = vsel %vm1211_vm6, 0, %v2122_v23  ;;  %v2148_v28 = vrot.slane %v2145_v25, 4  ;;  %v2150_v31 = vsel %vm1211_vm6, %v2122_v23, %v2115_v16  ;;  %v2147_v34 = vsel %vm1211_vm6, 0, %v2146_v27 }
 0x83e   : > { %v2155_v30 = vrot.slane %v2123_v26, 4  ;;  %v2154_v37 = vperm.slane %v2150_v31, %v4183_v52 }
 0x83f   : > { %v2149_v40 = vsel %vm1211_vm6, 0, %v2148_v28  ;;  %v2169_v35 = vsel %vm1211_vm6, %v2148_v28, %v2141_v29 }
 0x840   : > { %v2156_v32 = vsel %vm1211_vm6, %v2155_v30, %v2121_v42  ;;  %v2174_v41 = vrot.slane %v2149_v40, 4  ;;  %v2173_v43 = vperm.slane %v2169_v35, %v4183_v52 }
 0x841   : > { %v2160_v33 = vperm.slane %v2156_v32, %v4183_v52 }
 0x842   : > { %v2175_v36 = vsel %vm1211_vm6, %v2174_v41, %v2147_v34 }
 0x843   : > { %v2161_v39 = vrot.slane %v2160_v33, 4  ;;  %v2179_v44 = vperm.slane %v2175_v36, %v4183_v52 }
 0x845   : > { %v2180_v45 = vrot.slane %v2179_v44, 4  ;;  %v2162_v47 = vsel %vm1211_vm6, %v2161_v39, %v2154_v37  ;;  %v2333_v37 = vshrl.u32 %v2323_v18, 16 }
 0x846   : > { %v2166_v48 = vperm.slane %v2162_v47, %v4187_v0 }
 0x847   : > { %v2181_v49 = vsel %vm1211_vm6, %v2180_v45, %v2173_v43 }
 0x848   : > { %v2185_v51 = vperm.slane %v2181_v49, %v4187_v0  ;;  %v2167_v53 = vrot.slane %v2166_v48, 4  ;;  %v2191_v55 = vshrl.u32 %v2166_v48, 16 }
 0x84a   : > { %v2190_v56 = vpack.i.b16 %v2185_v51, %v2166_v48  ;;  %v2192_v57 = vshrl.u32 %v2185_v51, 16  ;;  %v2168_v54 = vsel %vm1211_vm6, 0, %v2167_v53  ;;  %v2186_v58 = vrot.slane %v2185_v51, 4 }
 0x84b   : > { %v2197_v62 = vshrl.u32 %v2168_v54, 16 }
 0x84c   : > { %3466 = vmatmul.msk.bf16.vlgmr.msrb.gmra.mxu0 %vm1561_vm7, %v2190_v56  ;;  %v2193_v59 = vpack.i.b16 %v2192_v57, %v2191_v55  ;;  %v2187_v60 = vsel %vm1211_vm6, 0, %v2186_v58 }
 0x84d   : > { %v2196_v61 = vpack.i.b16 %v2187_v60, %v2168_v54  ;;  %v2198_v63 = vshrl.u32 %v2187_v60, 16 }
 0x84e   : > { %3467 = vmatmul.msk.bf16.vlgmr.msrb.gmra.mxu1 %vm1561_vm7, %v2193_v59 }
 0x84f   : > { %3468 = vmatmul.msk.bf16.vlgmr.msrb.gmra.mxu2 %vm1561_vm7, %v2196_v61  ;;  %v2199_v1 = vpack.i.b16 %v2198_v63, %v2197_v62 }
 0x851   : > { %3469 = vmatmul.msk.bf16.vlgmr.msrb.gmra.mxu3 %vm1561_vm7, %v2199_v1 }
 0x8c9   : > { %v2459_v11 = vpop.f32.mrf.mxu0 }
 0x8ca   : > { %v2520_v2 = vsel %vm1561_vm7, %v2459_v11, -inf }
 0x8cb   : > { %v2478_v3 = vpop.f32.mrf.mxu1  ;;  %2521 = vmax.xlane.f32.xlu1 %v2520_v2 }
 0x8cc   : > { %v2523_v4 = vsel %vm1561_vm7, %v2478_v3, -inf }
 0x8cd   : > { %2524 = vmax.xlane.f32.xlu0 %v2523_v4 }
 0x8d1   : > { %v2461_v5 = vpop.f32.mrf.mxu0 }
 0x8d2   : > { %v2497_v7 = vpop.f32.mrf.mxu2 }
 0x8d3   : > { %v2480_v8 = vpop.f32.mrf.mxu1  ;;  %v2526_v10 = vsel %vm1561_vm7, %v2497_v7, -inf }
 0x8d4   : > { %v2516_v12 = vpop.f32.mrf.mxu3 }
 0x8d5   : > { %2527 = vmax.xlane.f32.xlu0 %v2526_v10  ;;  %v2529_v13 = vsel %vm1561_vm7, %v2516_v12, -inf }
 0x8d6   : > { %2530 = vmax.xlane.f32.xlu2 %v2529_v13 }
 0x8da   : > { %v2499_v24 = vpop.f32.mrf.mxu2 }
 0x8dc   : > { %v2518_v14 = vpop.f32.mrf.mxu3 }
 0x8e4   : > { %2326 = vrot.lane.b32.xlu1 %v4430_v50, %s3828_s3 }
 0x8e9   : > { %2324 = vrot.lane.b32.xlu0 %v4419_v38, %s3828_s3 }
 0x8ee   : > { %2328 = vrot.lane.b32.xlu2 %v4425_v46, %s3828_s3  ;;  %s4856_s3 = scalar_lea.vmem %s4757_s13, %s4044_s5 }
 0x93e   : > { %v2522_v15 = vpop.xlane.xlu1 %2521 }
 0x93f   : > { %v2532_v16 = vsub.f32 %v2459_v11, %v2522_v15 }
 0x940   : > { %v2525_v17 = vpop.xlane.xlu0 %2524 }
 0x941   : > { %v2536_v19 = vmul.f32 1.442695, %v2532_v16  ;;  %v2533_v25 = vsub.f32 %v2478_v3, %v2525_v17 }
 0x943   : > { %3669 = vpow2.f32 %v2536_v19  ;;  %v2538_v46 = vmul.f32 1.442695, %v2533_v25 }
 0x948   : > { %v2528_v20 = vpop.xlane.xlu0 %2527 }
 0x949   : > { %v4517_v29 = vpop.eup %3669  ;;  %v2534_v21 = vsub.f32 %v2497_v7, %v2528_v20  ;;  %v2531_v22 = vpop.xlane.xlu2 %2530 }
 0x94a   : > { %v2535_v23 = vsub.f32 %v2516_v12, %v2531_v22  ;;  %v2544_v50 = vsel %vm1561_vm7, %v4517_v29, 0.0 }
 0x94b   : > { %v2540_v38 = vmul.f32 1.442695, %v2534_v21  ;;  %2545 = vadd.xlane.f32.xlu1 %v2544_v50 }
 0x94c   : > { %v2542_v26 = vmul.f32 1.442695, %v2535_v23 }
 0x94d   : > { %3671 = vpow2.f32 %v2540_v38 }
 0x94e   : > { %3673 = vpow2.f32 %v2542_v26 }
 0x94f   : > { %3675 = vpow2.f32 %v2538_v46 }
 0x951   : > { %v2329_v30 = vpop.permute.xlu2 %2328 }
 0x952   : > { %v2340_v32 = vshrl.u32 %v2329_v30, 16 }
 0x953   : > { %v4521_v27 = vpop.eup %3671 }
 0x954   : > { %v4523_v28 = vpop.eup %3673  ;;  %v2550_v42 = vsel %vm1561_vm7, %v4521_v27, 0.0 }
 0x955   : > { %2551 = vadd.xlane.f32.xlu0 %v2550_v42  ;;  %v2553_v40 = vsel %vm1561_vm7, %v4523_v28, 0.0  ;;  %v4529_v33 = vpop.eup %3675 }
 0x956   : > { %2554 = vadd.xlane.f32.xlu2 %v2553_v40  ;;  %v2327_v31 = vpop.permute.xlu1 %2326  ;;  %v2547_v47 = vsel %vm1561_vm7, %v4529_v33, 0.0 }
 0x957   : > { %v2338_v41 = vpack.i.b16 %v2329_v30, %v2327_v31  ;;  %v2339_v34 = vshrl.u32 %v2327_v31, 16 }
 0x959   : > { %v2341_v35 = vpack.i.b16 %v2340_v32, %v2339_v34  ;;  %v2351_v36 = vperm.slane %v2338_v41, %v4183_v52 }
 0x95b   : > { %v2325_v39 = vpop.permute.xlu0 %2324  ;;  %v2377_v44 = vperm.slane %v2341_v35, %v4183_v52  ;;  %v2352_v48 = vrot.slane %v2351_v36, 4 }
 0x95c   : > { %v2332_v43 = vpack.i.b16 %v2325_v39, %v2323_v18  ;;  %v2334_v45 = vshrl.u32 %v2325_v39, 16 }
 0x95d   : > { %2548 = vadd.xlane.f32.xlu0 %v2547_v47  ;;  %v2378_v53 = vrot.slane %v2377_v44, 4 }
 0x95e   : > { %v2335_v49 = vpack.i.b16 %v2334_v45, %v2333_v37  ;;  %v2346_v51 = vperm.slane %v2332_v43, %v4183_v52 }
 0x960   : > { %v2353_v55 = vsel %vm1211_vm6, %v2352_v48, %v2346_v51  ;;  %v2354_v56 = vrot.slane %v2346_v51, 4  ;;  %v2372_v57 = vperm.slane %v2335_v49, %v4183_v52 }
 0x961   : > { %v2359_v54 = vperm.slane %v2353_v55, %v4187_v0 }
 0x962   : > { %v2355_v58 = vsel %vm1211_vm6, %v2351_v36, %v2354_v56  ;;  %v2379_v59 = vsel %vm1211_vm6, %v2378_v53, %v2372_v57  ;;  %v2380_v60 = vrot.slane %v2372_v57, 4 }
 0x963   : > { %v2363_v61 = vperm.slane %v2355_v58, %v4187_v0  ;;  %v2385_v62 = vperm.slane %v2379_v59, %v4187_v0  ;;  %v2364_v1 = vrot.slane %v2359_v54, 4 }
 0x964   : > { %v2381_v63 = vsel %vm1211_vm6, %v2377_v44, %v2380_v60 }
 0x965   : > { %v2366_v11 = vrot.slane %v2363_v61, 4  ;;  %v2389_v2 = vperm.slane %v2381_v63, %v4187_v0  ;;  %v2390_v4 = vrot.slane %v2385_v62, 4  ;;  %v2365_v8 = vsel %vm1211_vm6, 0, %v2364_v1 }
 0x967   : > { %v2367_v3 = vsel %vm1211_vm6, 0, %v2366_v11  ;;  %v2392_v5 = vrot.slane %v2389_v2, 4  ;;  %v2394_v12 = vsel %vm1211_vm6, %v2366_v11, %v2359_v54  ;;  %v2391_v14 = vsel %vm1211_vm6, 0, %v2390_v4 }
 0x968   : > { %v2399_v7 = vrot.slane %v2367_v3, 4  ;;  %v2398_v18 = vperm.slane %v2394_v12, %v4183_v52 }
 0x969   : > { %v2393_v10 = vsel %vm1211_vm6, 0, %v2392_v5  ;;  %v2413_v16 = vsel %vm1211_vm6, %v2392_v5, %v2385_v62 }
 0x96a   : > { %v2400_v13 = vsel %vm1211_vm6, %v2399_v7, %v2365_v8  ;;  %v2418_v24 = vrot.slane %v2393_v10, 4  ;;  %v2417_v22 = vperm.slane %v2413_v16, %v4183_v52 }
 0x96b   : > { %v2404_v15 = vperm.slane %v2400_v13, %v4183_v52 }
 0x96c   : > { %v2419_v17 = vsel %vm1211_vm6, %v2418_v24, %v2391_v14 }
 0x96d   : > { %v2405_v19 = vrot.slane %v2404_v15, 4  ;;  %v2423_v20 = vperm.slane %v2419_v17, %v4183_v52 }
 0x96f   : > { %v2406_v21 = vsel %vm1211_vm6, %v2405_v19, %v2398_v18  ;;  %v2424_v23 = vrot.slane %v2423_v20, 4 }
 0x970   : > { %v2410_v50 = vperm.slane %v2406_v21, %v4187_v0 }
 0x971   : > { %v2425_v25 = vsel %vm1211_vm6, %v2424_v23, %v2417_v22 }
 0x972   : > { %v2429_v38 = vperm.slane %v2425_v25, %v4187_v0  ;;  %v2411_v26 = vrot.slane %v2410_v50, 4  ;;  %v2435_v46 = vshrl.u32 %v2410_v50, 16 }
 0x974   : > { %v2434_v30 = vpack.i.b16 %v2429_v38, %v2410_v50  ;;  %v2436_v42 = vshrl.u32 %v2429_v38, 16  ;;  %v2412_v40 = vsel %vm1211_vm6, 0, %v2411_v26  ;;  %v2430_v31 = vrot.slane %v2429_v38, 4 }
 0x975   : > { %v2441_v36 = vshrl.u32 %v2412_v40, 16 }
 0x976   : > { %v2624_v32 = vsel %vm1741_vm9, %v2434_v30, 0  ;;  %v2437_v41 = vpack.i.b16 %v2436_v42, %v2435_v46  ;;  %v2431_v34 = vsel %vm1211_vm6, 0, %v2430_v31 }
 0x977   : > { %2633 = vmatpush.bf16.msra.mxu0 %v2624_v32  ;;  %v2440_v35 = vpack.i.b16 %v2431_v34, %v2412_v40  ;;  %v2442_v37 = vshrl.u32 %v2431_v34, 16 }
 0x978   : > { %v2643_v39 = vsel %vm1741_vm9, %v2437_v41, 0 }
 0x979   : > { %2652 = vmatpush.bf16.msra.mxu1 %v2643_v39  ;;  %v2662_v44 = vsel %vm1741_vm9, %v2440_v35, 0  ;;  %v2443_v43 = vpack.i.b16 %v2442_v37, %v2441_v36 }
 0x97a   : > { %2671 = vmatpush.bf16.msra.mxu2 %v2662_v44 }
 0x97b   : > { %v2681_v45 = vsel %vm1741_vm9, %v2443_v43, 0 }
 0x97c   : > { %2690 = vmatpush.bf16.msra.mxu3 %v2681_v45 }
 0x9be   : > { %v2546_v47 = vpop.xlane.xlu1 %2545 }
 0x9bf   : > { %3677 = vrcp.f32 %v2546_v47  ;;  %v2567_v55 = vand.u32 2147483648, %v2546_v47  ;;  %v2565_v54 = vand.u32 2147483647, %v2546_v47  ;;  %vm2561_vm5 = vweird.f32 %v2546_v47 }
 0x9c1   : > { %v2568_v59 = vor.u32 1.1754944e-38, %v2567_v55  ;;  %vm2566_vm9 = vcmp.eq.f32.partialorder %v2565_v54, 8.507059e+37 }
 0x9c5   : > { %v3678_v48 = vpop.eup %3677 }
 0x9c6   : > { %v2557_v49 = vmul.f32 %v3678_v48, %v2546_v47  ;;  %vm2562_vm4 = vweird.f32 %v3678_v48 }
 0x9c7   : > { %vm2563_vm8 = vmor %vm2561_vm5, %vm2562_vm4 }
 0x9c8   : > { %v2558_v51 = vsub.f32 1.0, %v2557_v49  ;;  %v2552_v53 = vpop.xlane.xlu0 %2551 }
 0x9c9   : > { %3679 = vrcp.f32 %v2552_v53  ;;  %v2555_v56 = vpop.xlane.xlu2 %2554  ;;  %v2597_v7 = vand.u32 2147483648, %v2552_v53  ;;  %v2595_v12 = vand.u32 2147483647, %v2552_v53  ;;  %vm2591_vm12 = vweird.f32 %v2552_v53 }
 0x9ca   : > { %v2559_v57 = vmul.f32 %v3678_v48, %v2558_v51  ;;  %3681 = vrcp.f32 %v2555_v56  ;;  %v2612_v13 = vand.u32 2147483648, %v2555_v56  ;;  %v2610_v14 = vand.u32 2147483647, %v2555_v56 }
 0x9cb   : > { %v2598_v16 = vor.u32 1.1754944e-38, %v2597_v7  ;;  %vm2606_vm0 = vweird.f32 %v2555_v56  ;;  %vm2596_vm2 = vcmp.eq.f32.partialorder %v2595_v12, 8.507059e+37 }
 0x9cc   : > { %v2560_v58 = vadd.f32 %v3678_v48, %v2559_v57  ;;  %v2613_v19 = vor.u32 1.1754944e-38, %v2612_v13  ;;  %vm2611_vm4 = vcmp.eq.f32.partialorder %v2610_v14, 8.507059e+37 }
 0x9ce   : > { %v2564_v60 = vsel %vm2563_vm8, %v3678_v48, %v2560_v58 }
 0x9cf   : > { %v3680_v61 = vpop.eup %3679  ;;  %v2569_v62 = vsel %vm2566_vm9, %v2568_v59, %v2564_v60 }
 0x9d0   : > { %v3682_v63 = vpop.eup %3681  ;;  %v2570_v1 = vmul.f32 %v4517_v29, %v2569_v62  ;;  %v2587_v11 = vmul.f32 %v3680_v61, %v2552_v53  ;;  %v2549_v2 = vpop.xlane.xlu0 %2548  ;;  %vm2592_vm10 = vweird.f32 %v3680_v61 }
 0x9d1   : > { %v2602_v3 = vmul.f32 %v3682_v63, %v2555_v56  ;;  %3683 = vrcp.f32 %v2549_v2  ;;  %vm2607_vm11 = vweird.f32 %v3682_v63  ;;  %vm2593_vm13 = vmor %vm2591_vm12, %vm2592_vm10  ;;  %v2582_v26 = vand.u32 2147483648, %v2549_v2 }
 0x9d2   : > { %v2588_v4 = vsub.f32 1.0, %v2587_v11  ;;  %v2616_v5 = vpack.c.bf16 %v2570_v1, %v2570_v1  ;;  %vm2608_vm3 = vmor %vm2606_vm0, %vm2607_vm11  ;;  %v2580_v30 = vand.u32 2147483647, %v2549_v2  ;;  %vm2576_vm8 = vweird.f32 %v2549_v2 }
 0x9d3   : > { %v2603_v8 = vsub.f32 1.0, %v2602_v3  ;;  %v2583_v32 = vor.u32 1.1754944e-38, %v2582_v26 }
 0x9d4   : > { %v2589_v10 = vmul.f32 %v3680_v61, %v2588_v4  ;;  %3470 = vmatmul.msk.bf16.vlgmr.msra.gmra.mxu0 %vm1561_vm7, %v2616_v5  ;;  %vm2581_vm10 = vcmp.eq.f32.partialorder %v2580_v30, 8.507059e+37 }
 0x9d5   : > { %v2604_v24 = vmul.f32 %v3682_v63, %v2603_v8 }
 0x9d6   : > { %v2590_v15 = vadd.f32 %v3680_v61, %v2589_v10 }
 0x9d7   : > { %v3684_v29 = vpop.eup %3683  ;;  %v2605_v17 = vadd.f32 %v3682_v63, %v2604_v24 }
 0x9d8   : > { %v2594_v18 = vsel %vm2593_vm13, %v3680_v61, %v2590_v15  ;;  %v2572_v20 = vmul.f32 %v3684_v29, %v2549_v2  ;;  %vm2577_vm5 = vweird.f32 %v3684_v29 }
 0x9d9   : > { %v2599_v21 = vsel %vm2596_vm2, %v2598_v16, %v2594_v18  ;;  %v2609_v22 = vsel %vm2608_vm3, %v3682_v63, %v2605_v17  ;;  %vm2578_vm9 = vmor %vm2576_vm8, %vm2577_vm5 }
 0x9da   : > { %v2600_v23 = vmul.f32 %v4521_v27, %v2599_v21  ;;  %v2614_v50 = vsel %vm2611_vm4, %v2613_v19, %v2609_v22  ;;  %v2573_v25 = vsub.f32 1.0, %v2572_v20 }
 0x9db   : > { %v2615_v38 = vmul.f32 %v4523_v28, %v2614_v50 }
 0x9dc   : > { %v2574_v46 = vmul.f32 %v3684_v29, %v2573_v25  ;;  %v2618_v42 = vpack.c.bf16 %v2600_v23, %v2600_v23 }
 0x9dd   : > { %v2619_v40 = vpack.c.bf16 %v2615_v38, %v2615_v38 }
 0x9de   : > { %v2575_v31 = vadd.f32 %v3684_v29, %v2574_v46  ;;  %3472 = vmatmul.msk.bf16.vlgmr.msra.gmra.mxu2 %vm1561_vm7, %v2618_v42 }
 0x9df   : > { %3473 = vmatmul.msk.bf16.vlgmr.msra.gmra.mxu3 %vm1561_vm7, %v2619_v40 }
 0x9e0   : > { %v2579_v41 = vsel %vm2578_vm9, %v3684_v29, %v2575_v31 }
 0x9e1   : > { %v2584_v27 = vsel %vm2581_vm10, %v2583_v32, %v2579_v41 }
 0x9e2   : > { %v2585_v34 = vmul.f32 %v4529_v33, %v2584_v27 }
 0x9e4   : > { %v2617_v28 = vpack.c.bf16 %v2585_v34, %v2585_v34 }
 0x9e6   : > { %3471 = vmatmul.msk.bf16.vlgmr.msra.gmra.mxu1 %vm1561_vm7, %v2617_v28 }
 0xa51   : > { %v2635_v35 = vpop.f32.mrf.mxu0 }
 0xa52   : > { %v2698_v37 = vrot.slane %v2635_v35, 4 }
 0xa59   : > { %v2637_v36 = vpop.f32.mrf.mxu0 }
 0xa61   : > { %v2673_v39 = vpop.f32.mrf.mxu2 }
 0xa62   : > { %v2696_v44 = vrot.slane %v2673_v39, 4  ;;  %v2699_v43 = vsel %vm1211_vm6, %v2673_v39, %v2698_v37  ;;  %v2692_v45 = vpop.f32.mrf.mxu3 }
 0xa63   : > { %v2707_v47 = vperm.slane %v2699_v43, %v4183_v52  ;;  %v2708_v48 = vrot.slane %v2692_v45, 4  ;;  %v2654_v49 = vpop.f32.mrf.mxu1 }
 0xa64   : > { %v2697_v51 = vsel %vm1211_vm6, %v2696_v44, %v2635_v35  ;;  %v2710_v53 = vrot.slane %v2654_v49, 4 }
 0xa65   : > { %v2703_v33 = vperm.slane %v2697_v51, %v4183_v52  ;;  %v2709_v55 = vsel %vm1211_vm6, %v2708_v48, %v2654_v49  ;;  %v2734_v58 = vrot.slane %v2707_v47, 4  ;;  %v3538_v49 = vld [vmem:[%s4101_s23 + $0x8] sm:$0xff] }
 0xa66   : > { %v2711_v56 = vsel %vm1211_vm6, %v2692_v45, %v2710_v53  ;;  %v2715_v57 = vperm.slane %v2709_v55, %v4183_v52  ;;  %2846 = vmatpush.bf16.msrb.mxu0 %v3538_v49 }
 0xa67   : > { %v2722_v54 = vrot.slane %v2703_v33, 4  ;;  %v2719_v59 = vperm.slane %v2711_v56, %v4183_v52 }
 0xa68   : > { %v2720_v60 = vrot.slane %v2715_v57, 4 }
 0xa69   : > { %v2723_v61 = vsel %vm1211_vm6, %v2715_v57, %v2722_v54  ;;  %v2732_v62 = vrot.slane %v2719_v59, 4  ;;  %v2735_v63 = vsel %vm1211_vm6, %v2719_v59, %v2734_v58  ;;  %v2675_v1 = vpop.f32.mrf.mxu2  ;;  %v3642_v58 = vld [vmem:[%s4856_s3] ss:$0 sm:$0xff] }
 0xa6a   : > { %v2721_v11 = vsel %vm1211_vm6, %v2720_v60, %v2703_v33  ;;  %v2731_v2 = vperm.slane %v2723_v61, %v4187_v0  ;;  %v2743_v3 = vperm.slane %v2735_v63, %v4187_v0  ;;  %v2694_v4 = vpop.f32.mrf.mxu3 }
 0xa6b   : > { %v2727_v5 = vperm.slane %v2721_v11, %v4187_v0  ;;  %v2733_v7 = vsel %vm1211_vm6, %v2732_v62, %v2707_v47  ;;  %v2656_v8 = vpop.f32.mrf.mxu1 }
 0xa6c   : > { %v2739_v10 = vperm.slane %v2733_v7, %v4187_v0  ;;  %v2746_v12 = vrot.slane %v2731_v2, 4  ;;  %v2750_v13 = vrot.slane %v2743_v3, 4  ;;  %v3539_v7 = vld [vmem:[%s4118_s24] sm:$0xff]  ;;  %v3544_v8 = vld [vmem:[%s4128_s29 + $0x18] sm:$0xff] }
 0xa6d   : > { %v2744_v24 = vrot.slane %v2727_v5, 4  ;;  %2965 = vmatpush.bf16.msrb.mxu2 %v3544_v8 }
 0xa6e   : > { %v2747_v14 = vsel %vm1211_vm6, 0.0, %v2746_v12  ;;  %v2748_v15 = vrot.slane %v2739_v10, 4  ;;  %v2751_v29 = vsel %vm1211_vm6, 0.0, %v2750_v13  ;;  %v2752_v16 = vsel %vm1211_vm6, %v2746_v12, %v2727_v5  ;;  %v3540_v5 = vld [vmem:[%s4118_s24 + $0x8] sm:$0xff]  ;;  %v3543_v12 = vld [vmem:[%s4128_s29 + $0x10] sm:$0xff] }
 0xa6f   : > { %v2745_v17 = vsel %vm1211_vm6, 0.0, %v2744_v24  ;;  %v2756_v18 = vperm.slane %v2752_v16, %v4183_v52  ;;  %v2757_v19 = vrot.slane %v2747_v14, 4  ;;  %v2768_v20 = vrot.slane %v2751_v29, 4  ;;  %2916 = vmatpush.bf16.msrb.mxu1 %v3540_v5 }
 0xa70   : > { %v2749_v21 = vsel %vm1211_vm6, 0.0, %v2748_v15  ;;  %v2763_v22 = vsel %vm1211_vm6, %v2750_v13, %v2739_v10 }
 0xa71   : > { %v2758_v23 = vsel %vm1211_vm6, %v2757_v19, %v2745_v17  ;;  %v2767_v50 = vperm.slane %v2763_v22, %v4183_v52  ;;  %v2769_v25 = vsel %vm1211_vm6, %v2768_v20, %v2749_v21  ;;  %v2776_v38 = vrot.slane %v2756_v18, 4  ;;  %2966 = vmatpush.bf16.msrb.mxu2 %v3543_v12 }
 0xa72   : > { %v2762_v26 = vperm.slane %v2758_v23, %v4183_v52  ;;  %v2773_v46 = vperm.slane %v2769_v25, %v4183_v52  ;;  %v3542_v25 = vld [vmem:[%s4128_s29 + $0x8] sm:$0xff] }
 0xa73   : > { %v2788_v30 = vrot.slane %v2767_v50, 4  ;;  %2917 = vmatpush.bf16.msrb.mxu1 %v3539_v7 }
 0xa74   : > { %v2777_v42 = vsel %vm1211_vm6, %v2762_v26, %v2776_v38  ;;  %v2774_v40 = vrot.slane %v2762_v26, 4  ;;  %v2786_v31 = vrot.slane %v2773_v46, 4  ;;  %v3541_v38 = vld [vmem:[%s4128_s29] sm:$0xff]  ;;  %s4860_s29 = sld [smem:[#allocation12_spill]] }
 0xa75   : > { %v2785_v32 = vperm.slane %v2777_v42, %v4187_v0  ;;  %v2789_v41 = vsel %vm1211_vm6, %v2773_v46, %v2788_v30  ;;  %2967 = vmatpush.bf16.msrb.mxu2 %v3542_v25  ;;  %v3645_v26 = vld [vmem:[%s1079_s28] ss:$0 sm:$0xff] }
 0xa76   : > { %v2797_v27 = vperm.slane %v2789_v41, %v4187_v0  ;;  %v2775_v34 = vsel %vm1211_vm6, %v2774_v40, %v2756_v18  ;;  %v2787_v28 = vsel %vm1211_vm6, %v2786_v31, %v2767_v50  ;;  %v3643_v18 = vld [vmem:[%s4857_s4] ss:$0 sm:$0xff] }
 0xa77   : > { %v2804_v35 = vrot.slane %v2785_v32, 4  ;;  %v2781_v52 = vperm.slane %v2775_v34, %v4187_v0  ;;  %v2793_v36 = vperm.slane %v2787_v28, %v4187_v0  ;;  %v3537_v0 = vld [vmem:[%s4101_s23] sm:$0xff] }
 0xa78   : > { %v2802_v37 = vrot.slane %v2797_v27, 4  ;;  %2847 = vmatpush.bf16.msrb.mxu0 %v3537_v0 }
 0xa79   : > { %v2805_v39 = vsel %vm1211_vm6, %v2797_v27, %v2804_v35  ;;  %v2798_v44 = vrot.slane %v2793_v36, 4  ;;  %v2800_v43 = vrot.slane %v2781_v52, 4  ;;  %2968 = vmatpush.bf16.msrb.mxu2 %v3541_v38 }
 0xa7a   : > { %2815 = vrot.lane.b32.xlu1 %v2805_v39, %s3835_s0  ;;  %v2803_v45 = vsel %vm1211_vm6, %v2802_v37, %v2785_v32  ;;  %v3646_v32 = vld [vmem:[%s1087_s26] ss:$0 sm:$0xff]  ;;  %p3509_p1 = scmp.ne.s32.totalorder %s4860_s29, 1 }
 0xa7b   : > { %2811 = vrot.lane.b32.xlu0 %v2803_v45, %s3834_s8  ;;  %v2801_v47 = vsel %vm1211_vm6, %v2793_v36, %v2800_v43  ;;  %v2799_v48 = vsel %vm1211_vm6, %v2798_v44, %v2781_v52  ;;  %s4861_s26 = sld [smem:[#allocation40_spill]] (!%p3509_p1) }
 0xa7c   : > { %2807 = vrot.lane.b32.xlu2 %v2801_v47, %s3836_s27  ;;  %s4858_s27 = scalar_lea.vmem %s4759_s15, %s4044_s5  ;;  %s4863_s3 = sld [smem:[#allocation38_spill]] (!%p3509_p1) }
 0xa7d   : > { %v3644_v21 = vld [vmem:[%s4858_s27] ss:$0 sm:$0xff]  ;;  %s4864_s4 = sld [smem:[#allocation39_spill]] (!%p3509_p1) }
 0xa7e   : > { %s4865_s27 = sld [smem:[#allocation41_spill]] (!%p3509_p1) }
 0xa81   : > { %s4862_s9 = smov (!%p3509_p1), %s4861_s26 }
 0xad6   : > { %v2808_v51 = vpop.permute.xlu2 %2807 }
 0xad7   : > { %v2818_v33 = vsel %vm1561_vm7, %v2799_v48, %v2808_v51 }
 0xaec   : > { %v2816_v53 = vpop.permute.xlu1 %2815 }
 0xaed   : > { %v2812_v55 = vpop.permute.xlu0 %2811 }
 0xaee   : > { %v2819_v56 = vsel %vm1939_vm14, %v2818_v33, %v2812_v55 }
 0xaef   : > { %v2820_v57 = vsel %vm1941_vm15, %v2819_v56, %v2816_v53  ;;  %vm2957_vm15 = vcmask 523264  }
 0xaf0   : > { %v2821_v54 = vpack.c.bf16 %v2820_v57, %v2820_v57 }
 0xaf2   : > { %3482 = vmatmul.msk.bf16.vlgmr.msrb.gmra.mxu0 %vm1099_vm1, %v2821_v54 }
 0xb6f   : > { %v2849_v59 = vpop.f32.mrf.mxu0 }
 0xb70   : > { %v2850_v60 = vadd.f32 %v3642_v58, %v2849_v59 }
 0xb72   : > { %v2853_v61 = vadd.f32 %v2850_v60, %v4381_v6 }
 0xb74   : > { %v2856_v62 = vsel %vm1099_vm1, %v2853_v61, 0.0 }
 0xb75   : > { %2857 = vadd.xlane.f32.xlu0 %v2856_v62 }
 0xb77   : > { %v2851_v63 = vpop.f32.mrf.mxu0 }
 0xbe8   : > { %v2858_v1 = vpop.xlane.xlu0 %2857 }
 0xbe9   : > { %v2859_v11 = vmul.f32 %v2858_v1, %v4140_v9 }
 0xbeb   : > { %v2860_v2 = vsub.f32 %v2853_v61, %v2859_v11 }
 0xbed   : > { %v2861_v3 = vmul.f32 %v2860_v2, %v2860_v2 }
 0xbef   : > { %v2862_v4 = vsel %vm1099_vm1, %v2861_v3, 0.0 }
 0xbf0   : > { %2863 = vadd.xlane.f32.xlu2 %v2862_v4 }
 0xc63   : > { %v2864_v6 = vpop.xlane.xlu2 %2863 }
 0xc64   : > { %v2865_v10 = vmul.f32 %v2864_v6, %v4140_v9 }
 0xc66   : > { %v2866_v13 = vadd.f32 1e-05, %v2865_v10 }
 0xc68   : > { %3685 = vrsqrt.f32 %v2866_v13  ;;  %vm2873_vm7 = vweird.f32 %v2866_v13 }
 0xc6e   : > { %v3686_v24 = vpop.eup %3685 }
 0xc6f   : > { %v2868_v14 = vmul.f32 %v3686_v24, %v2866_v13  ;;  %vm2874_vm6 = vweird.f32 %v3686_v24 }
 0xc70   : > { %vm2875_vm14 = vmor %vm2873_vm7, %vm2874_vm6 }
 0xc71   : > { %v2869_v15 = vmul.f32 %v3686_v24, %v2868_v14 }
 0xc73   : > { %v2870_v29 = vmul.f32 0.5, %v2869_v15 }
 0xc75   : > { %v2871_v16 = vsub.f32 1.5, %v2870_v29 }
 0xc77   : > { %v2872_v17 = vmul.f32 %v3686_v24, %v2871_v16 }
 0xc79   : > { %v2876_v19 = vsel %vm2875_vm14, %v3686_v24, %v2872_v17 }
 0xc7a   : > { %v2877_v20 = vmul.f32 %v2876_v19, %v2860_v2 }
 0xc7c   : > { %v2881_v22 = vmul.f32 %v3643_v18, %v2877_v20 }
 0xc7e   : > { %v2885_v23 = vadd.f32 %v3644_v21, %v2881_v22 }
 0xc80   : > { %v2886_v50 = vpack.c.bf16 %v2885_v23, %v2885_v23 }
 0xc82   : > { %3491 = vmatmul.msk.bf16.vlgmr.msrb.gmra.mxu1 %vm1099_vm1, %v2886_v50 }
 0xcff   : > { %v2919_v46 = vpop.f32.mrf.mxu1 }
 0xd00   : > { %v2920_v30 = vadd.f32 %v3645_v26, %v2919_v46 }
 0xd02   : > { %v2923_v42 = vmax.f32 %v2920_v30, 0.0 }
 0xd04   : > { %v2924_v40 = vpack.c.bf16 %v2923_v42, %v2923_v42 }
 0xd06   : > { %3508 = vmatmul.msk.bf16.vlgmr.msrb.gmra.mxu2 %vm2957_vm15, %v2924_v40 }
 0xd07   : > { %v2921_v31 = vpop.f32.mrf.mxu1 }
 0xd89   : > { %v2970_v41 = vpop.f32.mrf.mxu2 }
 0xd8a   : > { %v2974_v27 = vadd.f32 %v2970_v41, %v2853_v61 }
 0xd8c   : > { %v2979_v34 = vadd.f32 %v3646_v32, %v2974_v27 }
 0xd8d   : > { %2984 = sbr.rel (%p3509_p1) target bundleno = 4135 (0x1027), region = 124 }
 0xd8e   : > { %2980 = vst.msk [vmem:[#allocation2] sm:$0xff] %vm1099_vm1, %v2979_v34 }
 0xd91   : > { %v2972_v28 = vpop.f32.mrf.mxu2 }
 0xd92   : > { %v2987_v35 = vsel %vm1099_vm1, %v2979_v34, 0.0  ;;  %v3546_v43 = vld [vmem:[%s4861_s26 + $0x8] sm:$0xff]  ;;  %v3545_v45 = vld [vmem:[%s4862_s9] sm:$0xff] }
 0xd93   : > { %2988 = vadd.xlane.f32.xlu0 %v2987_v35  ;;  %3047 = vmatpush.bf16.msra.mxu0 %v3546_v43  ;;  %v3688_v57 = vld [vmem:[%s4863_s3] ss:$0 sm:$0xff] }
 0xd94   : > { %v3690_v62 = vld [vmem:[%s4865_s27] ss:$0 sm:$0xff] }
 0xd97   : > { %3048 = vmatpush.bf16.msra.mxu0 %v3545_v45 }
 0xe06   : > { %v2989_v52 = vpop.xlane.xlu0 %2988 }
 0xe07   : > { %v2990_v36 = vmul.f32 %v2989_v52, %v4140_v9 }
 0xe09   : > { %v2991_v37 = vsub.f32 %v2979_v34, %v2990_v36 }
 0xe0b   : > { %v2992_v39 = vmul.f32 %v2991_v37, %v2991_v37 }
 0xe0d   : > { %v2993_v44 = vsel %vm1099_vm1, %v2992_v39, 0.0 }
 0xe0e   : > { %2994 = vadd.xlane.f32.xlu0 %v2993_v44 }
 0xe81   : > { %v2995_v47 = vpop.xlane.xlu0 %2994 }
 0xe82   : > { %v2996_v48 = vmul.f32 %v2995_v47, %v4140_v9  ;;  %v3689_v9 = vld [vmem:[%s4864_s4] ss:$0 sm:$0xff] }
 0xe84   : > { %v2997_v49 = vadd.f32 1e-05, %v2996_v48 }
 0xe86   : > { %3691 = vrsqrt.f32 %v2997_v49  ;;  %vm3004_vm12 = vweird.f32 %v2997_v49 }
 0xe8c   : > { %v3692_v0 = vpop.eup %3691 }
 0xe8d   : > { %v2999_v51 = vmul.f32 %v3692_v0, %v2997_v49  ;;  %vm3005_vm11 = vweird.f32 %v3692_v0 }
 0xe8e   : > { %vm3006_vm13 = vmor %vm3004_vm12, %vm3005_vm11 }
 0xe8f   : > { %v3000_v53 = vmul.f32 %v3692_v0, %v2999_v51 }
 0xe91   : > { %v3001_v33 = vmul.f32 0.5, %v3000_v53 }
 0xe93   : > { %v3002_v55 = vsub.f32 1.5, %v3001_v33 }
 0xe95   : > { %v3003_v56 = vmul.f32 %v3692_v0, %v3002_v55 }
 0xe97   : > { %v3007_v54 = vsel %vm3006_vm13, %v3692_v0, %v3003_v56 }
 0xe98   : > { %v3008_v58 = vmul.f32 %v3007_v54, %v2991_v37 }
 0xe9a   : > { %v3012_v59 = vmul.f32 %v3688_v57, %v3008_v58 }
 0xe9c   : > { %v3016_v60 = vadd.f32 %v3689_v9, %v3012_v59 }
 0xe9e   : > { %v3017_v61 = vpack.c.bf16 %v3016_v60, %v3016_v60 }
 0xea0   : > { %3518 = vmatmul.msk.bf16.vlgmr.msra.gmra.mxu0 %vm1099_vm1, %v3017_v61 }
 0xf1d   : > { %v3050_v63 = vpop.f32.mrf.mxu0 }
 0xf1e   : > { %v3051_v1 = vadd.f32 %v3690_v62, %v3050_v63 }
 0xf20   : > { %3054 = vst [vmem:[%s4134_s2] sm:$0xff] %v3051_v1  ;;  %3055 = vmax.xlane.f32.xlu1 %v3051_v1 }
 0xf25   : > { %v3052_v11 = vpop.f32.mrf.mxu0 }
 0xf93   : > { %v3056_v2 = vpop.xlane.xlu1 %3055 }
 0xf94   : > { %v3057_v3 = vsub.f32 %v3051_v1, %v3056_v2 }
 0xf96   : > { %v3058_v4 = vmul.f32 1.442695, %v3057_v3 }
 0xf98   : > { %3693 = vpow2.f32 %v3058_v4 }
 0xf9e   : > { %v3694_v5 = vpop.eup %3693 }
 0xf9f   : > { %3060 = vadd.xlane.f32.xlu1 %v3694_v5 }
0x1012   : > { %v3061_v7 = vpop.xlane.xlu1 %3060 }
0x1013   : > { %3695 = vrcp.f32 %v3061_v7  ;;  %v3073_v12 = vand.u32 2147483648, %v3061_v7  ;;  %v3071_v24 = vand.u32 2147483647, %v3061_v7  ;;  %vm3067_vm0 = vweird.f32 %v3061_v7 }
0x1015   : > { %v3074_v15 = vor.u32 1.1754944e-38, %v3073_v12  ;;  %vm3072_vm3 = vcmp.eq.f32.partialorder %v3071_v24, 8.507059e+37 }
0x1019   : > { %v3696_v8 = vpop.eup %3695 }
0x101a   : > { %v3063_v6 = vmul.f32 %v3696_v8, %v3061_v7  ;;  %vm3068_vm1 = vweird.f32 %v3696_v8 }
0x101b   : > { %vm3069_vm2 = vmor %vm3067_vm0, %vm3068_vm1 }
0x101c   : > { %v3064_v10 = vsub.f32 1.0, %v3063_v6 }
0x101e   : > { %v3065_v13 = vmul.f32 %v3696_v8, %v3064_v10 }
0x1020   : > { %v3066_v14 = vadd.f32 %v3696_v8, %v3065_v13 }
0x1022   : > { %v3070_v29 = vsel %vm3069_vm2, %v3696_v8, %v3066_v14 }
0x1023   : > { %v3075_v16 = vsel %vm3072_vm3, %v3074_v15, %v3070_v29 }
0x1024   : > { %v3076_v17 = vmul.f32 %v3694_v5, %v3075_v16 }
0x1026   : > { %3077 = vst [vmem:[%s4136_s6] sm:$0xff] %v3076_v17 }
0x1027 PF: > { %s4866_s21 = sld [smem:[#allocation13_spill]]  ;;  %s3096_s26 = sshll.u32 %s4134_s2, 4  ;;  %s3097_s26 = int_to_ptr.vmem [resolvable:$true] %s3096_s26 }
0x1028   : > { %s4867_s25 = sld [smem:[#allocation22_spill]] }
0x1029   : > { %s4869_s5 = sld [smem:[#allocation42_spill]] }
0x102d   : > { %s3521_s20 = sshll.u32 %s4866_s21, 3 }
0x102e   : > { %s3079_s7 = scalar_lea.sflag [#allocation4], %s4867_s25 }
0x102f   : > { %s3094_s28 = scalar_lea.hbm %s4869_s5, %s3521_s20  ;;  %s3717_s24 = scalar_lea.hbm %s4869_s5, 16 }
0x1030   : > { %s3098_s1 = sshll.u32 %s3094_s28, 4  ;;  %s3099_s1 = int_to_ptr.hbm [resolvable:$true] %s3098_s1 }
0x1031   : > { %s3711_s22 = sshra.s32 %s3099_s1, 4  ;;  %s3712_s22 = int_to_ptr.hbm [resolvable:$true] %s3711_s22 }
0x1032   : > { %s3713_s19 = scalar_lea.hbm %s3712_s22, 8  ;;  %p3718_p6 = scmp.lt.s32.totalorder %s3712_s22, %s4869_s5 }
0x1033   : > { %p3714_p2 = scmp.ne.s32.totalorder %s3712_s22, %s3713_s19  ;;  %p3719_p7 = scmp.lt.s32.totalorder %s3717_s24, %s3713_s19 }
0x1035   : > { %p3715_p4 = pnand %p3714_p2, %p4016_p3  ;;  %p3720_p8 = por %p3719_p7, %p3718_p6 }
0x1037   : > { %p3716_p5 = pneg %p3715_p4 }
0x1039   : > { %p3721_p10 = pnand %p3720_p8, %p3716_p5 }
0x103b   : > { %3724 = shalt.err (!%p3721_p10)
}
0x103c   : > { %3547 = dma.vmem_to_hbm [thread:$0]  (%p4016_p3), %s3097_s26, 128, %s3099_s1, %s3079_s7  }
0x103d   : > { %s4870_s27 = sld [smem:[#allocation43_spill]]  ;;  %s3110_s30 = sshll.u32 %s4136_s6, 4  ;;  %s3111_s30 = int_to_ptr.vmem [resolvable:$true] %s3110_s30 }
0x103e   : > { %s3084_s28 = scalar_lea.sflag [#allocation6], %s4867_s25 }
0x1043   : > { %s3108_s21 = scalar_lea.hbm %s4870_s27, %s3521_s20  ;;  %s3745_s26 = scalar_lea.hbm %s4870_s27, 16 }
0x1044   : > { %s3112_s29 = sshll.u32 %s3108_s21, 4  ;;  %s3113_s29 = int_to_ptr.hbm [resolvable:$true] %s3112_s29 }
0x1045   : > { %s3739_s22 = sshra.s32 %s3113_s29, 4  ;;  %s3740_s22 = int_to_ptr.hbm [resolvable:$true] %s3739_s22 }
0x1046   : > { %s3741_s19 = scalar_lea.hbm %s3740_s22, 8  ;;  %p3746_p0 = scmp.lt.s32.totalorder %s3740_s22, %s4870_s27 }
0x1047   : > { %p3742_p11 = scmp.ne.s32.totalorder %s3740_s22, %s3741_s19  ;;  %p3747_p1 = scmp.lt.s32.totalorder %s3745_s26, %s3741_s19 }
0x1049   : > { %p3743_p12 = pnand %p3742_p11, %p4016_p3  ;;  %p3748_p2 = por %p3747_p1, %p3746_p0 }
0x104b   : > { %p3744_p13 = pneg %p3743_p12 }
0x104d   : > { %p3749_p4 = pnand %p3748_p2, %p3744_p13 }
0x104f   : > { %3752 = shalt.err (!%p3749_p4)
}
0x1050   : > { %3548 = dma.vmem_to_hbm [thread:$0]  (%p4016_p3), %s3111_s30, 128, %s3113_s29, %s3084_s28  }
0x1051 PF: > { %s4871_s6 = sld [smem:[#allocation16_spill]] }
0x1052   : > { %s4872_s25 = sld [smem:[#allocation9_spill]] }
0x1057   : > { %p3558_p5 = scmp.ge.s32.totalorder %s4871_s6, 2 }
0x1058   : > { %s3124_s24 = sand.u32 1, %s4872_s25  }
0x1059   : > { %p3552_p6 = pnand %p3558_p5, %p4026_p9  ;;  %s3125_s4 = scalar_lea.sflag [#allocation4], %s3124_s24 }
0x105b   : > { %p3553_p7 = pneg %p3552_p6 }
0x105d   : > { %3786 = dma.done.wait (%p3553_p7), %s3125_s4, 128  }
0x105e   : > { %3788 = vsyncadd (%p3553_p7), %s3125_s4, 4294967168  ;;  %s3135_s8 = scalar_lea.sflag [#allocation6], %s3124_s24 }
0x105f   : > { %3790 = dma.done.wait (%p3553_p7), %s3135_s8, 128  }
0x1060   : > { %3792 = vsyncadd (%p3553_p7), %s3135_s8, 4294967168  ;;  %s42_s1 = sadd.s32 1, %s4871_s6   ;;  %s4874_s29 = sld [smem:[#allocation10_spill]] }
0x1061   : > { %p39_p8 = scmp.ge.s32.totalorder %s42_s1, 6   ;;  %s4875_s2 = sld [smem:[#allocation11_spill]] }
0x1062   : > { %s4876_s6 = sld [smem:[#allocation21_spill]] }
0x1063   : > { %s4877_s30 = sld [smem:[#allocation14_spill]]  ;;  %41 = sbr.rel (!%p39_p8) target bundleno = 26 (0x1a), region = 233 }
0x1064   : > { %s4878_s7 = sld [smem:[#allocation15_spill]] }
0x1065   : > { %s4879_s3 = sld [smem:[#allocation17_spill]] }
0x1066   : > { %s4880_s26 = sld [smem:[#allocation19_spill]] }
0x1068   :  { %3141 = vsyncpa [#allocation4], 1 }
0x1069   :  { %3143 = vsyncpa [#allocation4 + $0x1], 1 }
0x106a   :  { %3144 = vsyncpa [#allocation6], 1 }
0x106b   :  { %3146 = vsyncpa [#allocation6 + $0x1], 1 }

</bundles_post_ra>
